<compile_context>
chip_gen: v7x
topology: tpu7x:2x2x1
jax: 0.10.0
libtpu: 0.0.40
codegen_flags: <defaults>
</compile_context>

<pallas_src>
import functools

import jax
import jax.numpy as jnp
from jax.experimental import pallas as pl
from jax.experimental.pallas import tpu as pltpu

MATMUL_DTYPE = jnp.bfloat16     # MXU operands + HBM activations (f32 accum).
BN_EPS = 1e-5                   # PyTorch BatchNorm2d default
_VMEM_BUDGET_PER_STEP = 6 * 1024 * 1024


def _vmem_limit_bytes():
    cap = 128 * 1024 * 1024
    try:
        cap = int(getattr(pltpu.get_tpu_info(), "vmem_capacity_bytes", cap))
    except Exception:
        pass
    # ~96 MiB on 128 MiB parts (v5e/v6e), ~48 MiB on v7x's 64 MiB.
    return min(96 * 1024 * 1024, (cap * 3) // 4)


def _pick_batch_tile(n, per_sample_bytes):
    """Largest divisor NB of n whose blocks fit the per-step budget while
    keeping >=2 grid steps whenever n>=2 (megacore / v7x 2nd TensorCore)."""
    nb = 1
    for cand in range(1, n + 1):
        if n % cand != 0:
            continue
        if cand * per_sample_bytes > _VMEM_BUDGET_PER_STEP:
            continue
        if n >= 2 and (n // cand) < 2:
            continue
        nb = cand
    return nb


# ----------------------------------------------------------------------------
# Conv kernel: KH banded matmuls, lane-dense output, optional BN partial sums
# ----------------------------------------------------------------------------
def _make_conv_kernel(NB, H, KH, WCin, WCout, *, apply_swish, collect_stats):
    NBH = NB * H

    def kernel(*refs):
        if collect_stats:
            x_ref, wb_ref, b_ref, y_ref, s1_ref, s2_ref = refs
        else:
            x_ref, wb_ref, b_ref, y_ref = refs

        # KH contiguous-slab matmuls accumulated in f32.  The KW taps and the
        # W-dim 'same' padding are baked into the banded weight wb.
        acc = jnp.zeros((NBH, WCout), jnp.float32)
        for kh in range(KH):
            slab = x_ref[:, kh:kh + H, :].reshape(NBH, WCin)       # bf16
            acc = acc + jnp.dot(slab, wb_ref[kh],
                                preferred_element_type=jnp.float32)
        acc = acc + b_ref[...]                                      # (1, WCout)

        if collect_stats:
            # Per-tile partial sums for two-phase BatchNorm (batch stats).
            s1_ref[...] = jnp.sum(acc, axis=0, keepdims=True).reshape(1, 1, WCout)
            s2_ref[...] = jnp.sum(acc * acc, axis=0, keepdims=True).reshape(1, 1, WCout)

        if apply_swish:
            acc = acc * jax.nn.sigmoid(acc)
        y_ref[...] = acc.reshape(NB, H, WCout).astype(y_ref.dtype)

    return kernel


def conv2d_lane(act, w, b, *, apply_swish=False, collect_stats=False,
                out_dtype=MATMUL_DTYPE):
    """'same' stride-1 conv2d + bias on a lane-dense activation.

    act: (N, H, W*Cin); w: (KH, KW, Cin, Cout) f32; b: (1, Cout) f32.
    Returns y (N, H, W*Cout) [+ per-tile sums (G,1,W*Cout) and sq-sums].
    """
    N, H, wcin = act.shape
    KH, KW, Cin, Cout = w.shape
    assert wcin % Cin == 0
    W = wcin // Cin
    ph, pw = KH // 2, KW // 2
    Hp = H + 2 * ph
    WCin, WCout = W * Cin, W * Cout

    # H halo only (W halo lives inside the banded weight); bf16 halves the
    # pad round-trip bytes.
    x = jnp.pad(act.astype(MATMUL_DTYPE), ((0, 0), (ph, ph), (0, 0)))

    # Banded weight: wb[kh, wi*Cin+c, wo*Cout+co] = w[kh, wi-wo+pw, c, co]
    # (zero when the tap falls outside [0,KW), which also realizes the W-dim
    # zero padding), so one matmul per kh covers all KW taps lane-aligned.
    wi = jnp.arange(W)[:, None, None]
    wo = jnp.arange(W)[None, :, None]
    kw = jnp.arange(KW)[None, None, :]
    onehot = (wi == wo + kw - pw).astype(jnp.float32)              # (W, W, KW)
    wb = jnp.einsum("iok,hkcd->hicod", onehot, w.astype(jnp.float32))
    wb = wb.reshape(KH, WCin, WCout).astype(MATMUL_DTYPE)

    b_wc = jnp.tile(b.reshape(1, Cout).astype(jnp.float32), (1, W))  # (1, WCout)

    per_sample = 2 * (Hp * WCin * 2 + H * WCout * 4)
    NB = _pick_batch_tile(N, per_sample)
    G = N // NB

    kernel = _make_conv_kernel(NB, H, KH, WCin, WCout,
                               apply_swish=apply_swish,
                               collect_stats=collect_stats)

    in_specs = [
        pl.BlockSpec((NB, Hp, WCin), lambda i: (i, 0, 0)),
        pl.BlockSpec((KH, WCin, WCout), lambda i: (0, 0, 0)),
        pl.BlockSpec((1, WCout), lambda i: (0, 0)),
    ]
    out_shape = [jax.ShapeDtypeStruct((N, H, WCout), out_dtype)]
    out_specs = [pl.BlockSpec((NB, H, WCout), lambda i: (i, 0, 0))]
    if collect_stats:
        out_shape += [jax.ShapeDtypeStruct((G, 1, WCout), jnp.float32)] * 2
        out_specs += [pl.BlockSpec((1, 1, WCout), lambda i: (i, 0, 0))] * 2

    return pl.pallas_call(
        kernel,
        out_shape=tuple(out_shape) if collect_stats else out_shape[0],
        grid=(G,),
        in_specs=in_specs,
        out_specs=tuple(out_specs) if collect_stats else out_specs[0],
        compiler_params=pltpu.CompilerParams(
            dimension_semantics=("parallel",),
            vmem_limit_bytes=_vmem_limit_bytes()),
    )(x, wb, b_wc)


# ----------------------------------------------------------------------------
# BN phase 2: lane-dense fused normalize + affine + swish + residual
# ----------------------------------------------------------------------------
def _make_bn_apply_kernel(apply_swish, add_residual):
    def kernel(*refs):
        if add_residual:
            y_ref, sc_ref, sh_ref, r_ref, o_ref = refs
        else:
            y_ref, sc_ref, sh_ref, o_ref = refs
        v = y_ref[...].astype(jnp.float32) * sc_ref[...] + sh_ref[...]
        if apply_swish:
            v = v * jax.nn.sigmoid(v)
        if add_residual:
            v = v + r_ref[...].astype(jnp.float32)
        o_ref[...] = v.astype(o_ref.dtype)
    return kernel


def bn_apply_lane(y, scale_wc, shift_wc, *, residual=None, apply_swish=False,
                  out_dtype=MATMUL_DTYPE):
    N, H, WC = y.shape
    per_sample = 2 * H * WC * (2 + (2 if residual is not None else 0) + 2)
    NB = _pick_batch_tile(N, per_sample)
    G = N // NB

    kernel = _make_bn_apply_kernel(apply_swish, residual is not None)
    sc = scale_wc.reshape(1, 1, WC).astype(jnp.float32)
    sh = shift_wc.reshape(1, 1, WC).astype(jnp.float32)

    arrays = [y, sc, sh]
    in_specs = [
        pl.BlockSpec((NB, H, WC), lambda i: (i, 0, 0)),
        pl.BlockSpec((1, 1, WC), lambda i: (0, 0, 0)),
        pl.BlockSpec((1, 1, WC), lambda i: (0, 0, 0)),
    ]
    if residual is not None:
        arrays.append(residual)
        in_specs.append(pl.BlockSpec((NB, H, WC), lambda i: (i, 0, 0)))

    return pl.pallas_call(
        kernel,
        out_shape=jax.ShapeDtypeStruct((N, H, WC), out_dtype),
        grid=(G,),
        in_specs=in_specs,
        out_specs=pl.BlockSpec((NB, H, WC), lambda i: (i, 0, 0)),
        compiler_params=pltpu.CompilerParams(
            dimension_semantics=("parallel",),
            vmem_limit_bytes=_vmem_limit_bytes()),
    )(*arrays)


def conv_bn_lane(act, w, b, gamma, beta, *, residual=None, apply_swish=False,
                 eps=BN_EPS, out_dtype=MATMUL_DTYPE):
    """conv+bias -> training-mode BatchNorm (batch stats over N,H,W, biased
    variance) -> [swish] -> [+residual], as two tiled Pallas calls."""
    N, H, _ = act.shape
    Cout = w.shape[-1]
    y, ssum, ssq = conv2d_lane(act, w, b, apply_swish=False,
                               collect_stats=True, out_dtype=MATMUL_DTYPE)
    WC = y.shape[-1]
    W = WC // Cout
    cnt = float(N * H * W)
    s1 = jnp.sum(ssum, axis=(0, 1)).reshape(W, Cout).sum(axis=0)    # (Cout,)
    s2 = jnp.sum(ssq, axis=(0, 1)).reshape(W, Cout).sum(axis=0)
    mean = s1 / cnt
    var = jnp.maximum(s2 / cnt - mean * mean, 0.0)
    scale = gamma.reshape(Cout) * jax.lax.rsqrt(var + eps)
    shift = beta.reshape(Cout) - mean * scale
    scale_wc = jnp.tile(scale[None, :], (1, W))                      # (1, WC)
    shift_wc = jnp.tile(shift[None, :], (1, W))
    return bn_apply_lane(y, scale_wc, shift_wc, residual=residual,
                         apply_swish=apply_swish, out_dtype=out_dtype)


# ----------------------------------------------------------------------------
# PixelShuffle (PyTorch convention) on the lane-dense layout -- pure data
# movement, left to XLA.
# ----------------------------------------------------------------------------
def pixel_shuffle_lane(y, W, C, r):
    """(N,H,W*C*r*r) -> (N,H*r,(W*r)*C), channel order c_in = c*r*r + i*r + j."""
    N, H, _ = y.shape
    y = y.reshape(N, H, W, C, r, r)
    y = jnp.transpose(y, (0, 1, 4, 2, 5, 3))
    return y.reshape(N, H * r, (W * r) * C)


# ----------------------------------------------------------------------------
# Parameter init (deterministic, synthetic) and Generator1 forward
# ----------------------------------------------------------------------------
def _init_conv(key, kh, kw, cin, cout, scale=0.05):
    k1, k2 = jax.random.split(key)
    w = jax.random.normal(k1, (kh, kw, cin, cout), jnp.float32) * scale
    b = jax.random.normal(k2, (1, cout), jnp.float32) * scale
    return w, b


def _init_bn(c):
    # PyTorch BatchNorm2d default affine init: gamma=1, beta=0
    return jnp.ones((1, c), jnp.float32), jnp.zeros((1, c), jnp.float32)


def init_generator_params(key, *, num_blocks, out_channel_num, kernel_size,
                          upsample_factor):
    keys = jax.random.split(key, 4 + 2 * num_blocks)
    p = {}
    p["conv1_w"], p["conv1_b"] = _init_conv(keys[0], kernel_size, kernel_size,
                                            3, out_channel_num)
    p["res"] = []
    for i in range(num_blocks):
        kb1, kb2 = jax.random.split(keys[1 + i])
        w1, b1 = _init_conv(kb1, kernel_size, kernel_size,
                            out_channel_num, out_channel_num)
        w2, b2 = _init_conv(kb2, kernel_size, kernel_size,
                            out_channel_num, out_channel_num)
        g1, be1 = _init_bn(out_channel_num)
        g2, be2 = _init_bn(out_channel_num)
        p["res"].append(dict(conv1_w=w1, conv1_b=b1, bn1_g=g1, bn1_b=be1,
                             conv2_w=w2, conv2_b=b2, bn2_g=g2, bn2_b=be2))
    p["conv2_w"], p["conv2_b"] = _init_conv(keys[1 + num_blocks], kernel_size,
                                            kernel_size, out_channel_num,
                                            out_channel_num)
    p["bn2_g"], p["bn2_b"] = _init_bn(out_channel_num)
    up_out = out_channel_num * upsample_factor ** 2
    p["up_w"], p["up_b"] = _init_conv(keys[2 + num_blocks], 3, 3,
                                      out_channel_num, up_out)
    p["conv3_w"], p["conv3_b"] = _init_conv(keys[3 + num_blocks], 9, 9,
                                            out_channel_num, 3)
    return p


def generator1_forward(x, params, *, num_blocks, upsample_factor):
    # x: (N, H, W, 3) f32 NHWC
    N, H, W, Cin0 = x.shape
    act = x.astype(MATMUL_DTYPE).reshape(N, H, W * Cin0)

    # conv1 + swish (fused)
    act = conv2d_lane(act, params["conv1_w"], params["conv1_b"],
                      apply_swish=True)
    x1 = act

    # residual blocks: x + bn2(conv2(swish(bn1(conv1(x)))))
    for i in range(num_blocks):
        pr = params["res"][i]
        y = conv_bn_lane(act, pr["conv1_w"], pr["conv1_b"],
                         pr["bn1_g"], pr["bn1_b"], apply_swish=True)
        act = conv_bn_lane(y, pr["conv2_w"], pr["conv2_b"],
                           pr["bn2_g"], pr["bn2_b"], residual=act)

    # x = x1 + bn2(conv2(x))
    act = conv_bn_lane(act, params["conv2_w"], params["conv2_b"],
                       params["bn2_g"], params["bn2_b"], residual=x1)

    # upsample block: swish(pixel_shuffle(conv(x))); swish commutes with the
    # shuffle so it is fused into the conv kernel.
    r = upsample_factor
    C = params["up_w"].shape[-1] // (r * r)
    up = conv2d_lane(act, params["up_w"], params["up_b"], apply_swish=True)
    up = pixel_shuffle_lane(up, W, C, r)

    # conv3 (9x9, pad 4) -> f32 final output
    out = conv2d_lane(up, params["conv3_w"], params["conv3_b"],
                      out_dtype=jnp.float32)
    return out.reshape(N, H * r, W * r, 3)


if __name__ == "__main__":
    NUM_BLOCKS = 2
    OUT_CH = 8
    KSIZE = 3
    UPSCALE = 2
    N, H, W = 2, 8, 8

    key = jax.random.PRNGKey(0)
    kx, kp = jax.random.split(key)
    x = jax.random.normal(kx, (N, H, W, 3), jnp.float32)

    params = init_generator_params(kp, num_blocks=NUM_BLOCKS,
                                   out_channel_num=OUT_CH, kernel_size=KSIZE,
                                   upsample_factor=UPSCALE)

    fwd = functools.partial(generator1_forward, num_blocks=NUM_BLOCKS,
                            upsample_factor=UPSCALE)
    out = jax.jit(fwd)(x, params)
    out = jax.block_until_ready(out)

    expected_shape = (N, H * UPSCALE, W * UPSCALE, 3)
    assert out.shape == expected_shape, (out.shape, expected_shape)
    assert bool(jnp.all(jnp.isfinite(out)))
    print("KERNEL_OK")
</pallas_src>

<mosaic_0001>
module attributes {stable_mosaic.version = 11 : i64} {
  func.func @kernel(%arg0: i32, %arg1: memref<1x10x24xbf16, #tpu.memory_space<vmem>>, %arg2: memref<3x24x64xbf16, #tpu.memory_space<vmem>>, %arg3: memref<1x64xf32, #tpu.memory_space<vmem>>, %arg4: memref<1x8x64xbf16, #tpu.memory_space<vmem>>) attributes {dimension_semantics = [#tpu.dimension_semantics<parallel>], iteration_bounds = array<i64: 2>, scalar_prefetch = 0 : i64, scratch_operands = 0 : i64, tpu.core_type = #tpu.core_type<tc>, window_params = [{transform_indices = @transform_0, window_bounds = array<i64: 1, 10, 24>}, {pipeline_mode = #tpu.pipeline_mode<synchronous>, transform_indices = @transform_1, window_bounds = array<i64: 3, 24, 64>}, {pipeline_mode = #tpu.pipeline_mode<synchronous>, transform_indices = @transform_2, window_bounds = array<i64: 1, 64>}, {transform_indices = @transform_3, window_bounds = array<i64: 1, 8, 64>}]} {
    %cst = arith.constant 0.000000e+00 : f32
    %0 = vector.broadcast %cst : f32 to vector<8x64xf32>
    %c0 = arith.constant 0 : index
    %c0_0 = arith.constant 0 : index
    %c0_1 = arith.constant 0 : index
    %1 = vector.load %arg1[%c0, %c0_0, %c0_1] : memref<1x10x24xbf16, #tpu.memory_space<vmem>>, vector<1x8x24xbf16>
    %2 = vector.shape_cast %1 : vector<1x8x24xbf16> to vector<8x24xbf16>
    %c0_2 = arith.constant 0 : index
    %c0_3 = arith.constant 0 : index
    %c0_4 = arith.constant 0 : index
    %3 = vector.load %arg2[%c0_2, %c0_3, %c0_4] : memref<3x24x64xbf16, #tpu.memory_space<vmem>>, vector<1x24x64xbf16>
    %4 = vector.shape_cast %3 : vector<1x24x64xbf16> to vector<24x64xbf16>
    %cst_5 = arith.constant dense<0.000000e+00> : vector<8x64xf32>
    %5 = tpu.matmul %2, %4, %cst_5 {dimension_numbers = #tpu.dot_dimension_numbers<[1], [0], [0], [1], [0, 0, 1, 1], [], []>} : vector<8x24xbf16>, vector<24x64xbf16>, vector<8x64xf32> -> vector<8x64xf32>
    %6 = arith.addf %0, %5 : vector<8x64xf32>
    %c0_6 = arith.constant 0 : index
    %c1 = arith.constant 1 : index
    %c0_7 = arith.constant 0 : index
    %7 = vector.load %arg1[%c0_6, %c1, %c0_7] : memref<1x10x24xbf16, #tpu.memory_space<vmem>>, vector<1x8x24xbf16>
    %8 = vector.shape_cast %7 : vector<1x8x24xbf16> to vector<8x24xbf16>
    %c1_8 = arith.constant 1 : index
    %c0_9 = arith.constant 0 : index
    %c0_10 = arith.constant 0 : index
    %9 = vector.load %arg2[%c1_8, %c0_9, %c0_10] : memref<3x24x64xbf16, #tpu.memory_space<vmem>>, vector<1x24x64xbf16>
    %10 = vector.shape_cast %9 : vector<1x24x64xbf16> to vector<24x64xbf16>
    %cst_11 = arith.constant dense<0.000000e+00> : vector<8x64xf32>
    %11 = tpu.matmul %8, %10, %cst_11 {dimension_numbers = #tpu.dot_dimension_numbers<[1], [0], [0], [1], [0, 0, 1, 1], [], []>} : vector<8x24xbf16>, vector<24x64xbf16>, vector<8x64xf32> -> vector<8x64xf32>
    %12 = arith.addf %6, %11 : vector<8x64xf32>
    %c0_12 = arith.constant 0 : index
    %c2 = arith.constant 2 : index
    %c0_13 = arith.constant 0 : index
    %13 = vector.load %arg1[%c0_12, %c2, %c0_13] : memref<1x10x24xbf16, #tpu.memory_space<vmem>>, vector<1x8x24xbf16>
    %14 = vector.shape_cast %13 : vector<1x8x24xbf16> to vector<8x24xbf16>
    %c2_14 = arith.constant 2 : index
    %c0_15 = arith.constant 0 : index
    %c0_16 = arith.constant 0 : index
    %15 = vector.load %arg2[%c2_14, %c0_15, %c0_16] : memref<3x24x64xbf16, #tpu.memory_space<vmem>>, vector<1x24x64xbf16>
    %16 = vector.shape_cast %15 : vector<1x24x64xbf16> to vector<24x64xbf16>
    %cst_17 = arith.constant dense<0.000000e+00> : vector<8x64xf32>
    %17 = tpu.matmul %14, %16, %cst_17 {dimension_numbers = #tpu.dot_dimension_numbers<[1], [0], [0], [1], [0, 0, 1, 1], [], []>} : vector<8x24xbf16>, vector<24x64xbf16>, vector<8x64xf32> -> vector<8x64xf32>
    %18 = arith.addf %12, %17 : vector<8x64xf32>
    %c0_18 = arith.constant 0 : index
    %c0_19 = arith.constant 0 : index
    %19 = vector.load %arg3[%c0_18, %c0_19] : memref<1x64xf32, #tpu.memory_space<vmem>>, vector<1x64xf32>
    %20 = vector.broadcast %19 : vector<1x64xf32> to vector<8x64xf32>
    %21 = arith.addf %18, %20 : vector<8x64xf32>
    %22 = arith.negf %21 : vector<8x64xf32>
    %23 = math.exp %22 : vector<8x64xf32>
    %cst_20 = arith.constant 1.000000e+00 : f32
    %24 = vector.broadcast %cst_20 : f32 to vector<8x64xf32>
    %25 = arith.addf %24, %23 : vector<8x64xf32>
    %26 = arith.divf %24, %25 : vector<8x64xf32>
    %27 = arith.mulf %21, %26 : vector<8x64xf32>
    %28 = vector.shape_cast %27 : vector<8x64xf32> to vector<1x8x64xf32>
    %29 = arith.truncf %28 : vector<1x8x64xf32> to vector<1x8x64xbf16>
    %c0_21 = arith.constant 0 : index
    %c0_22 = arith.constant 0 : index
    %c0_23 = arith.constant 0 : index
    %30 = vector.load %arg4[%c0_21, %c0_22, %c0_23] : memref<1x8x64xbf16, #tpu.memory_space<vmem>>, vector<1x8x64xbf16>
    tpu.vector_store %arg4[%c0_21, %c0_22, %c0_23], %29 {strides = array<i32>} : memref<1x8x64xbf16, #tpu.memory_space<vmem>>, vector<1x8x64xbf16>,
    return
  }
  func.func @transform_0(%arg0: i32) -> (i32, i32, i32) {
    %c0_i32 = arith.constant 0 : i32
    %c0_i32_0 = arith.constant 0 : i32
    %c0_i32_1 = arith.constant 0 : i32
    return %arg0, %c0_i32, %c0_i32_0 : i32, i32, i32
  }
  func.func @transform_1(%arg0: i32) -> (i32, i32, i32) {
    %c0_i32 = arith.constant 0 : i32
    %c0_i32_0 = arith.constant 0 : i32
    %c0_i32_1 = arith.constant 0 : i32
    %c0_i32_2 = arith.constant 0 : i32
    return %c0_i32, %c0_i32_0, %c0_i32_1 : i32, i32, i32
  }
  func.func @transform_2(%arg0: i32) -> (i32, i32) {
    %c0_i32 = arith.constant 0 : i32
    %c0_i32_0 = arith.constant 0 : i32
    %c0_i32_1 = arith.constant 0 : i32
    return %c0_i32, %c0_i32_0 : i32, i32
  }
  func.func @transform_3(%arg0: i32) -> (i32, i32, i32) {
    %c0_i32 = arith.constant 0 : i32
    %c0_i32_0 = arith.constant 0 : i32
    %c0_i32_1 = arith.constant 0 : i32
    return %arg0, %c0_i32, %c0_i32_0 : i32, i32, i32
  }
}

module attributes {stable_mosaic.version = 11 : i64} {
  func.func @kernel(%arg0: i32, %arg1: memref<1x10x64xbf16, #tpu.memory_space<vmem>>, %arg2: memref<3x64x64xbf16, #tpu.memory_space<vmem>>, %arg3: memref<1x64xf32, #tpu.memory_space<vmem>>, %arg4: memref<1x8x64xbf16, #tpu.memory_space<vmem>>, %arg5: memref<1x1x64xf32, #tpu.memory_space<vmem>>, %arg6: memref<1x1x64xf32, #tpu.memory_space<vmem>>) attributes {dimension_semantics = [#tpu.dimension_semantics<parallel>], iteration_bounds = array<i64: 2>, scalar_prefetch = 0 : i64, scratch_operands = 0 : i64, tpu.core_type = #tpu.core_type<tc>, window_params = [{transform_indices = @transform_0, window_bounds = array<i64: 1, 10, 64>}, {pipeline_mode = #tpu.pipeline_mode<synchronous>, transform_indices = @transform_1, window_bounds = array<i64: 3, 64, 64>}, {pipeline_mode = #tpu.pipeline_mode<synchronous>, transform_indices = @transform_2, window_bounds = array<i64: 1, 64>}, {transform_indices = @transform_3, window_bounds = array<i64: 1, 8, 64>}, {transform_indices = @transform_4, window_bounds = array<i64: 1, 1, 64>}, {transform_indices = @transform_5, window_bounds = array<i64: 1, 1, 64>}]} {
    %cst = arith.constant 0.000000e+00 : f32
    %0 = vector.broadcast %cst : f32 to vector<8x64xf32>
    %c0 = arith.constant 0 : index
    %c0_0 = arith.constant 0 : index
    %c0_1 = arith.constant 0 : index
    %1 = vector.load %arg1[%c0, %c0_0, %c0_1] : memref<1x10x64xbf16, #tpu.memory_space<vmem>>, vector<1x8x64xbf16>
    %2 = vector.shape_cast %1 : vector<1x8x64xbf16> to vector<8x64xbf16>
    %c0_2 = arith.constant 0 : index
    %c0_3 = arith.constant 0 : index
    %c0_4 = arith.constant 0 : index
    %3 = vector.load %arg2[%c0_2, %c0_3, %c0_4] : memref<3x64x64xbf16, #tpu.memory_space<vmem>>, vector<1x64x64xbf16>
    %4 = vector.shape_cast %3 : vector<1x64x64xbf16> to vector<64x64xbf16>
    %cst_5 = arith.constant dense<0.000000e+00> : vector<8x64xf32>
    %5 = tpu.matmul %2, %4, %cst_5 {dimension_numbers = #tpu.dot_dimension_numbers<[1], [0], [0], [1], [0, 0, 1, 1], [], []>} : vector<8x64xbf16>, vector<64x64xbf16>, vector<8x64xf32> -> vector<8x64xf32>
    %6 = arith.addf %0, %5 : vector<8x64xf32>
    %c0_6 = arith.constant 0 : index
    %c1 = arith.constant 1 : index
    %c0_7 = arith.constant 0 : index
    %7 = vector.load %arg1[%c0_6, %c1, %c0_7] : memref<1x10x64xbf16, #tpu.memory_space<vmem>>, vector<1x8x64xbf16>
    %8 = vector.shape_cast %7 : vector<1x8x64xbf16> to vector<8x64xbf16>
    %c1_8 = arith.constant 1 : index
    %c0_9 = arith.constant 0 : index
    %c0_10 = arith.constant 0 : index
    %9 = vector.load %arg2[%c1_8, %c0_9, %c0_10] : memref<3x64x64xbf16, #tpu.memory_space<vmem>>, vector<1x64x64xbf16>
    %10 = vector.shape_cast %9 : vector<1x64x64xbf16> to vector<64x64xbf16>
    %cst_11 = arith.constant dense<0.000000e+00> : vector<8x64xf32>
    %11 = tpu.matmul %8, %10, %cst_11 {dimension_numbers = #tpu.dot_dimension_numbers<[1], [0], [0], [1], [0, 0, 1, 1], [], []>} : vector<8x64xbf16>, vector<64x64xbf16>, vector<8x64xf32> -> vector<8x64xf32>
    %12 = arith.addf %6, %11 : vector<8x64xf32>
    %c0_12 = arith.constant 0 : index
    %c2 = arith.constant 2 : index
    %c0_13 = arith.constant 0 : index
    %13 = vector.load %arg1[%c0_12, %c2, %c0_13] : memref<1x10x64xbf16, #tpu.memory_space<vmem>>, vector<1x8x64xbf16>
    %14 = vector.shape_cast %13 : vector<1x8x64xbf16> to vector<8x64xbf16>
    %c2_14 = arith.constant 2 : index
    %c0_15 = arith.constant 0 : index
    %c0_16 = arith.constant 0 : index
    %15 = vector.load %arg2[%c2_14, %c0_15, %c0_16] : memref<3x64x64xbf16, #tpu.memory_space<vmem>>, vector<1x64x64xbf16>
    %16 = vector.shape_cast %15 : vector<1x64x64xbf16> to vector<64x64xbf16>
    %cst_17 = arith.constant dense<0.000000e+00> : vector<8x64xf32>
    %17 = tpu.matmul %14, %16, %cst_17 {dimension_numbers = #tpu.dot_dimension_numbers<[1], [0], [0], [1], [0, 0, 1, 1], [], []>} : vector<8x64xbf16>, vector<64x64xbf16>, vector<8x64xf32> -> vector<8x64xf32>
    %18 = arith.addf %12, %17 : vector<8x64xf32>
    %c0_18 = arith.constant 0 : index
    %c0_19 = arith.constant 0 : index
    %19 = vector.load %arg3[%c0_18, %c0_19] : memref<1x64xf32, #tpu.memory_space<vmem>>, vector<1x64xf32>
    %20 = vector.broadcast %19 : vector<1x64xf32> to vector<8x64xf32>
    %21 = arith.addf %18, %20 : vector<8x64xf32>
    %cst_20 = arith.constant dense<0.000000e+00> : vector<64xf32>
    %22 = vector.multi_reduction <add>, %21, %cst_20 [0] : vector<8x64xf32> to vector<64xf32>
    %23 = vector.shape_cast %22 : vector<64xf32> to vector<1x64xf32>
    %24 = vector.shape_cast %23 : vector<1x64xf32> to vector<1x1x64xf32>
    %c0_21 = arith.constant 0 : index
    %c0_22 = arith.constant 0 : index
    %c0_23 = arith.constant 0 : index
    %25 = vector.load %arg5[%c0_21, %c0_22, %c0_23] : memref<1x1x64xf32, #tpu.memory_space<vmem>>, vector<1x1x64xf32>
    tpu.vector_store %arg5[%c0_21, %c0_22, %c0_23], %24 {strides = array<i32>} : memref<1x1x64xf32, #tpu.memory_space<vmem>>, vector<1x1x64xf32>,
    %26 = arith.mulf %21, %21 : vector<8x64xf32>
    %cst_24 = arith.constant dense<0.000000e+00> : vector<64xf32>
    %27 = vector.multi_reduction <add>, %26, %cst_24 [0] : vector<8x64xf32> to vector<64xf32>
    %28 = vector.shape_cast %27 : vector<64xf32> to vector<1x64xf32>
    %29 = vector.shape_cast %28 : vector<1x64xf32> to vector<1x1x64xf32>
    %c0_25 = arith.constant 0 : index
    %c0_26 = arith.constant 0 : index
    %c0_27 = arith.constant 0 : index
    %30 = vector.load %arg6[%c0_25, %c0_26, %c0_27] : memref<1x1x64xf32, #tpu.memory_space<vmem>>, vector<1x1x64xf32>
    tpu.vector_store %arg6[%c0_25, %c0_26, %c0_27], %29 {strides = array<i32>} : memref<1x1x64xf32, #tpu.memory_space<vmem>>, vector<1x1x64xf32>,
    %31 = vector.shape_cast %21 : vector<8x64xf32> to vector<1x8x64xf32>
    %32 = arith.truncf %31 : vector<1x8x64xf32> to vector<1x8x64xbf16>
    %c0_28 = arith.constant 0 : index
    %c0_29 = arith.constant 0 : index
    %c0_30 = arith.constant 0 : index
    %33 = vector.load %arg4[%c0_28, %c0_29, %c0_30] : memref<1x8x64xbf16, #tpu.memory_space<vmem>>, vector<1x8x64xbf16>
    tpu.vector_store %arg4[%c0_28, %c0_29, %c0_30], %32 {strides = array<i32>} : memref<1x8x64xbf16, #tpu.memory_space<vmem>>, vector<1x8x64xbf16>,
    return
  }
  func.func @transform_0(%arg0: i32) -> (i32, i32, i32) {
    %c0_i32 = arith.constant 0 : i32
    %c0_i32_0 = arith.constant 0 : i32
    %c0_i32_1 = arith.constant 0 : i32
    return %arg0, %c0_i32, %c0_i32_0 : i32, i32, i32
  }
  func.func @transform_1(%arg0: i32) -> (i32, i32, i32) {
    %c0_i32 = arith.constant 0 : i32
    %c0_i32_0 = arith.constant 0 : i32
    %c0_i32_1 = arith.constant 0 : i32
    %c0_i32_2 = arith.constant 0 : i32
    return %c0_i32, %c0_i32_0, %c0_i32_1 : i32, i32, i32
  }
  func.func @transform_2(%arg0: i32) -> (i32, i32) {
    %c0_i32 = arith.constant 0 : i32
    %c0_i32_0 = arith.constant 0 : i32
    %c0_i32_1 = arith.constant 0 : i32
    return %c0_i32, %c0_i32_0 : i32, i32
  }
  func.func @transform_3(%arg0: i32) -> (i32, i32, i32) {
    %c0_i32 = arith.constant 0 : i32
    %c0_i32_0 = arith.constant 0 : i32
    %c0_i32_1 = arith.constant 0 : i32
    return %arg0, %c0_i32, %c0_i32_0 : i32, i32, i32
  }
  func.func @transform_4(%arg0: i32) -> (i32, i32, i32) {
    %c0_i32 = arith.constant 0 : i32
    %c0_i32_0 = arith.constant 0 : i32
    %c0_i32_1 = arith.constant 0 : i32
    return %arg0, %c0_i32, %c0_i32_0 : i32, i32, i32
  }
  func.func @transform_5(%arg0: i32) -> (i32, i32, i32) {
    %c0_i32 = arith.constant 0 : i32
    %c0_i32_0 = arith.constant 0 : i32
    %c0_i32_1 = arith.constant 0 : i32
    return %arg0, %c0_i32, %c0_i32_0 : i32, i32, i32
  }
}

module attributes {stable_mosaic.version = 11 : i64} {
  func.func @kernel(%arg0: i32, %arg1: memref<1x8x64xbf16, #tpu.memory_space<vmem>>, %arg2: memref<1x1x64xf32, #tpu.memory_space<vmem>>, %arg3: memref<1x1x64xf32, #tpu.memory_space<vmem>>, %arg4: memref<1x8x64xbf16, #tpu.memory_space<vmem>>) attributes {dimension_semantics = [#tpu.dimension_semantics<parallel>], iteration_bounds = array<i64: 2>, scalar_prefetch = 0 : i64, scratch_operands = 0 : i64, tpu.core_type = #tpu.core_type<tc>, window_params = [{transform_indices = @transform_0, window_bounds = array<i64: 1, 8, 64>}, {pipeline_mode = #tpu.pipeline_mode<synchronous>, transform_indices = @transform_1, window_bounds = array<i64: 1, 1, 64>}, {pipeline_mode = #tpu.pipeline_mode<synchronous>, transform_indices = @transform_2, window_bounds = array<i64: 1, 1, 64>}, {transform_indices = @transform_3, window_bounds = array<i64: 1, 8, 64>}]} {
    %c0 = arith.constant 0 : index
    %c0_0 = arith.constant 0 : index
    %c0_1 = arith.constant 0 : index
    %0 = vector.load %arg1[%c0, %c0_0, %c0_1] : memref<1x8x64xbf16, #tpu.memory_space<vmem>>, vector<1x8x64xbf16>
    %1 = arith.extf %0 : vector<1x8x64xbf16> to vector<1x8x64xf32>
    %c0_2 = arith.constant 0 : index
    %c0_3 = arith.constant 0 : index
    %c0_4 = arith.constant 0 : index
    %2 = vector.load %arg2[%c0_2, %c0_3, %c0_4] : memref<1x1x64xf32, #tpu.memory_space<vmem>>, vector<1x1x64xf32>
    %3 = vector.broadcast %2 : vector<1x1x64xf32> to vector<1x8x64xf32>
    %4 = arith.mulf %1, %3 : vector<1x8x64xf32>
    %c0_5 = arith.constant 0 : index
    %c0_6 = arith.constant 0 : index
    %c0_7 = arith.constant 0 : index
    %5 = vector.load %arg3[%c0_5, %c0_6, %c0_7] : memref<1x1x64xf32, #tpu.memory_space<vmem>>, vector<1x1x64xf32>
    %6 = vector.broadcast %5 : vector<1x1x64xf32> to vector<1x8x64xf32>
    %7 = arith.addf %4, %6 : vector<1x8x64xf32>
    %8 = arith.negf %7 : vector<1x8x64xf32>
    %9 = math.exp %8 : vector<1x8x64xf32>
    %cst = arith.constant 1.000000e+00 : f32
    %10 = vector.broadcast %cst : f32 to vector<1x8x64xf32>
    %11 = arith.addf %10, %9 : vector<1x8x64xf32>
    %12 = arith.divf %10, %11 : vector<1x8x64xf32>
    %13 = arith.mulf %7, %12 : vector<1x8x64xf32>
    %14 = arith.truncf %13 : vector<1x8x64xf32> to vector<1x8x64xbf16>
    %c0_8 = arith.constant 0 : index
    %c0_9 = arith.constant 0 : index
    %c0_10 = arith.constant 0 : index
    %15 = vector.load %arg4[%c0_8, %c0_9, %c0_10] : memref<1x8x64xbf16, #tpu.memory_space<vmem>>, vector<1x8x64xbf16>
    tpu.vector_store %arg4[%c0_8, %c0_9, %c0_10], %14 {strides = array<i32>} : memref<1x8x64xbf16, #tpu.memory_space<vmem>>, vector<1x8x64xbf16>,
    return
  }
  func.func @transform_0(%arg0: i32) -> (i32, i32, i32) {
    %c0_i32 = arith.constant 0 : i32
    %c0_i32_0 = arith.constant 0 : i32
    %c0_i32_1 = arith.constant 0 : i32
    return %arg0, %c0_i32, %c0_i32_0 : i32, i32, i32
  }
  func.func @transform_1(%arg0: i32) -> (i32, i32, i32) {
    %c0_i32 = arith.constant 0 : i32
    %c0_i32_0 = arith.constant 0 : i32
    %c0_i32_1 = arith.constant 0 : i32
    %c0_i32_2 = arith.constant 0 : i32
    return %c0_i32, %c0_i32_0, %c0_i32_1 : i32, i32, i32
  }
  func.func @transform_2(%arg0: i32) -> (i32, i32, i32) {
    %c0_i32 = arith.constant 0 : i32
    %c0_i32_0 = arith.constant 0 : i32
    %c0_i32_1 = arith.constant 0 : i32
    %c0_i32_2 = arith.constant 0 : i32
    return %c0_i32, %c0_i32_0, %c0_i32_1 : i32, i32, i32
  }
  func.func @transform_3(%arg0: i32) -> (i32, i32, i32) {
    %c0_i32 = arith.constant 0 : i32
    %c0_i32_0 = arith.constant 0 : i32
    %c0_i32_1 = arith.constant 0 : i32
    return %arg0, %c0_i32, %c0_i32_0 : i32, i32, i32
  }
}

module attributes {stable_mosaic.version = 11 : i64} {
  func.func @kernel(%arg0: i32, %arg1: memref<1x8x64xbf16, #tpu.memory_space<vmem>>, %arg2: memref<1x1x64xf32, #tpu.memory_space<vmem>>, %arg3: memref<1x1x64xf32, #tpu.memory_space<vmem>>, %arg4: memref<1x8x64xbf16, #tpu.memory_space<vmem>>, %arg5: memref<1x8x64xbf16, #tpu.memory_space<vmem>>) attributes {dimension_semantics = [#tpu.dimension_semantics<parallel>], iteration_bounds = array<i64: 2>, scalar_prefetch = 0 : i64, scratch_operands = 0 : i64, tpu.core_type = #tpu.core_type<tc>, window_params = [{transform_indices = @transform_0, window_bounds = array<i64: 1, 8, 64>}, {pipeline_mode = #tpu.pipeline_mode<synchronous>, transform_indices = @transform_1, window_bounds = array<i64: 1, 1, 64>}, {pipeline_mode = #tpu.pipeline_mode<synchronous>, transform_indices = @transform_2, window_bounds = array<i64: 1, 1, 64>}, {transform_indices = @transform_3, window_bounds = array<i64: 1, 8, 64>}, {transform_indices = @transform_4, window_bounds = array<i64: 1, 8, 64>}]} {
    %c0 = arith.constant 0 : index
    %c0_0 = arith.constant 0 : index
    %c0_1 = arith.constant 0 : index
    %0 = vector.load %arg1[%c0, %c0_0, %c0_1] : memref<1x8x64xbf16, #tpu.memory_space<vmem>>, vector<1x8x64xbf16>
    %1 = arith.extf %0 : vector<1x8x64xbf16> to vector<1x8x64xf32>
    %c0_2 = arith.constant 0 : index
    %c0_3 = arith.constant 0 : index
    %c0_4 = arith.constant 0 : index
    %2 = vector.load %arg2[%c0_2, %c0_3, %c0_4] : memref<1x1x64xf32, #tpu.memory_space<vmem>>, vector<1x1x64xf32>
    %3 = vector.broadcast %2 : vector<1x1x64xf32> to vector<1x8x64xf32>
    %4 = arith.mulf %1, %3 : vector<1x8x64xf32>
    %c0_5 = arith.constant 0 : index
    %c0_6 = arith.constant 0 : index
    %c0_7 = arith.constant 0 : index
    %5 = vector.load %arg3[%c0_5, %c0_6, %c0_7] : memref<1x1x64xf32, #tpu.memory_space<vmem>>, vector<1x1x64xf32>
    %6 = vector.broadcast %5 : vector<1x1x64xf32> to vector<1x8x64xf32>
    %7 = arith.addf %4, %6 : vector<1x8x64xf32>
    %c0_8 = arith.constant 0 : index
    %c0_9 = arith.constant 0 : index
    %c0_10 = arith.constant 0 : index
    %8 = vector.load %arg4[%c0_8, %c0_9, %c0_10] : memref<1x8x64xbf16, #tpu.memory_space<vmem>>, vector<1x8x64xbf16>
    %9 = arith.extf %8 : vector<1x8x64xbf16> to vector<1x8x64xf32>
    %10 = arith.addf %7, %9 : vector<1x8x64xf32>
    %11 = arith.truncf %10 : vector<1x8x64xf32> to vector<1x8x64xbf16>
    %c0_11 = arith.constant 0 : index
    %c0_12 = arith.constant 0 : index
    %c0_13 = arith.constant 0 : index
    %12 = vector.load %arg5[%c0_11, %c0_12, %c0_13] : memref<1x8x64xbf16, #tpu.memory_space<vmem>>, vector<1x8x64xbf16>
    tpu.vector_store %arg5[%c0_11, %c0_12, %c0_13], %11 {strides = array<i32>} : memref<1x8x64xbf16, #tpu.memory_space<vmem>>, vector<1x8x64xbf16>,
    return
  }
  func.func @transform_0(%arg0: i32) -> (i32, i32, i32) {
    %c0_i32 = arith.constant 0 : i32
    %c0_i32_0 = arith.constant 0 : i32
    %c0_i32_1 = arith.constant 0 : i32
    return %arg0, %c0_i32, %c0_i32_0 : i32, i32, i32
  }
  func.func @transform_1(%arg0: i32) -> (i32, i32, i32) {
    %c0_i32 = arith.constant 0 : i32
    %c0_i32_0 = arith.constant 0 : i32
    %c0_i32_1 = arith.constant 0 : i32
    %c0_i32_2 = arith.constant 0 : i32
    return %c0_i32, %c0_i32_0, %c0_i32_1 : i32, i32, i32
  }
  func.func @transform_2(%arg0: i32) -> (i32, i32, i32) {
    %c0_i32 = arith.constant 0 : i32
    %c0_i32_0 = arith.constant 0 : i32
    %c0_i32_1 = arith.constant 0 : i32
    %c0_i32_2 = arith.constant 0 : i32
    return %c0_i32, %c0_i32_0, %c0_i32_1 : i32, i32, i32
  }
  func.func @transform_3(%arg0: i32) -> (i32, i32, i32) {
    %c0_i32 = arith.constant 0 : i32
    %c0_i32_0 = arith.constant 0 : i32
    %c0_i32_1 = arith.constant 0 : i32
    return %arg0, %c0_i32, %c0_i32_0 : i32, i32, i32
  }
  func.func @transform_4(%arg0: i32) -> (i32, i32, i32) {
    %c0_i32 = arith.constant 0 : i32
    %c0_i32_0 = arith.constant 0 : i32
    %c0_i32_1 = arith.constant 0 : i32
    return %arg0, %c0_i32, %c0_i32_0 : i32, i32, i32
  }
}

module attributes {stable_mosaic.version = 11 : i64} {
  func.func @kernel(%arg0: i32, %arg1: memref<1x10x64xbf16, #tpu.memory_space<vmem>>, %arg2: memref<3x64x256xbf16, #tpu.memory_space<vmem>>, %arg3: memref<1x256xf32, #tpu.memory_space<vmem>>, %arg4: memref<1x8x256xbf16, #tpu.memory_space<vmem>>) attributes {dimension_semantics = [#tpu.dimension_semantics<parallel>], iteration_bounds = array<i64: 2>, scalar_prefetch = 0 : i64, scratch_operands = 0 : i64, tpu.core_type = #tpu.core_type<tc>, window_params = [{transform_indices = @transform_0, window_bounds = array<i64: 1, 10, 64>}, {pipeline_mode = #tpu.pipeline_mode<synchronous>, transform_indices = @transform_1, window_bounds = array<i64: 3, 64, 256>}, {pipeline_mode = #tpu.pipeline_mode<synchronous>, transform_indices = @transform_2, window_bounds = array<i64: 1, 256>}, {transform_indices = @transform_3, window_bounds = array<i64: 1, 8, 256>}]} {
    %cst = arith.constant 0.000000e+00 : f32
    %0 = vector.broadcast %cst : f32 to vector<8x256xf32>
    %c0 = arith.constant 0 : index
    %c0_0 = arith.constant 0 : index
    %c0_1 = arith.constant 0 : index
    %1 = vector.load %arg1[%c0, %c0_0, %c0_1] : memref<1x10x64xbf16, #tpu.memory_space<vmem>>, vector<1x8x64xbf16>
    %2 = vector.shape_cast %1 : vector<1x8x64xbf16> to vector<8x64xbf16>
    %c0_2 = arith.constant 0 : index
    %c0_3 = arith.constant 0 : index
    %c0_4 = arith.constant 0 : index
    %3 = vector.load %arg2[%c0_2, %c0_3, %c0_4] : memref<3x64x256xbf16, #tpu.memory_space<vmem>>, vector<1x64x256xbf16>
    %4 = vector.shape_cast %3 : vector<1x64x256xbf16> to vector<64x256xbf16>
    %cst_5 = arith.constant dense<0.000000e+00> : vector<8x256xf32>
    %5 = tpu.matmul %2, %4, %cst_5 {dimension_numbers = #tpu.dot_dimension_numbers<[1], [0], [0], [1], [0, 0, 1, 1], [], []>} : vector<8x64xbf16>, vector<64x256xbf16>, vector<8x256xf32> -> vector<8x256xf32>
    %6 = arith.addf %0, %5 : vector<8x256xf32>
    %c0_6 = arith.constant 0 : index
    %c1 = arith.constant 1 : index
    %c0_7 = arith.constant 0 : index
    %7 = vector.load %arg1[%c0_6, %c1, %c0_7] : memref<1x10x64xbf16, #tpu.memory_space<vmem>>, vector<1x8x64xbf16>
    %8 = vector.shape_cast %7 : vector<1x8x64xbf16> to vector<8x64xbf16>
    %c1_8 = arith.constant 1 : index
    %c0_9 = arith.constant 0 : index
    %c0_10 = arith.constant 0 : index
    %9 = vector.load %arg2[%c1_8, %c0_9, %c0_10] : memref<3x64x256xbf16, #tpu.memory_space<vmem>>, vector<1x64x256xbf16>
    %10 = vector.shape_cast %9 : vector<1x64x256xbf16> to vector<64x256xbf16>
    %cst_11 = arith.constant dense<0.000000e+00> : vector<8x256xf32>
    %11 = tpu.matmul %8, %10, %cst_11 {dimension_numbers = #tpu.dot_dimension_numbers<[1], [0], [0], [1], [0, 0, 1, 1], [], []>} : vector<8x64xbf16>, vector<64x256xbf16>, vector<8x256xf32> -> vector<8x256xf32>
    %12 = arith.addf %6, %11 : vector<8x256xf32>
    %c0_12 = arith.constant 0 : index
    %c2 = arith.constant 2 : index
    %c0_13 = arith.constant 0 : index
    %13 = vector.load %arg1[%c0_12, %c2, %c0_13] : memref<1x10x64xbf16, #tpu.memory_space<vmem>>, vector<1x8x64xbf16>
    %14 = vector.shape_cast %13 : vector<1x8x64xbf16> to vector<8x64xbf16>
    %c2_14 = arith.constant 2 : index
    %c0_15 = arith.constant 0 : index
    %c0_16 = arith.constant 0 : index
    %15 = vector.load %arg2[%c2_14, %c0_15, %c0_16] : memref<3x64x256xbf16, #tpu.memory_space<vmem>>, vector<1x64x256xbf16>
    %16 = vector.shape_cast %15 : vector<1x64x256xbf16> to vector<64x256xbf16>
    %cst_17 = arith.constant dense<0.000000e+00> : vector<8x256xf32>
    %17 = tpu.matmul %14, %16, %cst_17 {dimension_numbers = #tpu.dot_dimension_numbers<[1], [0], [0], [1], [0, 0, 1, 1], [], []>} : vector<8x64xbf16>, vector<64x256xbf16>, vector<8x256xf32> -> vector<8x256xf32>
    %18 = arith.addf %12, %17 : vector<8x256xf32>
    %c0_18 = arith.constant 0 : index
    %c0_19 = arith.constant 0 : index
    %19 = vector.load %arg3[%c0_18, %c0_19] : memref<1x256xf32, #tpu.memory_space<vmem>>, vector<1x256xf32>
    %20 = vector.broadcast %19 : vector<1x256xf32> to vector<8x256xf32>
    %21 = arith.addf %18, %20 : vector<8x256xf32>
    %22 = arith.negf %21 : vector<8x256xf32>
    %23 = math.exp %22 : vector<8x256xf32>
    %cst_20 = arith.constant 1.000000e+00 : f32
    %24 = vector.broadcast %cst_20 : f32 to vector<8x256xf32>
    %25 = arith.addf %24, %23 : vector<8x256xf32>
    %26 = arith.divf %24, %25 : vector<8x256xf32>
    %27 = arith.mulf %21, %26 : vector<8x256xf32>
    %28 = vector.shape_cast %27 : vector<8x256xf32> to vector<1x8x256xf32>
    %29 = arith.truncf %28 : vector<1x8x256xf32> to vector<1x8x256xbf16>
    %c0_21 = arith.constant 0 : index
    %c0_22 = arith.constant 0 : index
    %c0_23 = arith.constant 0 : index
    %30 = vector.load %arg4[%c0_21, %c0_22, %c0_23] : memref<1x8x256xbf16, #tpu.memory_space<vmem>>, vector<1x8x256xbf16>
    tpu.vector_store %arg4[%c0_21, %c0_22, %c0_23], %29 {strides = array<i32>} : memref<1x8x256xbf16, #tpu.memory_space<vmem>>, vector<1x8x256xbf16>,
    return
  }
  func.func @transform_0(%arg0: i32) -> (i32, i32, i32) {
    %c0_i32 = arith.constant 0 : i32
    %c0_i32_0 = arith.constant 0 : i32
    %c0_i32_1 = arith.constant 0 : i32
    return %arg0, %c0_i32, %c0_i32_0 : i32, i32, i32
  }
  func.func @transform_1(%arg0: i32) -> (i32, i32, i32) {
    %c0_i32 = arith.constant 0 : i32
    %c0_i32_0 = arith.constant 0 : i32
    %c0_i32_1 = arith.constant 0 : i32
    %c0_i32_2 = arith.constant 0 : i32
    return %c0_i32, %c0_i32_0, %c0_i32_1 : i32, i32, i32
  }
  func.func @transform_2(%arg0: i32) -> (i32, i32) {
    %c0_i32 = arith.constant 0 : i32
    %c0_i32_0 = arith.constant 0 : i32
    %c0_i32_1 = arith.constant 0 : i32
    return %c0_i32, %c0_i32_0 : i32, i32
  }
  func.func @transform_3(%arg0: i32) -> (i32, i32, i32) {
    %c0_i32 = arith.constant 0 : i32
    %c0_i32_0 = arith.constant 0 : i32
    %c0_i32_1 = arith.constant 0 : i32
    return %arg0, %c0_i32, %c0_i32_0 : i32, i32, i32
  }
}

module attributes {stable_mosaic.version = 11 : i64} {
  func.func @kernel(%arg0: i32, %arg1: memref<1x24x128xbf16, #tpu.memory_space<vmem>>, %arg2: memref<9x128x48xbf16, #tpu.memory_space<vmem>>, %arg3: memref<1x48xf32, #tpu.memory_space<vmem>>, %arg4: memref<1x16x48xf32, #tpu.memory_space<vmem>>) attributes {dimension_semantics = [#tpu.dimension_semantics<parallel>], iteration_bounds = array<i64: 2>, scalar_prefetch = 0 : i64, scratch_operands = 0 : i64, tpu.core_type = #tpu.core_type<tc>, window_params = [{transform_indices = @transform_0, window_bounds = array<i64: 1, 24, 128>}, {pipeline_mode = #tpu.pipeline_mode<synchronous>, transform_indices = @transform_1, window_bounds = array<i64: 9, 128, 48>}, {pipeline_mode = #tpu.pipeline_mode<synchronous>, transform_indices = @transform_2, window_bounds = array<i64: 1, 48>}, {transform_indices = @transform_3, window_bounds = array<i64: 1, 16, 48>}]} {
    %cst = arith.constant 0.000000e+00 : f32
    %0 = vector.broadcast %cst : f32 to vector<16x48xf32>
    %c0 = arith.constant 0 : index
    %c0_0 = arith.constant 0 : index
    %c0_1 = arith.constant 0 : index
    %1 = vector.load %arg1[%c0, %c0_0, %c0_1] : memref<1x24x128xbf16, #tpu.memory_space<vmem>>, vector<1x16x128xbf16>
    %2 = vector.shape_cast %1 : vector<1x16x128xbf16> to vector<16x128xbf16>
    %c0_2 = arith.constant 0 : index
    %c0_3 = arith.constant 0 : index
    %c0_4 = arith.constant 0 : index
    %3 = vector.load %arg2[%c0_2, %c0_3, %c0_4] : memref<9x128x48xbf16, #tpu.memory_space<vmem>>, vector<1x128x48xbf16>
    %4 = vector.shape_cast %3 : vector<1x128x48xbf16> to vector<128x48xbf16>
    %cst_5 = arith.constant dense<0.000000e+00> : vector<16x48xf32>
    %5 = tpu.matmul %2, %4, %cst_5 {dimension_numbers = #tpu.dot_dimension_numbers<[1], [0], [0], [1], [0, 0, 1, 1], [], []>} : vector<16x128xbf16>, vector<128x48xbf16>, vector<16x48xf32> -> vector<16x48xf32>
    %6 = arith.addf %0, %5 : vector<16x48xf32>
    %c0_6 = arith.constant 0 : index
    %c1 = arith.constant 1 : index
    %c0_7 = arith.constant 0 : index
    %7 = vector.load %arg1[%c0_6, %c1, %c0_7] : memref<1x24x128xbf16, #tpu.memory_space<vmem>>, vector<1x16x128xbf16>
    %8 = vector.shape_cast %7 : vector<1x16x128xbf16> to vector<16x128xbf16>
    %c1_8 = arith.constant 1 : index
    %c0_9 = arith.constant 0 : index
    %c0_10 = arith.constant 0 : index
    %9 = vector.load %arg2[%c1_8, %c0_9, %c0_10] : memref<9x128x48xbf16, #tpu.memory_space<vmem>>, vector<1x128x48xbf16>
    %10 = vector.shape_cast %9 : vector<1x128x48xbf16> to vector<128x48xbf16>
    %cst_11 = arith.constant dense<0.000000e+00> : vector<16x48xf32>
    %11 = tpu.matmul %8, %10, %cst_11 {dimension_numbers = #tpu.dot_dimension_numbers<[1], [0], [0], [1], [0, 0, 1, 1], [], []>} : vector<16x128xbf16>, vector<128x48xbf16>, vector<16x48xf32> -> vector<16x48xf32>
    %12 = arith.addf %6, %11 : vector<16x48xf32>
    %c0_12 = arith.constant 0 : index
    %c2 = arith.constant 2 : index
    %c0_13 = arith.constant 0 : index
    %13 = vector.load %arg1[%c0_12, %c2, %c0_13] : memref<1x24x128xbf16, #tpu.memory_space<vmem>>, vector<1x16x128xbf16>
    %14 = vector.shape_cast %13 : vector<1x16x128xbf16> to vector<16x128xbf16>
    %c2_14 = arith.constant 2 : index
    %c0_15 = arith.constant 0 : index
    %c0_16 = arith.constant 0 : index
    %15 = vector.load %arg2[%c2_14, %c0_15, %c0_16] : memref<9x128x48xbf16, #tpu.memory_space<vmem>>, vector<1x128x48xbf16>
    %16 = vector.shape_cast %15 : vector<1x128x48xbf16> to vector<128x48xbf16>
    %cst_17 = arith.constant dense<0.000000e+00> : vector<16x48xf32>
    %17 = tpu.matmul %14, %16, %cst_17 {dimension_numbers = #tpu.dot_dimension_numbers<[1], [0], [0], [1], [0, 0, 1, 1], [], []>} : vector<16x128xbf16>, vector<128x48xbf16>, vector<16x48xf32> -> vector<16x48xf32>
    %18 = arith.addf %12, %17 : vector<16x48xf32>
    %c0_18 = arith.constant 0 : index
    %c3 = arith.constant 3 : index
    %c0_19 = arith.constant 0 : index
    %19 = vector.load %arg1[%c0_18, %c3, %c0_19] : memref<1x24x128xbf16, #tpu.memory_space<vmem>>, vector<1x16x128xbf16>
    %20 = vector.shape_cast %19 : vector<1x16x128xbf16> to vector<16x128xbf16>
    %c3_20 = arith.constant 3 : index
    %c0_21 = arith.constant 0 : index
    %c0_22 = arith.constant 0 : index
    %21 = vector.load %arg2[%c3_20, %c0_21, %c0_22] : memref<9x128x48xbf16, #tpu.memory_space<vmem>>, vector<1x128x48xbf16>
    %22 = vector.shape_cast %21 : vector<1x128x48xbf16> to vector<128x48xbf16>
    %cst_23 = arith.constant dense<0.000000e+00> : vector<16x48xf32>
    %23 = tpu.matmul %20, %22, %cst_23 {dimension_numbers = #tpu.dot_dimension_numbers<[1], [0], [0], [1], [0, 0, 1, 1], [], []>} : vector<16x128xbf16>, vector<128x48xbf16>, vector<16x48xf32> -> vector<16x48xf32>
    %24 = arith.addf %18, %23 : vector<16x48xf32>
    %c0_24 = arith.constant 0 : index
    %c4 = arith.constant 4 : index
    %c0_25 = arith.constant 0 : index
    %25 = vector.load %arg1[%c0_24, %c4, %c0_25] : memref<1x24x128xbf16, #tpu.memory_space<vmem>>, vector<1x16x128xbf16>
    %26 = vector.shape_cast %25 : vector<1x16x128xbf16> to vector<16x128xbf16>
    %c4_26 = arith.constant 4 : index
    %c0_27 = arith.constant 0 : index
    %c0_28 = arith.constant 0 : index
    %27 = vector.load %arg2[%c4_26, %c0_27, %c0_28] : memref<9x128x48xbf16, #tpu.memory_space<vmem>>, vector<1x128x48xbf16>
    %28 = vector.shape_cast %27 : vector<1x128x48xbf16> to vector<128x48xbf16>
    %cst_29 = arith.constant dense<0.000000e+00> : vector<16x48xf32>
    %29 = tpu.matmul %26, %28, %cst_29 {dimension_numbers = #tpu.dot_dimension_numbers<[1], [0], [0], [1], [0, 0, 1, 1], [], []>} : vector<16x128xbf16>, vector<128x48xbf16>, vector<16x48xf32> -> vector<16x48xf32>
    %30 = arith.addf %24, %29 : vector<16x48xf32>
    %c0_30 = arith.constant 0 : index
    %c5 = arith.constant 5 : index
    %c0_31 = arith.constant 0 : index
    %31 = vector.load %arg1[%c0_30, %c5, %c0_31] : memref<1x24x128xbf16, #tpu.memory_space<vmem>>, vector<1x16x128xbf16>
    %32 = vector.shape_cast %31 : vector<1x16x128xbf16> to vector<16x128xbf16>
    %c5_32 = arith.constant 5 : index
    %c0_33 = arith.constant 0 : index
    %c0_34 = arith.constant 0 : index
    %33 = vector.load %arg2[%c5_32, %c0_33, %c0_34] : memref<9x128x48xbf16, #tpu.memory_space<vmem>>, vector<1x128x48xbf16>
    %34 = vector.shape_cast %33 : vector<1x128x48xbf16> to vector<128x48xbf16>
    %cst_35 = arith.constant dense<0.000000e+00> : vector<16x48xf32>
    %35 = tpu.matmul %32, %34, %cst_35 {dimension_numbers = #tpu.dot_dimension_numbers<[1], [0], [0], [1], [0, 0, 1, 1], [], []>} : vector<16x128xbf16>, vector<128x48xbf16>, vector<16x48xf32> -> vector<16x48xf32>
    %36 = arith.addf %30, %35 : vector<16x48xf32>
    %c0_36 = arith.constant 0 : index
    %c6 = arith.constant 6 : index
    %c0_37 = arith.constant 0 : index
    %37 = vector.load %arg1[%c0_36, %c6, %c0_37] : memref<1x24x128xbf16, #tpu.memory_space<vmem>>, vector<1x16x128xbf16>
    %38 = vector.shape_cast %37 : vector<1x16x128xbf16> to vector<16x128xbf16>
    %c6_38 = arith.constant 6 : index
    %c0_39 = arith.constant 0 : index
    %c0_40 = arith.constant 0 : index
    %39 = vector.load %arg2[%c6_38, %c0_39, %c0_40] : memref<9x128x48xbf16, #tpu.memory_space<vmem>>, vector<1x128x48xbf16>
    %40 = vector.shape_cast %39 : vector<1x128x48xbf16> to vector<128x48xbf16>
    %cst_41 = arith.constant dense<0.000000e+00> : vector<16x48xf32>
    %41 = tpu.matmul %38, %40, %cst_41 {dimension_numbers = #tpu.dot_dimension_numbers<[1], [0], [0], [1], [0, 0, 1, 1], [], []>} : vector<16x128xbf16>, vector<128x48xbf16>, vector<16x48xf32> -> vector<16x48xf32>
    %42 = arith.addf %36, %41 : vector<16x48xf32>
    %c0_42 = arith.constant 0 : index
    %c7 = arith.constant 7 : index
    %c0_43 = arith.constant 0 : index
    %43 = vector.load %arg1[%c0_42, %c7, %c0_43] : memref<1x24x128xbf16, #tpu.memory_space<vmem>>, vector<1x16x128xbf16>
    %44 = vector.shape_cast %43 : vector<1x16x128xbf16> to vector<16x128xbf16>
    %c7_44 = arith.constant 7 : index
    %c0_45 = arith.constant 0 : index
    %c0_46 = arith.constant 0 : index
    %45 = vector.load %arg2[%c7_44, %c0_45, %c0_46] : memref<9x128x48xbf16, #tpu.memory_space<vmem>>, vector<1x128x48xbf16>
    %46 = vector.shape_cast %45 : vector<1x128x48xbf16> to vector<128x48xbf16>
    %cst_47 = arith.constant dense<0.000000e+00> : vector<16x48xf32>
    %47 = tpu.matmul %44, %46, %cst_47 {dimension_numbers = #tpu.dot_dimension_numbers<[1], [0], [0], [1], [0, 0, 1, 1], [], []>} : vector<16x128xbf16>, vector<128x48xbf16>, vector<16x48xf32> -> vector<16x48xf32>
    %48 = arith.addf %42, %47 : vector<16x48xf32>
    %c0_48 = arith.constant 0 : index
    %c8 = arith.constant 8 : index
    %c0_49 = arith.constant 0 : index
    %49 = vector.load %arg1[%c0_48, %c8, %c0_49] : memref<1x24x128xbf16, #tpu.memory_space<vmem>>, vector<1x16x128xbf16>
    %50 = vector.shape_cast %49 : vector<1x16x128xbf16> to vector<16x128xbf16>
    %c8_50 = arith.constant 8 : index
    %c0_51 = arith.constant 0 : index
    %c0_52 = arith.constant 0 : index
    %51 = vector.load %arg2[%c8_50, %c0_51, %c0_52] : memref<9x128x48xbf16, #tpu.memory_space<vmem>>, vector<1x128x48xbf16>
    %52 = vector.shape_cast %51 : vector<1x128x48xbf16> to vector<128x48xbf16>
    %cst_53 = arith.constant dense<0.000000e+00> : vector<16x48xf32>
    %53 = tpu.matmul %50, %52, %cst_53 {dimension_numbers = #tpu.dot_dimension_numbers<[1], [0], [0], [1], [0, 0, 1, 1], [], []>} : vector<16x128xbf16>, vector<128x48xbf16>, vector<16x48xf32> -> vector<16x48xf32>
    %54 = arith.addf %48, %53 : vector<16x48xf32>
    %c0_54 = arith.constant 0 : index
    %c0_55 = arith.constant 0 : index
    %55 = vector.load %arg3[%c0_54, %c0_55] : memref<1x48xf32, #tpu.memory_space<vmem>>, vector<1x48xf32>
    %56 = vector.broadcast %55 : vector<1x48xf32> to vector<16x48xf32>
    %57 = arith.addf %54, %56 : vector<16x48xf32>
    %58 = vector.shape_cast %57 : vector<16x48xf32> to vector<1x16x48xf32>
    %c0_56 = arith.constant 0 : index
    %c0_57 = arith.constant 0 : index
    %c0_58 = arith.constant 0 : index
    %59 = vector.load %arg4[%c0_56, %c0_57, %c0_58] : memref<1x16x48xf32, #tpu.memory_space<vmem>>, vector<1x16x48xf32>
    tpu.vector_store %arg4[%c0_56, %c0_57, %c0_58], %58 {strides = array<i32>} : memref<1x16x48xf32, #tpu.memory_space<vmem>>, vector<1x16x48xf32>,
    return
  }
  func.func @transform_0(%arg0: i32) -> (i32, i32, i32) {
    %c0_i32 = arith.constant 0 : i32
    %c0_i32_0 = arith.constant 0 : i32
    %c0_i32_1 = arith.constant 0 : i32
    return %arg0, %c0_i32, %c0_i32_0 : i32, i32, i32
  }
  func.func @transform_1(%arg0: i32) -> (i32, i32, i32) {
    %c0_i32 = arith.constant 0 : i32
    %c0_i32_0 = arith.constant 0 : i32
    %c0_i32_1 = arith.constant 0 : i32
    %c0_i32_2 = arith.constant 0 : i32
    return %c0_i32, %c0_i32_0, %c0_i32_1 : i32, i32, i32
  }
  func.func @transform_2(%arg0: i32) -> (i32, i32) {
    %c0_i32 = arith.constant 0 : i32
    %c0_i32_0 = arith.constant 0 : i32
    %c0_i32_1 = arith.constant 0 : i32
    return %c0_i32, %c0_i32_0 : i32, i32
  }
  func.func @transform_3(%arg0: i32) -> (i32, i32, i32) {
    %c0_i32 = arith.constant 0 : i32
    %c0_i32_0 = arith.constant 0 : i32
    %c0_i32_1 = arith.constant 0 : i32
    return %arg0, %c0_i32, %c0_i32_0 : i32, i32, i32
  }
}

</mosaic_0001>

<bundles_post_ra>
// kernel: generator1_forward.13
= control target key start
LH: loop header
LB: loop body
LE: loop exit
PB: predicated region body
PF: predicated region fallthrough
CT: control target
= control target key end

     0   :  { %8 = vsyncpa [#allocation3], 0  ;;  %s1123_s0 = inlined_call_operand.hbm [shape: bf16[2,10,24], index: 0, kind: input, shape index: {}]   ;;  %s1124_s1 = inlined_call_operand.hbm [shape: bf16[3,24,64], index: 1, kind: input, shape index: {}]   ;;  %s1125_s2 = inlined_call_operand.hbm [shape: f32[1,64], index: 2, kind: input, shape index: {}]   ;;  %s1126_s3 = inlined_call_operand.hbm [shape: bf16[2,8,64], index: 3, kind: output, shape index: {}]  }
   0x1   :  { %10 = vsyncpa [#allocation3 + $0x1], 0 }
   0x2   :  { %11 = vsyncpa [#allocation6], 0 }
   0x3   :  { %12 = vsyncpa [#allocation4], 0 }
   0x4   :  { %14 = vsyncpa [#allocation4 + $0x1], 0  ;;  %s869_s12 = smov 0   ;;  %s871_s13 = smov 0  }
   0x5   :  { %s873_s14 = smov 0   ;;  %s875_s15 = smov 0  }
   0x6 LB: > { %s890_s16 = sadd.s32 4294967295, %s839_s15   ;;  %s536_s17 = sadd.s32 4294967294, %s839_s15   ;;  %s839_s15 = sphi %s875_s15, %s1146_s15   ;;  %s835_s14 = sphi %s873_s14, %s1145_s14   ;;  %s831_s13 = sphi %s871_s13, %s1144_s13   ;;  %s827_s12 = sphi %s869_s12, %s1143_s12  }
   0x7   : > { %p40_p0 = scmp.ne.s32.totalorder %s831_s13, %s827_s12  ;;  %p1127_p1 = scmp.eq.s32.totalorder %s890_s16, 0 }
   0x8   : > { %p112_p3 = scmp.eq.s32.totalorder %s536_s17, 1  ;;  %p537_p5 = scmp.ge.s32.totalorder %s839_s15, 1 }
   0x9   : > { %p899_p4 = por %p1127_p1, %p40_p0  ;;  %p119_p7 = scmp.lt.s32.totalorder %s839_s15, 3 }
   0xa   : > { %p904_p6 = por %p112_p3, %p40_p0  ;;  %s841_s21 = smov [#allocation5]  }
   0xb   : > { %s1130_s18 = scalar_select %p899_p4, 1, 0 }
   0xc   : > { %s1131_s19 = scalar_select %p904_p6, 1, 0 }
   0xd   : > { %p909_p8 = pnand %p537_p5, %p119_p7  ;;  %s131_s22 = sshll.u32 %s841_s21, 4  ;;  %s913_s22 = int_to_ptr.vmem [resolvable:$true] %s131_s22 }
   0xe   : > { %s842_s24 = smov [#allocation7]   ;;  %s683_s28 = scalar_lea.hbm %s1124_s1, 576 }
   0xf   : > { %p612_p9 = pneg %p909_p8  ;;  %s145_s25 = sshll.u32 %s842_s24, 4  ;;  %s924_s25 = int_to_ptr.vmem [resolvable:$true] %s145_s25 }
  0x10   : > { %p684_p12 = scmp.ne.s32.totalorder %s1124_s1, %s683_s28  ;;  %p690_p5 = scmp.lt.u32.totalorder %s683_s28, %s1124_s1 }
  0x11   : > { %p920_p11 = pnand %p612_p9, %p1127_p1 }
  0x13   : > { %p685_p13 = pneg %p920_p11 }
  0x15   : > { %p686_p0 = pnand %p685_p13, %p684_p12 }
  0x17   : > { %p687_p3 = pneg %p686_p0 }
  0x19   : > { %p692_p7 = pnand %p690_p5, %p687_p3 }
  0x1b   : > { %695 = shalt.err (!%p692_p7)
}
  0x1c   : > { %s696_s6 = scalar_lea.vmem %s913_s22, 576  ;;  %p704_p2 = scmp.lt.s32.totalorder %s913_s22, %s913_s22 }
  0x1d   : > { %p697_p9 = scmp.ne.s32.totalorder %s913_s22, %s696_s6  ;;  %p705_p12 = scmp.lt.s32.totalorder %s696_s6, %s696_s6 }
  0x1f   : > { %p699_p10 = pnand %p697_p9, %p685_p13  ;;  %p706_p0 = por %p705_p12, %p704_p2 }
  0x21   : > { %p700_p1 = pneg %p699_p10 }
  0x23   : > { %p707_p6 = pnand %p706_p0, %p700_p1 }
  0x25   : > { %710 = shalt.err (!%p707_p6)
}
  0x26   : > { %s843_s7 = smov 64   ;;  %s844_s8 = smov 4  }
  0x27   : > { %615 = dma.hbm_to_vmem [thread:$0]  (!%p920_p11), %s1124_s1, 576, %s913_s22, [#allocation6], %s843_s7, %s843_s7, %s844_s8  }
  0x28   : > { %s711_s21 = scalar_lea.hbm %s1125_s2, 16 }
  0x29   : > { %p712_p1 = scmp.ne.s32.totalorder %s1125_s2, %s711_s21  ;;  %p718_p10 = scmp.lt.u32.totalorder %s711_s21, %s1125_s2 }
  0x2b   : > { %p714_p2 = pnand %p712_p1, %p685_p13 }
  0x2d   : > { %p715_p6 = pneg %p714_p2 }
  0x2f   : > { %p720_p3 = pnand %p718_p10, %p715_p6 }
  0x31   : > { %723 = shalt.err (!%p720_p3)
}
  0x32   : > { %s724_s22 = scalar_lea.vmem %s924_s25, 16  ;;  %s731_s29 = scalar_lea.vmem %s924_s25, 32 }
  0x33   : > { %p725_p5 = scmp.ne.s32.totalorder %s924_s25, %s724_s22  ;;  %p732_p12 = scmp.lt.s32.totalorder %s924_s25, %s924_s25 }
  0x34   : > { %p733_p0 = scmp.lt.s32.totalorder %s731_s29, %s724_s22 }
  0x35   : > { %p727_p7 = pnand %p725_p5, %p685_p13 }
  0x36   : > { %p734_p1 = por %p733_p0, %p732_p12 }
  0x37   : > { %p728_p9 = pneg %p727_p7 }
  0x39   : > { %p735_p2 = pnand %p734_p1, %p728_p9 }
  0x3b   : > { %738 = shalt.err (!%p735_p2)
}
  0x3c   : > { %618 = dma.hbm_to_vmem [thread:$0]  (!%p920_p11), %s1125_s2, 16, %s924_s25, [#allocation6]  }
  0x3d   : > { %s983_s5 = sadd.s32 1, %s839_s15   ;;  %s27_s23 = sadd.s32 1, %s835_s14 }
  0x3e   : > { %s24_s6 = ssub.s32 %s839_s15, %s983_s5  ;;  %p34_p13 = scmp.ne.s32.totalorder %s835_s14, %s831_s13 }
  0x3f   : > { %p25_p6 = scmp.eq.s32.totalorder %s24_s6, 0  ;;  %p35_p10 = scmp.eq.s32.totalorder %s839_s15, 0 }
  0x40   : > { %p1134_p3 = scmp.eq.s32.totalorder %s890_s16, 1  ;;  %p629_p7 = scmp.lt.s32.totalorder %s839_s15, 2 }
  0x41   : > { %s999_s10 = scalar_select %p25_p6, %s835_s14, %s27_s23  }
  0x42   : > { %p993_p5 = por %p1134_p3, %p34_p13  ;;  %p36_p9 = por %p35_p10, %p34_p13 }
  0x43   : > { %s156_s11 = sand.u32 1, %s835_s14   ;;  %s566_s25 = sshll.u32 %s839_s15, 7 }
  0x44   : > { %s1135_s9 = scalar_select %p993_p5, 1, 0 }
  0x45   : > { %s541_s17 = sshll.u32 %s156_s11, 3  ;;  %s1006_s26 = scalar_lea.hbm %s1123_s0, %s566_s25 }
  0x46   : > { %s160_s27 = scalar_lea.vmem [#allocation2], %s541_s17  ;;  %p1010_p11 = pnand %p629_p7, %p36_p9 }
  0x47   : > { %s167_s28 = sshll.u32 %s160_s27, 4  ;;  %s1014_s29 = scalar_lea.sflag [#allocation3], %s156_s11  ;;  %s1008_s28 = int_to_ptr.vmem [resolvable:$true] %s167_s28 }
  0x48   : > { %s739_s30 = scalar_lea.hbm %s1006_s26, 128  ;;  %p741_p0 = pneg %p1010_p11 }
  0x49   : > { %p740_p12 = scmp.ne.s32.totalorder %s1006_s26, %s739_s30  ;;  %s744_s6 = scalar_lea.hbm %s1123_s0, 256 }
  0x4a   : > { %p745_p13 = scmp.lt.u32.totalorder %s1006_s26, %s1123_s0  ;;  %p746_p6 = scmp.lt.u32.totalorder %s744_s6, %s739_s30 }
  0x4b   : > { %p742_p1 = pnand %p741_p0, %p740_p12  ;;  %p748_p3 = scmp.lt.u32.totalorder %s739_s30, %s1006_s26 }
  0x4c   : > { %p747_p10 = por %p746_p6, %p745_p13 }
  0x4d   : > { %p743_p2 = pneg %p742_p1 }
  0x4e   : > { %p749_p7 = por %p748_p3, %p747_p10 }
  0x50   : > { %p750_p9 = pnand %p749_p7, %p743_p2 }
  0x52   : > { %753 = shalt.err (!%p750_p9)
}
  0x53   : > { %s754_s11 = scalar_lea.vmem %s1008_s28, 128  ;;  %s845_s21 = smov [#allocation2]  }
  0x54   : > { %p755_p12 = scmp.ne.s32.totalorder %s1008_s28, %s754_s11  ;;  %s759_s24 = sshll.u32 %s845_s21, 4  ;;  %s760_s24 = int_to_ptr.vmem [resolvable:$false] %s759_s24 }
  0x55   : > { %s761_s27 = scalar_lea.vmem %s760_s24, 256  ;;  %p762_p4 = scmp.lt.s32.totalorder %s1008_s28, %s760_s24 }
  0x56   : > { %p757_p1 = pnand %p755_p12, %p741_p0  ;;  %p763_p13 = scmp.lt.s32.totalorder %s761_s27, %s754_s11 }
  0x58   : > { %p758_p5 = pneg %p757_p1  ;;  %p764_p6 = por %p763_p13, %p762_p4 }
  0x5a   : > { %p765_p10 = pnand %p764_p6, %p758_p5 }
  0x5c   : > { %768 = shalt.err (!%p765_p10)
}
  0x5d   : > { %622 = dma.hbm_to_vmem [thread:$0]  (!%p1010_p11), %s1006_s26, 128, %s1008_s28, %s1014_s29, %s843_s7, %s843_s7, %s844_s8  }
  0x5e   : > { %179 = sbr.rel (%p909_p8) target bundleno = 384 (0x180), region = 32  ;;  %s1048_s30 = sand.u32 (!%p909_p8), 1, %s831_s13  }
  0x5f   : > { %s545_s4 = sshll.u32 (!%p909_p8), %s1048_s30, 3  ;;  %s182_s23 = scalar_lea.sflag (!%p909_p8), [#allocation3], %s1048_s30 }
  0x60   : > { %s1052_s6 = scalar_lea.vmem (!%p909_p8), [#allocation2], %s545_s4  ;;  %p1137_p4 = scmp.ne.s32.totalorder (!%p909_p8), %s1130_s18, 0 }
  0x65   : > { %814 = dma.done.wait (%p1137_p4), %s182_s23, 128  }
  0x66   : > { %816 = vsyncadd (%p1137_p4), %s182_s23, 4294967168  ;;  %p1138_p5 = scmp.eq.s32.totalorder %s890_s16, 0 }
  0x68   : > { %818 = dma.done.wait (%p1138_p5), [#allocation6], 592   ;;  %p1139_p8 = pmov %p1138_p5 }
  0x69   : > { %v846_v0 = vmov 0.0   ;;  %vm847_vm0 = vmmov 0   ;;  %v671_v1 = vld [vmem:[#allocation5 + $0xc] sm:$0xff]   ;;  %v672_v2 = vld [vmem:[#allocation5] sm:$0xff]   ;;  %vm251_vm1 = vcmask 1043456   ;;  %vm247_vm2 = vcmask 195584  }
  0x6a   : > { %820 = vsyncadd (%p1139_p8), [#allocation6], 4294966704  ;;  %576 = vmatprep.subr.bf16.mxu0 %v846_v0  ;;  %584 = vmatprep.subr.bf16.mxu1 %v846_v0  ;;  %v673_v3 = vld [vmem:[#allocation5 + $0x14] ss:$0 sps:$4 sm:$0xff]   ;;  %v674_v4 = vld [vmem:[#allocation5 + $0x8] ss:$0 sps:$4 sm:$0xff]  }
  0x6b   : > { %580 = vmatprep.mubr.msk.bf16.mxu0 %vm847_vm0, %v846_v0  ;;  %588 = vmatprep.mubr.msk.bf16.mxu1 %vm847_vm0, %v846_v0  ;;  %v217_v5 = vld [vmem:[%s1052_s6] sm:$0xf]  ;;  %v221_v6 = vld [vmem:[%s1052_s6 + $0x4] sm:$0x1]  ;;  %v253_v7 = vsel %vm251_vm1, %v673_v3, 0  ;;  %v308_v9 = vsel %vm251_vm1, %v674_v4, 0 }
  0x6c   : > { %577 = vmatpush3.bf16.msra.mxu0 %v671_v1  ;;  %585 = vmatpush3.bf16.msra.mxu1 %v672_v2  ;;  %v549_v8 = vcombine.low %v217_v5, %v221_v6  ;;  %v676_v13 = vld [vmem:[#allocation5 + $0x18] sm:$0xff]   ;;  %v677_v16 = vld [vmem:[#allocation5 + $0x20] ss:$0 sps:$4 sm:$0xff]   ;;  %v560_v30 = vld [vmem:[#allocation7] ss:$0 sm:$0xff]  ;;  %s548_s18 = sshll.u32 %s1048_s30, 2 }
  0x6d   : > { %578 = vmatprep.subr.bf16.mxu0 %v846_v0  ;;  %586 = vmatprep.subr.bf16.mxu1 %v846_v0  ;;  %v350_v14 = vld [vmem:[%s1052_s6] sm:$0xe]  ;;  %v372_v18 = vsel %vm251_vm1, %v677_v16, 0  ;;  %s563_s20 = sshll.u32 %s890_s16, 6  ;;  %s215_s7 = scalar_lea.vmem [#allocation8], %s548_s18  ;;  %vm431_vm3 = vcmask 519168  }
  0x6e   : > { %v232_v10 = vshrl.u32 %v549_v8, 16  ;;  %v234_v11 = vshll.u32 %v549_v8, 16  ;;  %v556_v17 = vcombine.low %v350_v14, %v221_v6  ;;  %s447_s8 = sshll.u32 %s215_s7, 4  ;;  %s1079_s22 = scalar_lea.hbm %s1126_s3, %s563_s20  ;;  %s1081_s8 = int_to_ptr.vmem [resolvable:$true] %s447_s8 }
  0x6f   : > { %s434_s29 = scalar_lea.sflag [#allocation4], %s1048_s30  ;;  %s769_s17 = scalar_lea.vmem %s1081_s8, 64 }
  0x70   : > { %579 = vmatpush3.bf16.msra.mxu0 %v253_v7  ;;  %587 = vmatpush3.bf16.msra.mxu1 %v308_v9  ;;  %v236_v12 = vrot.slane %v234_v11, 1  ;;  %v358_v19 = vrot.slane %v556_v17, 1  ;;  %p770_p11 = scmp.ne.s32.totalorder %s1081_s8, %s769_s17  ;;  %p1140_p0 = scmp.ne.s32.totalorder %s1135_s9, 0 }
  0x71   : > { %592 = vmatprep.subr.bf16.mxu0 %v846_v0  ;;  %s848_s16 = smov [#allocation8]  }
  0x72   : > { %v237_v15 = vor.u32 %v236_v12, %v232_v10  ;;  %p771_p2 = pnand %p770_p11, %p1140_p0  ;;  %s773_s25 = sshll.u32 %s848_s16, 4  ;;  %s774_s25 = int_to_ptr.vmem [resolvable:$false] %s773_s25 }
  0x73   : > { %589 = vmatmul.mubr.msk.bf16.vlgmr.msra.gmra.mrb[0].mxu1 %vm247_vm2, %v217_v5  ;;  %s775_s11 = scalar_lea.vmem %s774_s25, 128  ;;  %p776_p7 = scmp.lt.s32.totalorder %s1081_s8, %s774_s25 }
  0x74   : > { %581 = vmatmul.mubr.msk.bf16.vlgmr.msra.gmra.mrb[0].mxu0 %vm247_vm2, %v237_v15  ;;  %p772_p3 = pneg %p771_p2  ;;  %p777_p9 = scmp.lt.s32.totalorder %s775_s11, %s769_s17 }
  0x75   : > { %593 = vmatpush3.bf16.msra.mxu0 %v676_v13  ;;  %596 = vmatprep.mubr.msk.bf16.mxu0 %vm847_vm0, %v846_v0 }
  0x76   : > { %594 = vmatprep.subr.bf16.mxu0 %v846_v0  ;;  %p778_p12 = por %p777_p9, %p776_p7 }
  0x78   : > { %p779_p1 = pnand %p778_p12, %p772_p3 }
  0x79   : > { %595 = vmatpush3.bf16.msra.mxu0 %v372_v18 }
  0x7c   : > { %597 = vmatmul.mubr.msk.bf16.vlgmr.msra.gmra.mrb[4].mxu0 %vm247_vm2, %v358_v19 }
 0x146   : > { %v344_v20 = vpop.f32.mrb[0].mxu1 }
 0x147   : > { %v590_v21 = vpop.f32.mrb[1].mxu1  ;;  %v289_v22 = vpop.f32.mrb[0].mxu0 }
 0x148   : > { %v347_v23 = vpop.f32.mrb[2].mxu1  ;;  %v582_v24 = vpop.f32.mrb[1].mxu0  ;;  %v345_v25 = vadd.f32 %v344_v20, %v289_v22 }
 0x149   : > { %v591_v26 = vpop.f32.mrb[3].mxu1  ;;  %v292_v27 = vpop.f32.mrb[2].mxu0 }
 0x14a   : > { %v583_v28 = vpop.f32.mrb[3].mxu0 }
 0x14f   : > { %v408_v29 = vpop.f32.mrb[4].mxu0 }
 0x150   : > { %v414_v31 = vadd.f32 %v408_v29, %v345_v25  ;;  %v598_v32 = vpop.f32.mrb[5].mxu0 }
 0x151   : > { %v411_v33 = vpop.f32.mrb[6].mxu0 }
 0x152   : > { %v422_v34 = vadd.f32 %v560_v30, %v414_v31  ;;  %v599_v35 = vpop.f32.mrb[7].mxu0 }
 0x154   : > { %v561_v36 = vmul.f32 -1.442695, %v422_v34 }
 0x156   : > { %679 = vpow2.f32 %v561_v36 }
 0x160   : > { %v680_v37 = vpop.eup %679 }
 0x161   : > { %v426_v38 = vadd.f32 1.0, %v680_v37 }
 0x163   : > { %681 = vrcp.f32 %v426_v38 }
 0x16d   : > { %v682_v39 = vpop.eup %681 }
 0x16e   : > { %v429_v40 = vmul.f32 %v682_v39, %v422_v34 }
 0x170   : > { %v430_v41 = vpack.c.bf16 %v429_v40, %v429_v40 }
 0x172   : > { %432 = vst.msk [vmem:[%s215_s7] sm:$0xf] %vm431_vm3, %v430_v41 }
 0x173   : > { %782 = shalt.err (!%p779_p1)
}
 0x174   : > { %s783_s21 = scalar_lea.hbm %s1079_s22, 64  ;;  %s787_s30 = scalar_lea.hbm %s1126_s3, 128 }
 0x175   : > { %p784_p13 = scmp.ne.s32.totalorder %s1079_s22, %s783_s21  ;;  %p788_p4 = scmp.lt.u32.totalorder %s1079_s22, %s1126_s3 }
 0x176   : > { %p789_p5 = scmp.lt.u32.totalorder %s787_s30, %s783_s21  ;;  %p791_p11 = scmp.lt.u32.totalorder %s783_s21, %s1079_s22 }
 0x177   : > { %p785_p6 = pnand %p784_p13, %p1140_p0 }
 0x178   : > { %p790_p8 = por %p789_p5, %p788_p4 }
 0x179   : > { %p786_p10 = pneg %p785_p6 }
 0x17a   : > { %p792_p2 = por %p791_p11, %p790_p8 }
 0x17c   : > { %p793_p3 = pnand %p792_p2, %p786_p10 }
 0x17e   : > { %796 = shalt.err (!%p793_p3)
}
 0x17f   : > { %610 = dma.vmem_to_hbm [thread:$0]  (%p1140_p0), %s1081_s8, 64, %s1079_s22, %s434_s29  }
 0x180 PF: > { %s459_s6 = sand.u32 1, %s827_s12   ;;  %p1141_p7 = scmp.ne.s32.totalorder %s1131_s19, 0 }
 0x181   : > { %p1142_p9 = scmp.ge.s32.totalorder %s839_s15, 2  ;;  %s460_s18 = scalar_lea.sflag [#allocation4], %s459_s6 }
 0x183   : > { %p624_p12 = pnand %p1142_p9, %p1141_p7 }
 0x185   : > { %822 = dma.done.wait (!%p624_p12), %s460_s18, 64  }
 0x186   : > { %824 = vsyncadd (!%p624_p12), %s460_s18, 4294967232  ;;  %p17_p1 = scmp.ge.s32.totalorder %s983_s5, 4   ;;  %s1143_s12 = smov %s831_s13 }
 0x187   : > { %s1144_s13 = smov %s835_s14  ;;  %s1145_s14 = smov %s999_s10 }
 0x188   : > { %s1146_s15 = smov %s983_s5  ;;  %19 = sbr.rel (!%p17_p1) target bundleno = 6 (0x6), region = 87 }
 0x18f   :  { %465 = vsyncpa [#allocation3], 1 }
 0x190   :  { %467 = vsyncpa [#allocation3 + $0x1], 1 }
 0x191   :  { %468 = vsyncpa [#allocation6], 1 }
 0x192   :  { %469 = vsyncpa [#allocation4], 1 }
 0x193   :  { %471 = vsyncpa [#allocation4 + $0x1], 1 }

// kernel: generator1_forward.14
= control target key start
LH: loop header
LB: loop body
LE: loop exit
PB: predicated region body
PF: predicated region fallthrough
CT: control target
= control target key end

     0   :  { %11 = vsyncpa [#allocation3], 0  ;;  %s1523_s0 = inlined_call_operand.hbm [shape: bf16[2,10,64], index: 0, kind: input, shape index: {}]   ;;  %s1524_s1 = inlined_call_operand.hbm [shape: bf16[3,64,64], index: 1, kind: input, shape index: {}]   ;;  %s1525_s2 = inlined_call_operand.hbm [shape: f32[1,64], index: 2, kind: input, shape index: {}]   ;;  %s1526_s3 = inlined_call_operand.hbm [shape: bf16[2,8,64], index: 3, kind: output, shape index: {0}]   ;;  %s1527_s4 = inlined_call_operand.hbm [shape: f32[2,1,64], index: 4, kind: output, shape index: {1}]   ;;  %s1528_s5 = inlined_call_operand.hbm [shape: f32[2,1,64], index: 5, kind: output, shape index: {2}]  }
   0x1   :  { %13 = vsyncpa [#allocation3 + $0x1], 0 }
   0x2   :  { %14 = vsyncpa [#allocation6], 0 }
   0x3   :  { %15 = vsyncpa [#allocation4], 0 }
   0x4   :  { %17 = vsyncpa [#allocation4 + $0x1], 0 }
   0x5   :  { %18 = vsyncpa [#allocation10], 0 }
   0x6   :  { %20 = vsyncpa [#allocation10 + $0x1], 0  ;;  %s1196_s18 = smov 0   ;;  %s1198_s19 = smov 0  }
   0x7   :  { %s1200_s20 = smov 0   ;;  %s1202_s21 = smov 0  }
   0x8 LB: > { %s1217_s22 = sadd.s32 4294967295, %s1154_s21   ;;  %s754_s23 = sadd.s32 4294967294, %s1154_s21   ;;  %s1154_s21 = sphi %s1202_s21, %s1548_s21   ;;  %s1150_s20 = sphi %s1200_s20, %s1547_s20   ;;  %s1146_s19 = sphi %s1198_s19, %s1546_s19   ;;  %s1142_s18 = sphi %s1196_s18, %s1545_s18  }
   0x9   : > { %p46_p0 = scmp.ne.s32.totalorder %s1146_s19, %s1142_s18  ;;  %p1529_p1 = scmp.eq.s32.totalorder %s1217_s22, 0 }
   0xa   : > { %p118_p3 = scmp.eq.s32.totalorder %s754_s23, 1  ;;  %p755_p5 = scmp.ge.s32.totalorder %s1154_s21, 1 }
   0xb   : > { %p1228_p4 = por %p1529_p1, %p46_p0  ;;  %p177_p7 = scmp.lt.s32.totalorder %s1154_s21, 3 }
   0xc   : > { %p1233_p6 = por %p118_p3, %p46_p0  ;;  %s1156_s27 = smov [#allocation5]  }
   0xd   : > { %s1532_s24 = scalar_select %p1228_p4, 1, 0 }
   0xe   : > { %s1533_s25 = scalar_select %p1233_p6, 1, 0 }
   0xf   : > { %p1238_p8 = pnand %p755_p5, %p177_p7  ;;  %s189_s28 = sshll.u32 %s1156_s27, 4  ;;  %s1242_s28 = int_to_ptr.vmem [resolvable:$true] %s189_s28 }
  0x10   : > { %s1157_s30 = smov [#allocation7]   ;;  %s938_s9 = scalar_lea.hbm %s1524_s1, 1536 }
  0x11   : > { %p859_p9 = pneg %p1238_p8  ;;  %s203_s6 = sshll.u32 %s1157_s30, 4  ;;  %s1253_s6 = int_to_ptr.vmem [resolvable:$true] %s203_s6 }
  0x12   : > { %p939_p12 = scmp.ne.s32.totalorder %s1524_s1, %s938_s9  ;;  %p945_p5 = scmp.lt.u32.totalorder %s938_s9, %s1524_s1 }
  0x13   : > { %p1249_p11 = pnand %p859_p9, %p1529_p1 }
  0x15   : > { %p940_p13 = pneg %p1249_p11 }
  0x17   : > { %p941_p0 = pnand %p940_p13, %p939_p12 }
  0x19   : > { %p942_p3 = pneg %p941_p0 }
  0x1b   : > { %p947_p7 = pnand %p945_p5, %p942_p3 }
  0x1d   : > { %950 = shalt.err (!%p947_p7)
}
  0x1e   : > { %s951_s14 = scalar_lea.vmem %s1242_s28, 1536  ;;  %p959_p2 = scmp.lt.s32.totalorder %s1242_s28, %s1242_s28 }
  0x1f   : > { %p952_p9 = scmp.ne.s32.totalorder %s1242_s28, %s951_s14  ;;  %p960_p12 = scmp.lt.s32.totalorder %s951_s14, %s951_s14 }
  0x21   : > { %p954_p10 = pnand %p952_p9, %p940_p13  ;;  %p961_p0 = por %p960_p12, %p959_p2 }
  0x23   : > { %p955_p1 = pneg %p954_p10 }
  0x25   : > { %p962_p6 = pnand %p961_p0, %p955_p1 }
  0x27   : > { %965 = shalt.err (!%p962_p6)
}
  0x28   : > { %s1158_s15 = smov 64   ;;  %s1159_s16 = smov 4  }
  0x29   : > { %862 = dma.hbm_to_vmem [thread:$0]  (!%p1249_p11), %s1524_s1, 1536, %s1242_s28, [#allocation6], %s1158_s15, %s1158_s15, %s1159_s16  }
  0x2a   : > { %s966_s8 = scalar_lea.hbm %s1525_s2, 16 }
  0x2b   : > { %p967_p1 = scmp.ne.s32.totalorder %s1525_s2, %s966_s8  ;;  %p973_p10 = scmp.lt.u32.totalorder %s966_s8, %s1525_s2 }
  0x2d   : > { %p969_p2 = pnand %p967_p1, %p940_p13 }
  0x2f   : > { %p970_p6 = pneg %p969_p2 }
  0x31   : > { %p975_p3 = pnand %p973_p10, %p970_p6 }
  0x33   : > { %978 = shalt.err (!%p975_p3)
}
  0x34   : > { %s979_s28 = scalar_lea.vmem %s1253_s6, 16  ;;  %s986_s13 = scalar_lea.vmem %s1253_s6, 32 }
  0x35   : > { %p980_p5 = scmp.ne.s32.totalorder %s1253_s6, %s979_s28  ;;  %p987_p12 = scmp.lt.s32.totalorder %s1253_s6, %s1253_s6 }
  0x36   : > { %p988_p0 = scmp.lt.s32.totalorder %s986_s13, %s979_s28 }
  0x37   : > { %p982_p7 = pnand %p980_p5, %p940_p13 }
  0x38   : > { %p989_p1 = por %p988_p0, %p987_p12 }
  0x39   : > { %p983_p9 = pneg %p982_p7 }
  0x3b   : > { %p990_p2 = pnand %p989_p1, %p983_p9 }
  0x3d   : > { %993 = shalt.err (!%p990_p2)
}
  0x3e   : > { %865 = dma.hbm_to_vmem [thread:$0]  (!%p1249_p11), %s1525_s2, 16, %s1253_s6, [#allocation6]  }
  0x3f   : > { %s1312_s27 = sadd.s32 1, %s1154_s21   ;;  %s33_s29 = sadd.s32 1, %s1150_s20 }
  0x40   : > { %s30_s30 = ssub.s32 %s1154_s21, %s1312_s27  ;;  %p40_p13 = scmp.ne.s32.totalorder %s1150_s20, %s1146_s19 }
  0x41   : > { %p31_p6 = scmp.eq.s32.totalorder %s30_s30, 0  ;;  %p41_p10 = scmp.eq.s32.totalorder %s1154_s21, 0 }
  0x42   : > { %p1536_p3 = scmp.eq.s32.totalorder %s1217_s22, 1  ;;  %p882_p7 = scmp.lt.s32.totalorder %s1154_s21, 2 }
  0x43   : > { %s1328_s8 = scalar_select %p31_p6, %s1150_s20, %s33_s29  }
  0x44   : > { %p1322_p5 = por %p1536_p3, %p40_p13  ;;  %p42_p9 = por %p41_p10, %p40_p13 }
  0x45   : > { %s214_s9 = sand.u32 1, %s1150_s20   ;;  %s791_s6 = sshll.u32 %s1154_s21, 7 }
  0x46   : > { %s1537_s7 = scalar_select %p1322_p5, 1, 0 }
  0x47   : > { %s759_s10 = sshll.u32 %s214_s9, 3  ;;  %s1335_s28 = scalar_lea.hbm %s1523_s0, %s791_s6 }
  0x48   : > { %s218_s13 = scalar_lea.vmem [#allocation2], %s759_s10  ;;  %p1339_p11 = pnand %p882_p7, %p42_p9 }
  0x49   : > { %s225_s14 = sshll.u32 %s218_s13, 4  ;;  %s1343_s29 = scalar_lea.sflag [#allocation3], %s214_s9  ;;  %s1337_s14 = int_to_ptr.vmem [resolvable:$true] %s225_s14 }
  0x4a   : > { %s994_s30 = scalar_lea.hbm %s1335_s28, 128  ;;  %p996_p0 = pneg %p1339_p11 }
  0x4b   : > { %p995_p12 = scmp.ne.s32.totalorder %s1335_s28, %s994_s30  ;;  %s999_s11 = scalar_lea.hbm %s1523_s0, 256 }
  0x4c   : > { %p1000_p13 = scmp.lt.u32.totalorder %s1335_s28, %s1523_s0  ;;  %p1001_p6 = scmp.lt.u32.totalorder %s999_s11, %s994_s30 }
  0x4d   : > { %p997_p1 = pnand %p996_p0, %p995_p12  ;;  %p1003_p3 = scmp.lt.u32.totalorder %s994_s30, %s1335_s28 }
  0x4e   : > { %p1002_p10 = por %p1001_p6, %p1000_p13 }
  0x4f   : > { %p998_p2 = pneg %p997_p1 }
  0x50   : > { %p1004_p7 = por %p1003_p3, %p1002_p10 }
  0x52   : > { %p1005_p9 = pnand %p1004_p7, %p998_p2 }
  0x54   : > { %1008 = shalt.err (!%p1005_p9)
}
  0x55   : > { %s1009_s9 = scalar_lea.vmem %s1337_s14, 128  ;;  %s1160_s10 = smov [#allocation2]  }
  0x56   : > { %p1010_p12 = scmp.ne.s32.totalorder %s1337_s14, %s1009_s9  ;;  %s1014_s6 = sshll.u32 %s1160_s10, 4  ;;  %s1015_s6 = int_to_ptr.vmem [resolvable:$false] %s1014_s6 }
  0x57   : > { %s1016_s12 = scalar_lea.vmem %s1015_s6, 256  ;;  %p1017_p4 = scmp.lt.s32.totalorder %s1337_s14, %s1015_s6 }
  0x58   : > { %p1012_p1 = pnand %p1010_p12, %p996_p0  ;;  %p1018_p13 = scmp.lt.s32.totalorder %s1016_s12, %s1009_s9 }
  0x5a   : > { %p1013_p5 = pneg %p1012_p1  ;;  %p1019_p6 = por %p1018_p13, %p1017_p4 }
  0x5c   : > { %p1020_p10 = pnand %p1019_p6, %p1013_p5 }
  0x5e   : > { %1023 = shalt.err (!%p1020_p10)
}
  0x5f   : > { %869 = dma.hbm_to_vmem [thread:$0]  (!%p1339_p11), %s1335_s28, 128, %s1337_s14, %s1343_s29, %s1158_s15, %s1158_s15, %s1159_s16  }
  0x60   : > { %237 = sbr.rel (%p1238_p8) target bundleno = 423 (0x1a7), region = 32  ;;  %s1377_s30 = sand.u32 (!%p1238_p8), 1, %s1146_s19  }
  0x61   : > { %s763_s11 = sshll.u32 (!%p1238_p8), %s1377_s30, 3  ;;  %s240_s13 = scalar_lea.sflag (!%p1238_p8), [#allocation3], %s1377_s30 }
  0x62   : > { %s1381_s9 = scalar_lea.vmem (!%p1238_p8), [#allocation2], %s763_s11  ;;  %p1539_p4 = scmp.ne.s32.totalorder (!%p1238_p8), %s1532_s24, 0 }
  0x67   : > { %1125 = dma.done.wait (%p1539_p4), %s240_s13, 128  }
  0x68   : > { %1127 = vsyncadd (%p1539_p4), %s240_s13, 4294967168  ;;  %p1540_p5 = scmp.eq.s32.totalorder %s1217_s22, 0 }
  0x6a   : > { %1129 = dma.done.wait (%p1540_p5), [#allocation6], 1552   ;;  %p1541_p8 = pmov %p1540_p5 }
  0x6b   : > { %v1161_v0 = vmov 0.0   ;;  %vm1162_vm0 = vmmov 0   ;;  %v924_v1 = vld [vmem:[#allocation5 + $0x20] sm:$0xff]   ;;  %v926_v3 = vld [vmem:[#allocation5 + $0x28] sm:$0xff]   ;;  %v928_v5 = vld [vmem:[#allocation5 + $0x30] sm:$0xff]   ;;  %vm342_vm1 = vcmask 523264  }
  0x6c   : > { %1131 = vsyncadd (%p1541_p8), [#allocation6], 4294965744  ;;  %807 = vmatprep.subr.bf16.mxu0 %v1161_v0  ;;  %819 = vmatprep.subr.bf16.mxu1 %v1161_v0  ;;  %v925_v2 = vld [vmem:[#allocation5] sm:$0xff]   ;;  %v927_v4 = vld [vmem:[#allocation5 + $0x8] sm:$0xff]   ;;  %s766_s24 = sshll.u32 %s1377_s30, 2  ;;  %s786_s26 = sshll.u32 %s1217_s22, 6 }
  0x6d   : > { %815 = vmatprep.mubr.msk.bf16.mxu0 %vm1162_vm0, %v1161_v0  ;;  %827 = vmatprep.mubr.msk.bf16.mxu1 %vm1162_vm0, %v1161_v0  ;;  %v929_v6 = vld [vmem:[#allocation5 + $0x10] sm:$0xff]   ;;  %v930_v10 = vld [vmem:[#allocation5 + $0x38] sm:$0xff]   ;;  %v933_v15 = vld [vmem:[#allocation5 + $0x40] sm:$0xff]   ;;  %s273_s15 = scalar_lea.vmem [#allocation8], %s766_s24  ;;  %vm562_vm2 = vcmask 519168   ;;  %s1406_s17 = scalar_lea.hbm %s1526_s3, %s786_s26 }
  0x6e   : > { %808 = vmatpush3.bf16.msra.mxu0 %v924_v1  ;;  %820 = vmatpush3.bf16.msra.mxu1 %v925_v2  ;;  %v287_v7 = vld [vmem:[%s1381_s9] sm:$0xf]  ;;  %v296_v8 = vld [vmem:[%s1381_s9 + $0x4] sm:$0x1]  ;;  %v934_v17 = vld [vmem:[#allocation5 + $0x48] sm:$0xff]   ;;  %s586_s16 = sshll.u32 %s273_s15, 4  ;;  %s1408_s16 = int_to_ptr.vmem [resolvable:$true] %s586_s16 }
  0x6f   : > { %809 = vmatprep.subr.bf16.mxu0 %v1161_v0  ;;  %821 = vmatprep.subr.bf16.mxu1 %v1161_v0  ;;  %v767_v9 = vcombine.low %v287_v7, %v296_v8  ;;  %v931_v11 = vld [vmem:[#allocation5 + $0x18] sm:$0xff]   ;;  %v935_v18 = vld [vmem:[#allocation5 + $0x50] sm:$0xff]   ;;  %v784_v33 = vld [vmem:[#allocation7] ss:$0 sm:$0xff]  ;;  %s565_s29 = scalar_lea.sflag [#allocation4], %s1377_s30  ;;  %s1024_s10 = scalar_lea.vmem %s1408_s16, 64 }
  0x70   : > { %v453_v19 = vld [vmem:[%s1381_s9] sm:$0xe]  ;;  %p1025_p11 = scmp.ne.s32.totalorder %s1408_s16, %s1024_s10  ;;  %p1542_p0 = scmp.ne.s32.totalorder %s1537_s7, 0 }
  0x71   : > { %v312_v12 = vshrl.u32 %v767_v9, 16  ;;  %v314_v13 = vshll.u32 %v767_v9, 16  ;;  %v778_v20 = vcombine.low %v453_v19, %v296_v8  ;;  %v936_v21 = vld [vmem:[#allocation5 + $0x58] sm:$0xff]   ;;  %s1163_s6 = smov [#allocation8]  }
  0x72   : > { %810 = vmatpush3.bf16.msra.mxu0 %v926_v3  ;;  %822 = vmatpush3.bf16.msra.mxu1 %v927_v4  ;;  %p1026_p2 = pnand %p1025_p11, %p1542_p0  ;;  %s1028_s12 = sshll.u32 %s1163_s6, 4  ;;  %s1029_s12 = int_to_ptr.vmem [resolvable:$false] %s1028_s12 }
  0x73   : > { %811 = vmatprep.subr.bf16.mxu0 %v1161_v0  ;;  %823 = vmatprep.subr.bf16.mxu1 %v1161_v0  ;;  %v316_v14 = vrot.slane %v314_v13, 1  ;;  %v466_v22 = vrot.slane %v778_v20, 1  ;;  %s1030_s11 = scalar_lea.vmem %s1029_s12, 128  ;;  %p1031_p7 = scmp.lt.s32.totalorder %s1408_s16, %s1029_s12 }
  0x74   : > { %p1027_p3 = pneg %p1026_p2  ;;  %p1032_p9 = scmp.lt.s32.totalorder %s1030_s11, %s1024_s10 }
  0x75   : > { %v317_v16 = vor.u32 %v316_v14, %v312_v12 }
  0x76   : > { %812 = vmatpush3.bf16.msra.mxu0 %v928_v5  ;;  %824 = vmatpush3.bf16.msra.mxu1 %v929_v6  ;;  %p1033_p12 = por %p1032_p9, %p1031_p7 }
  0x77   : > { %813 = vmatprep.subr.bf16.mxu0 %v1161_v0  ;;  %825 = vmatprep.subr.bf16.mxu1 %v1161_v0 }
  0x78   : > { %p1034_p1 = pnand %p1033_p12, %p1027_p3 }
  0x7a   : > { %814 = vmatpush3.bf16.msra.mxu0 %v930_v10  ;;  %826 = vmatpush3.bf16.msra.mxu1 %v931_v11 }
  0x7b   : > { %831 = vmatprep.subr.bf16.mxu0 %v1161_v0 }
  0x7d   : > { %816 = vmatmul.mubr.msk.bf16.vlgmr.msra.gmra.mrb[0].mxu0 %vm342_vm1, %v317_v16  ;;  %828 = vmatmul.mubr.msk.bf16.vlgmr.msra.gmra.mrb[0].mxu1 %vm342_vm1, %v287_v7 }
  0x7e   : > { %832 = vmatpush3.bf16.msra.mxu0 %v933_v15  ;;  %839 = vmatprep.mubr.msk.bf16.mxu0 %vm1162_vm0, %v1161_v0 }
  0x7f   : > { %833 = vmatprep.subr.bf16.mxu0 %v1161_v0 }
  0x82   : > { %834 = vmatpush3.bf16.msra.mxu0 %v934_v17 }
  0x83   : > { %835 = vmatprep.subr.bf16.mxu0 %v1161_v0 }
  0x86   : > { %836 = vmatpush3.bf16.msra.mxu0 %v935_v18 }
  0x87   : > { %837 = vmatprep.subr.bf16.mxu0 %v1161_v0 }
  0x8a   : > { %838 = vmatpush3.bf16.msra.mxu0 %v936_v21 }
  0x8d   : > { %840 = vmatmul.mubr.msk.bf16.vlgmr.msra.gmra.mrb[4].mxu0 %vm342_vm1, %v466_v22 }
 0x150   : > { %v380_v23 = vpop.f32.mrb[0].mxu0  ;;  %v447_v25 = vpop.f32.mrb[0].mxu1 }
 0x151   : > { %v817_v24 = vpop.f32.mrb[1].mxu0  ;;  %v448_v26 = vadd.f32 %v447_v25, %v380_v23  ;;  %v829_v28 = vpop.f32.mrb[1].mxu1 }
 0x152   : > { %v383_v27 = vpop.f32.mrb[2].mxu0  ;;  %v450_v30 = vpop.f32.mrb[2].mxu1 }
 0x153   : > { %v818_v29 = vpop.f32.mrb[3].mxu0  ;;  %v830_v31 = vpop.f32.mrb[3].mxu1 }
 0x160   : > { %v528_v32 = vpop.f32.mrb[4].mxu0 }
 0x161   : > { %v534_v34 = vadd.f32 %v528_v32, %v448_v26  ;;  %v841_v35 = vpop.f32.mrb[5].mxu0 }
 0x162   : > { %v531_v36 = vpop.f32.mrb[6].mxu0 }
 0x163   : > { %v542_v37 = vadd.f32 %v784_v33, %v534_v34  ;;  %v842_v38 = vpop.f32.mrb[7].mxu0 }
 0x165   : > { %v543_v39 = vsel %vm342_vm1, %v542_v37, 0.0  ;;  %v552_v40 = vmul.f32 %v542_v37, %v542_v37  ;;  %v561_v41 = vpack.c.bf16 %v542_v37, %v542_v37 }
 0x166   : > { %v544_v42 = vrot.slane %v543_v39, 4 }
 0x167   : > { %v553_v43 = vsel %vm342_vm1, %v552_v40, 0.0  ;;  %563 = vst.msk [vmem:[%s273_s15] sm:$0xf] %vm562_vm2, %v561_v41 }
 0x168   : > { %v545_v44 = vadd.f32 %v544_v42, %v543_v39  ;;  %v554_v45 = vrot.slane %v553_v43, 4 }
 0x169   : > { %1037 = shalt.err (!%p1034_p1)
}
 0x16a   : > { %s1038_s13 = scalar_lea.hbm %s1406_s17, 64  ;;  %s1042_s26 = scalar_lea.hbm %s1526_s3, 128 }
 0x16b   : > { %p1039_p13 = scmp.ne.s32.totalorder %s1406_s17, %s1038_s13  ;;  %p1043_p4 = scmp.lt.u32.totalorder %s1406_s17, %s1526_s3 }
 0x16c   : > { %p1044_p5 = scmp.lt.u32.totalorder %s1042_s26, %s1038_s13  ;;  %p1046_p11 = scmp.lt.u32.totalorder %s1038_s13, %s1406_s17 }
 0x16d   : > { %p1040_p6 = pnand %p1039_p13, %p1542_p0 }
 0x16e   : > { %p1045_p8 = por %p1044_p5, %p1043_p4 }
 0x16f   : > { %p1041_p10 = pneg %p1040_p6 }
 0x170   : > { %p1047_p2 = por %p1046_p11, %p1045_p8 }
 0x172   : > { %p1048_p3 = pnand %p1047_p2, %p1041_p10 }
 0x174   : > { %1051 = shalt.err (!%p1048_p3)
}
 0x175   : > { %853 = dma.vmem_to_hbm [thread:$0]  (%p1542_p0), %s1408_s16, 64, %s1406_s17, %s565_s29   ;;  %v546_v46 = vrot.slane %v545_v44, 2  ;;  %v555_v47 = vadd.f32 %v554_v45, %v553_v43  ;;  %vm550_vm3 = vcmask 516096  }
 0x176   : > { %s569_s14 = sand.u32 1, %s1217_s22   ;;  %s787_s10 = sshll.u32 %s1217_s22, 4 }
 0x177   : > { %v547_v48 = vadd.f32 %v546_v46, %v545_v44  ;;  %v556_v49 = vrot.slane %v555_v47, 2  ;;  %s279_s6 = scalar_lea.vmem [#allocation9], %s1377_s30  ;;  %s285_s11 = scalar_lea.vmem [#allocation11], %s1377_s30 }
 0x178   : > { %s599_s12 = sshll.u32 %s279_s6, 4  ;;  %s612_s13 = sshll.u32 %s285_s11, 4  ;;  %s1444_s12 = int_to_ptr.vmem [resolvable:$true] %s599_s12  ;;  %s1452_s13 = int_to_ptr.vmem [resolvable:$true] %s612_s13 }
 0x179   : > { %v548_v50 = vrot.slane %v547_v48, 1  ;;  %v557_v51 = vadd.f32 %v556_v49, %v555_v47  ;;  %s1442_s16 = scalar_lea.hbm %s1527_s4, %s787_s10  ;;  %s1450_s29 = scalar_lea.hbm %s1528_s5, %s787_s10 }
 0x17a   : > { %s1454_s26 = scalar_lea.sflag [#allocation10], %s569_s14  ;;  %s1052_s15 = scalar_lea.vmem %s1444_s12, 16 }
 0x17b   : > { %v549_v52 = vadd.f32 %v548_v50, %v547_v48  ;;  %v558_v53 = vrot.slane %v557_v51, 1  ;;  %p1053_p7 = scmp.ne.s32.totalorder %s1444_s12, %s1052_s15  ;;  %s1164_s28 = smov [#allocation9]  }
 0x17c   : > { %s1056_s9 = sshll.u32 %s1164_s28, 4  ;;  %s1057_s9 = int_to_ptr.vmem [resolvable:$false] %s1056_s9 }
 0x17d   : > { %v559_v54 = vadd.f32 %v558_v53, %v557_v51  ;;  %551 = vst.msk [vmem:[%s279_s6] sm:$0x1] %vm550_vm3, %v549_v52  ;;  %p1054_p9 = pnand %p1053_p7, %p1542_p0  ;;  %s1058_s24 = scalar_lea.vmem %s1057_s9, 32 }
 0x17e   : > { %p1059_p1 = scmp.lt.s32.totalorder %s1444_s12, %s1057_s9  ;;  %p1060_p13 = scmp.lt.s32.totalorder %s1058_s24, %s1052_s15 }
 0x17f   : > { %p1055_p12 = pneg %p1054_p9 }
 0x180   : > { %p1061_p6 = por %p1060_p13, %p1059_p1 }
 0x182   : > { %p1062_p10 = pnand %p1061_p6, %p1055_p12 }
 0x184   : > { %1065 = shalt.err (!%p1062_p10)
}
 0x185   : > { %s1066_s14 = scalar_lea.hbm %s1442_s16, 16  ;;  %s1070_s22 = scalar_lea.hbm %s1527_s4, 32 }
 0x186   : > { %p1067_p4 = scmp.ne.s32.totalorder %s1442_s16, %s1066_s14  ;;  %p1071_p11 = scmp.lt.u32.totalorder %s1442_s16, %s1527_s4 }
 0x187   : > { %p1072_p2 = scmp.lt.u32.totalorder %s1070_s22, %s1066_s14  ;;  %p1074_p7 = scmp.lt.u32.totalorder %s1066_s14, %s1442_s16 }
 0x188   : > { %p1068_p5 = pnand %p1067_p4, %p1542_p0 }
 0x189   : > { %p1073_p3 = por %p1072_p2, %p1071_p11 }
 0x18a   : > { %p1069_p8 = pneg %p1068_p5 }
 0x18b   : > { %p1075_p9 = por %p1074_p7, %p1073_p3 }
 0x18d   : > { %p1076_p12 = pnand %p1075_p9, %p1069_p8 }
 0x18f   : > { %1079 = shalt.err (!%p1076_p12)
}
 0x190   : > { %854 = dma.vmem_to_hbm [thread:$0]  (%p1542_p0), %s1444_s12, 16, %s1442_s16, %s1454_s26   ;;  %560 = vst.msk [vmem:[%s285_s11] sm:$0x1] %vm550_vm3, %v559_v54 }
 0x191   : > { %s1080_s15 = scalar_lea.vmem %s1452_s13, 16  ;;  %s1165_s9 = smov [#allocation11]  }
 0x192   : > { %p1081_p1 = scmp.ne.s32.totalorder %s1452_s13, %s1080_s15  ;;  %s1084_s24 = sshll.u32 %s1165_s9, 4  ;;  %s1085_s24 = int_to_ptr.vmem [resolvable:$false] %s1084_s24 }
 0x193   : > { %s1086_s14 = scalar_lea.vmem %s1085_s24, 32  ;;  %p1087_p10 = scmp.lt.s32.totalorder %s1452_s13, %s1085_s24 }
 0x194   : > { %p1082_p13 = pnand %p1081_p1, %p1542_p0  ;;  %p1088_p4 = scmp.lt.s32.totalorder %s1086_s14, %s1080_s15 }
 0x196   : > { %p1083_p6 = pneg %p1082_p13  ;;  %p1089_p5 = por %p1088_p4, %p1087_p10 }
 0x198   : > { %p1090_p8 = pnand %p1089_p5, %p1083_p6 }
 0x19a   : > { %1093 = shalt.err (!%p1090_p8)
}
 0x19b   : > { %s1094_s30 = scalar_lea.hbm %s1450_s29, 16  ;;  %s1098_s16 = scalar_lea.hbm %s1528_s5, 32 }
 0x19c   : > { %p1095_p11 = scmp.ne.s32.totalorder %s1450_s29, %s1094_s30  ;;  %p1099_p7 = scmp.lt.u32.totalorder %s1450_s29, %s1528_s5 }
 0x19d   : > { %p1100_p9 = scmp.lt.u32.totalorder %s1098_s16, %s1094_s30  ;;  %p1102_p1 = scmp.lt.u32.totalorder %s1094_s30, %s1450_s29 }
 0x19e   : > { %p1096_p2 = pnand %p1095_p11, %p1542_p0 }
 0x19f   : > { %p1101_p12 = por %p1100_p9, %p1099_p7 }
 0x1a0   : > { %p1097_p3 = pneg %p1096_p2 }
 0x1a1   : > { %p1103_p13 = por %p1102_p1, %p1101_p12 }
 0x1a3   : > { %p1104_p6 = pnand %p1103_p13, %p1097_p3 }
 0x1a5   : > { %1107 = shalt.err (!%p1104_p6)
}
 0x1a6   : > { %855 = dma.vmem_to_hbm [thread:$0]  (%p1542_p0), %s1452_s13, 16, %s1450_s29, %s1454_s26  }
 0x1a7 PF: > { %s624_s22 = sand.u32 1, %s1142_s18   ;;  %p1543_p10 = scmp.ne.s32.totalorder %s1533_s25, 0 }
 0x1a8   : > { %p1544_p4 = scmp.ge.s32.totalorder %s1154_s21, 2  ;;  %s625_s17 = scalar_lea.sflag [#allocation4], %s624_s22 }
 0x1aa   : > { %p871_p5 = pnand %p1544_p4, %p1543_p10 }
 0x1ac   : > { %1133 = dma.done.wait (!%p871_p5), %s625_s17, 64  }
 0x1ad   : > { %1135 = vsyncadd (!%p871_p5), %s625_s17, 4294967232  ;;  %s633_s28 = sand.u32 1, %s754_s23  }
 0x1ae   : > { %s634_s15 = scalar_lea.sflag [#allocation10], %s633_s28 }
 0x1af   : > { %1137 = dma.done.wait (!%p871_p5), %s634_s15, 32  }
 0x1b0   : > { %1139 = vsyncadd (!%p871_p5), %s634_s15, 4294967264  ;;  %p23_p0 = scmp.ge.s32.totalorder %s1312_s27, 4   ;;  %s1545_s18 = smov %s1146_s19 }
 0x1b1   : > { %s1546_s19 = smov %s1150_s20  ;;  %s1547_s20 = smov %s1328_s8 }
 0x1b2   : > { %s1548_s21 = smov %s1312_s27  ;;  %25 = sbr.rel (!%p23_p0) target bundleno = 8 (0x8), region = 119 }
 0x1b9   :  { %646 = vsyncpa [#allocation3], 1 }
 0x1ba   :  { %648 = vsyncpa [#allocation3 + $0x1], 1 }
 0x1bb   :  { %649 = vsyncpa [#allocation6], 1 }
 0x1bc   :  { %650 = vsyncpa [#allocation4], 1 }
 0x1bd   :  { %652 = vsyncpa [#allocation4 + $0x1], 1 }
 0x1be   :  { %653 = vsyncpa [#allocation10], 1 }
 0x1bf   :  { %655 = vsyncpa [#allocation10 + $0x1], 1 }

// kernel: generator1_forward.15
= control target key start
LH: loop header
LB: loop body
LE: loop exit
PB: predicated region body
PF: predicated region fallthrough
CT: control target
= control target key end

     0   :  { %8 = vsyncpa [#allocation3], 0  ;;  %s840_s0 = inlined_call_operand.hbm [shape: bf16[2,8,64], index: 0, kind: input, shape index: {}]   ;;  %s841_s1 = inlined_call_operand.hbm [shape: f32[1,1,64], index: 1, kind: input, shape index: {}]   ;;  %s842_s2 = inlined_call_operand.hbm [shape: f32[1,1,64], index: 2, kind: input, shape index: {}]   ;;  %s843_s3 = inlined_call_operand.hbm [shape: bf16[2,8,64], index: 3, kind: output, shape index: {}]  }
   0x1   :  { %10 = vsyncpa [#allocation3 + $0x1], 0 }
   0x2   :  { %11 = vsyncpa [#allocation6], 0 }
   0x3   :  { %12 = vsyncpa [#allocation4], 0 }
   0x4   :  { %14 = vsyncpa [#allocation4 + $0x1], 0  ;;  %s614_s12 = smov 0   ;;  %s616_s13 = smov 0  }
   0x5   :  { %s618_s14 = smov 0   ;;  %s620_s15 = smov 0  }
   0x6 LB: > { %s635_s16 = sadd.s32 4294967295, %s588_s15   ;;  %s342_s17 = sadd.s32 4294967294, %s588_s15   ;;  %s588_s15 = sphi %s620_s15, %s863_s15   ;;  %s584_s14 = sphi %s618_s14, %s862_s14   ;;  %s580_s13 = sphi %s616_s13, %s861_s13   ;;  %s576_s12 = sphi %s614_s12, %s860_s12  }
   0x7   : > { %p40_p0 = scmp.ne.s32.totalorder %s580_s13, %s576_s12  ;;  %p844_p1 = scmp.eq.s32.totalorder %s635_s16, 0 }
   0x8   : > { %p112_p3 = scmp.eq.s32.totalorder %s342_s17, 1  ;;  %p343_p5 = scmp.ge.s32.totalorder %s588_s15, 1 }
   0x9   : > { %p644_p4 = por %p844_p1, %p40_p0  ;;  %p119_p7 = scmp.lt.s32.totalorder %s588_s15, 3 }
   0xa   : > { %p649_p6 = por %p112_p3, %p40_p0  ;;  %s590_s21 = smov [#allocation5]  }
   0xb   : > { %s847_s18 = scalar_select %p644_p4, 1, 0 }
   0xc   : > { %s848_s19 = scalar_select %p649_p6, 1, 0 }
   0xd   : > { %p654_p8 = pnand %p343_p5, %p119_p7  ;;  %s132_s22 = sshll.u32 %s590_s21, 4  ;;  %s133_s22 = int_to_ptr.vmem [resolvable:$true] %s132_s22 }
   0xe   : > { %s591_s23 = smov [#allocation7]   ;;  %s670_s26 = sadd.s32 1, %s588_s15  }
   0xf   : > { %s849_s20 = scalar_select %p654_p8, 1, 0 }
  0x10   : > { %p373_p10 = pneg %p654_p8  ;;  %s143_s24 = sshll.u32 %s591_s23, 4  ;;  %s667_s24 = int_to_ptr.vmem [resolvable:$true] %s143_s24 }
  0x11   : > { %s24_s27 = ssub.s32 %s588_s15, %s670_s26  ;;  %s432_s30 = scalar_lea.hbm %s841_s1, 16 }
  0x12   : > { %p663_p11 = pnand %p373_p10, %p844_p1  ;;  %p433_p12 = scmp.ne.s32.totalorder %s841_s1, %s432_s30 }
  0x13   : > { %p439_p5 = scmp.lt.u32.totalorder %s432_s30, %s841_s1 }
  0x14   : > { %p434_p13 = pneg %p663_p11 }
  0x16   : > { %p435_p0 = pnand %p434_p13, %p433_p12 }
  0x18   : > { %p436_p3 = pneg %p435_p0 }
  0x1a   : > { %p441_p7 = pnand %p439_p5, %p436_p3 }
  0x1c   : > { %444 = shalt.err (!%p441_p7)
}
  0x1d   : > { %s445_s8 = scalar_lea.vmem %s133_s22, 16  ;;  %s452_s9 = scalar_lea.vmem %s133_s22, 32 }
  0x1e   : > { %p446_p10 = scmp.ne.s32.totalorder %s133_s22, %s445_s8  ;;  %p453_p2 = scmp.lt.s32.totalorder %s133_s22, %s133_s22 }
  0x1f   : > { %p454_p6 = scmp.lt.s32.totalorder %s452_s9, %s445_s8 }
  0x20   : > { %p448_p9 = pnand %p446_p10, %p434_p13 }
  0x21   : > { %p455_p4 = por %p454_p6, %p453_p2 }
  0x22   : > { %p449_p1 = pneg %p448_p9 }
  0x24   : > { %p456_p8 = pnand %p455_p4, %p449_p1 }
  0x26   : > { %459 = shalt.err (!%p456_p8)
}
  0x27   : > { %376 = dma.hbm_to_vmem [thread:$0]  (!%p663_p11), %s841_s1, 16, %s133_s22, [#allocation6]  }
  0x28   : > { %s460_s23 = scalar_lea.hbm %s842_s2, 16 }
  0x29   : > { %p461_p9 = scmp.ne.s32.totalorder %s842_s2, %s460_s23  ;;  %p467_p4 = scmp.lt.u32.totalorder %s460_s23, %s842_s2 }
  0x2b   : > { %p463_p2 = pnand %p461_p9, %p434_p13 }
  0x2d   : > { %p464_p1 = pneg %p463_p2 }
  0x2f   : > { %p469_p6 = pnand %p467_p4, %p464_p1 }
  0x31   : > { %472 = shalt.err (!%p469_p6)
}
  0x32   : > { %s473_s22 = scalar_lea.vmem %s667_s24, 16  ;;  %s480_s5 = scalar_lea.vmem %s667_s24, 32 }
  0x33   : > { %p474_p8 = scmp.ne.s32.totalorder %s667_s24, %s473_s22  ;;  %p481_p3 = scmp.lt.s32.totalorder %s667_s24, %s667_s24 }
  0x34   : > { %p482_p5 = scmp.lt.s32.totalorder %s480_s5, %s473_s22 }
  0x35   : > { %p476_p12 = pnand %p474_p8, %p434_p13 }
  0x36   : > { %p483_p7 = por %p482_p5, %p481_p3 }
  0x37   : > { %p477_p0 = pneg %p476_p12 }
  0x39   : > { %p484_p10 = pnand %p483_p7, %p477_p0 }
  0x3b   : > { %487 = shalt.err (!%p484_p10)
}
  0x3c   : > { %379 = dma.hbm_to_vmem [thread:$0]  (!%p663_p11), %s842_s2, 16, %s667_s24, [#allocation6]  }
  0x3d   : > { %p25_p13 = scmp.eq.s32.totalorder %s24_s27, 0  ;;  %s27_s8 = sadd.s32 1, %s584_s14 }
  0x3e   : > { %p34_p9 = scmp.ne.s32.totalorder %s584_s14, %s580_s13  ;;  %p35_p2 = scmp.eq.s32.totalorder %s588_s15, 0 }
  0x3f   : > { %s730_s25 = scalar_select %p25_p13, %s584_s14, %s27_s8  }
  0x40   : > { %p36_p1 = por %p35_p2, %p34_p9  ;;  %p851_p4 = scmp.eq.s32.totalorder %s635_s16, 1 }
  0x41   : > { %p390_p8 = scmp.lt.s32.totalorder %s588_s15, 2  ;;  %s154_s10 = sand.u32 1, %s584_s14  }
  0x42   : > { %p734_p6 = por %p851_p4, %p34_p9  ;;  %s347_s11 = sshll.u32 %s154_s10, 2 }
  0x43   : > { %s348_s17 = sshll.u32 %s588_s15, 6  ;;  %s158_s27 = scalar_lea.vmem [#allocation2], %s347_s11 }
  0x44   : > { %s744_s24 = scalar_lea.hbm %s840_s0, %s348_s17  ;;  %s165_s28 = sshll.u32 %s158_s27, 4  ;;  %s746_s28 = int_to_ptr.vmem [resolvable:$true] %s165_s28 }
  0x45   : > { %p748_p11 = pnand %p390_p8, %p36_p1  ;;  %s155_s30 = scalar_lea.sflag [#allocation3], %s154_s10 }
  0x46   : > { %s488_s4 = scalar_lea.hbm %s744_s24, 64  ;;  %s493_s6 = scalar_lea.hbm %s840_s0, 128 }
  0x47   : > { %p489_p12 = scmp.ne.s32.totalorder %s744_s24, %s488_s4  ;;  %p490_p0 = pneg %p748_p11 }
  0x48   : > { %p494_p7 = scmp.lt.u32.totalorder %s744_s24, %s840_s0  ;;  %p495_p10 = scmp.lt.u32.totalorder %s493_s6, %s488_s4 }
  0x49   : > { %p491_p3 = pnand %p490_p0, %p489_p12  ;;  %p497_p9 = scmp.lt.u32.totalorder %s488_s4, %s744_s24 }
  0x4a   : > { %p496_p13 = por %p495_p10, %p494_p7 }
  0x4b   : > { %p492_p5 = pneg %p491_p3 }
  0x4c   : > { %p498_p2 = por %p497_p9, %p496_p13 }
  0x4e   : > { %p499_p1 = pnand %p498_p2, %p492_p5 }
  0x50   : > { %502 = shalt.err (!%p499_p1)
}
  0x51   : > { %s503_s10 = scalar_lea.vmem %s746_s28, 64  ;;  %s592_s11 = smov [#allocation2]  }
  0x52   : > { %p504_p4 = scmp.ne.s32.totalorder %s746_s28, %s503_s10  ;;  %s508_s17 = sshll.u32 %s592_s11, 4  ;;  %s509_s17 = int_to_ptr.vmem [resolvable:$false] %s508_s17 }
  0x53   : > { %s510_s21 = scalar_lea.vmem %s509_s17, 128  ;;  %p511_p3 = scmp.lt.s32.totalorder %s746_s28, %s509_s17 }
  0x54   : > { %p506_p8 = pnand %p504_p4, %p490_p0  ;;  %p512_p7 = scmp.lt.s32.totalorder %s510_s21, %s503_s10 }
  0x56   : > { %p507_p12 = pneg %p506_p8  ;;  %p513_p10 = por %p512_p7, %p511_p3 }
  0x58   : > { %p514_p13 = pnand %p513_p10, %p507_p12 }
  0x5a   : > { %517 = shalt.err (!%p514_p13)
}
  0x5b   : > { %383 = dma.hbm_to_vmem [thread:$0]  (!%p748_p11), %s744_s24, 64, %s746_s28, %s155_s30  }
  0x5c   : > { %p854_p5 = scmp.ne.s32.totalorder %s849_s20, 0 }
  0x5d   : > { %s780_s23 = sand.u32 (!%p854_p5), 1, %s580_s13   ;;  %p855_p0 = scmp.ne.s32.totalorder (!%p854_p5), %s847_s18, 0 }
  0x5e   : > { %174 = sbr.rel (%p854_p5) target bundleno = 156 (0x9c), region = 32  ;;  %s350_s27 = sshll.u32 (!%p854_p5), %s780_s23, 2 }
  0x5f   : > { %s177_s4 = scalar_lea.sflag (!%p854_p5), [#allocation3], %s780_s23  ;;  %s180_s22 = scalar_lea.vmem (!%p854_p5), [#allocation2], %s350_s27 }
  0x65   : > { %563 = dma.done.wait (%p855_p0), %s177_s4, 64  }
  0x66   : > { %565 = vsyncadd (%p855_p0), %s177_s4, 4294967232  ;;  %p856_p9 = scmp.eq.s32.totalorder %s635_s16, 0 }
  0x68   : > { %567 = dma.done.wait (%p856_p9), [#allocation6], 32   ;;  %p857_p11 = pmov %p856_p9 }
  0x69   : > { %v211_v0 = vld [vmem:[%s180_s22] sm:$0xf]  ;;  %v354_v1 = vld [vmem:[#allocation5] ss:$0 sm:$0xff]  ;;  %v355_v3 = vld [vmem:[#allocation7] ss:$0 sm:$0xff] }
  0x6a   : > { %569 = vsyncadd (%p857_p11), [#allocation6], 4294967264  ;;  %v212_v2 = vunpack.c.l.bf16 %v211_v0  ;;  %s210_s18 = scalar_lea.vmem [#allocation8], %s350_s27  ;;  %s358_s24 = sshll.u32 %s635_s16, 6  ;;  %vm237_vm0 = vcmask 519168  }
  0x6b   : > { %s253_s20 = sshll.u32 %s210_s18, 4  ;;  %s798_s30 = scalar_lea.hbm %s843_s3, %s358_s24  ;;  %s793_s20 = int_to_ptr.vmem [resolvable:$true] %s253_s20 }
  0x6c   : > { %v220_v4 = vmul.f32 %v354_v1, %v212_v2  ;;  %s240_s5 = scalar_lea.sflag [#allocation4], %s780_s23  ;;  %s518_s6 = scalar_lea.vmem %s793_s20, 64 }
  0x6d   : > { %p519_p2 = scmp.ne.s32.totalorder %s793_s20, %s518_s6  ;;  %s593_s16 = smov [#allocation8]  }
  0x6e   : > { %v228_v5 = vadd.f32 %v355_v3, %v220_v4  ;;  %s522_s7 = sshll.u32 %s593_s16, 4  ;;  %s523_s7 = int_to_ptr.vmem [resolvable:$false] %s522_s7 }
  0x6f   : > { %p520_p1 = pnand %p519_p2, %p734_p6  ;;  %s524_s8 = scalar_lea.vmem %s523_s7, 128 }
  0x70   : > { %v356_v6 = vmul.f32 -1.442695, %v228_v5  ;;  %p525_p8 = scmp.lt.s32.totalorder %s793_s20, %s523_s7  ;;  %p526_p12 = scmp.lt.s32.totalorder %s524_s8, %s518_s6 }
  0x71   : > { %p521_p4 = pneg %p520_p1 }
  0x72   : > { %428 = vpow2.f32 %v356_v6  ;;  %p527_p3 = por %p526_p12, %p525_p8 }
  0x74   : > { %p528_p7 = pnand %p527_p3, %p521_p4 }
  0x7c   : > { %v429_v7 = vpop.eup %428 }
  0x7d   : > { %v232_v8 = vadd.f32 1.0, %v429_v7 }
  0x7f   : > { %430 = vrcp.f32 %v232_v8 }
  0x89   : > { %v431_v9 = vpop.eup %430 }
  0x8a   : > { %v235_v10 = vmul.f32 %v431_v9, %v228_v5 }
  0x8c   : > { %v236_v11 = vpack.c.bf16 %v235_v10, %v235_v10 }
  0x8e   : > { %238 = vst.msk [vmem:[%s210_s18] sm:$0xf] %vm237_vm0, %v236_v11 }
  0x8f   : > { %531 = shalt.err (!%p528_p7)
}
  0x90   : > { %s532_s10 = scalar_lea.hbm %s798_s30, 64  ;;  %s536_s21 = scalar_lea.hbm %s843_s3, 128 }
  0x91   : > { %p533_p10 = scmp.ne.s32.totalorder %s798_s30, %s532_s10  ;;  %p537_p0 = scmp.lt.u32.totalorder %s798_s30, %s843_s3 }
  0x92   : > { %p538_p9 = scmp.lt.u32.totalorder %s536_s21, %s532_s10  ;;  %p540_p2 = scmp.lt.u32.totalorder %s532_s10, %s798_s30 }
  0x93   : > { %p534_p13 = pnand %p533_p10, %p734_p6 }
  0x94   : > { %p539_p11 = por %p538_p9, %p537_p0 }
  0x95   : > { %p535_p5 = pneg %p534_p13 }
  0x96   : > { %p541_p1 = por %p540_p2, %p539_p11 }
  0x98   : > { %p542_p4 = pnand %p541_p1, %p535_p5 }
  0x9a   : > { %545 = shalt.err (!%p542_p4)
}
  0x9b   : > { %371 = dma.vmem_to_hbm [thread:$0]  (%p734_p6), %s793_s20, 64, %s798_s30, %s240_s5  }
  0x9c PF: > { %s265_s4 = sand.u32 1, %s576_s12   ;;  %p858_p8 = scmp.ne.s32.totalorder %s848_s19, 0 }
  0x9d   : > { %p859_p12 = scmp.ge.s32.totalorder %s588_s15, 2  ;;  %s266_s22 = scalar_lea.sflag [#allocation4], %s265_s4 }
  0x9f   : > { %p385_p3 = pnand %p859_p12, %p858_p8 }
  0xa1   : > { %571 = dma.done.wait (!%p385_p3), %s266_s22, 64  }
  0xa2   : > { %573 = vsyncadd (!%p385_p3), %s266_s22, 4294967232  ;;  %p17_p7 = scmp.ge.s32.totalorder %s670_s26, 4   ;;  %s860_s12 = smov %s580_s13 }
  0xa3   : > { %s861_s13 = smov %s584_s14  ;;  %s862_s14 = smov %s730_s25 }
  0xa4   : > { %s863_s15 = smov %s670_s26  ;;  %19 = sbr.rel (!%p17_p7) target bundleno = 6 (0x6), region = 85 }
  0xab   :  { %271 = vsyncpa [#allocation3], 1 }
  0xac   :  { %273 = vsyncpa [#allocation3 + $0x1], 1 }
  0xad   :  { %274 = vsyncpa [#allocation6], 1 }
  0xae   :  { %275 = vsyncpa [#allocation4], 1 }
  0xaf   :  { %277 = vsyncpa [#allocation4 + $0x1], 1 }

// kernel: generator1_forward.17
= control target key start
LH: loop header
LB: loop body
LE: loop exit
PB: predicated region body
PF: predicated region fallthrough
CT: control target
= control target key end

     0   :  { %s1004_s0 = inlined_call_operand.hbm [shape: bf16[2,8,64], index: 0, kind: input, shape index: {}]   ;;  %s1005_s1 = inlined_call_operand.hbm [shape: f32[1,1,64], index: 1, kind: input, shape index: {}]   ;;  %s1006_s2 = inlined_call_operand.hbm [shape: f32[1,1,64], index: 2, kind: input, shape index: {}]   ;;  %s1007_s3 = inlined_call_operand.hbm [shape: bf16[2,8,64], index: 3, kind: input, shape index: {}]   ;;  %s1008_s4 = inlined_call_operand.hbm [shape: bf16[2,8,64], index: 4, kind: output, shape index: {}]  }
   0x1   :  { %1014 = sst [smem:[#allocation15_spill]] %s1004_s0 }
   0x2   :  { %9 = vsyncpa [#allocation3], 0 }
   0x3   :  { %11 = vsyncpa [#allocation3 + $0x1], 0 }
   0x4   :  { %12 = vsyncpa [#allocation6], 0 }
   0x5   :  { %13 = vsyncpa [#allocation9], 0 }
   0x6   :  { %15 = vsyncpa [#allocation9 + $0x1], 0 }
   0x7   :  { %16 = vsyncpa [#allocation4], 0 }
   0x8   :  { %18 = vsyncpa [#allocation4 + $0x1], 0  ;;  %s740_s15 = smov 0   ;;  %s742_s16 = smov 0  }
   0x9   :  { %s744_s17 = smov 0   ;;  %s746_s18 = smov 0  }
   0xa LB: > { %s761_s19 = sadd.s32 4294967295, %s708_s18   ;;  %s425_s20 = sadd.s32 4294967294, %s708_s18   ;;  %s708_s18 = sphi %s746_s18, %s1034_s18   ;;  %s704_s17 = sphi %s744_s17, %s1033_s17   ;;  %s700_s16 = sphi %s742_s16, %s1032_s16   ;;  %s696_s15 = sphi %s740_s15, %s1031_s15  }
   0xb   : > { %p44_p0 = scmp.ne.s32.totalorder %s700_s16, %s696_s15  ;;  %p1009_p1 = scmp.eq.s32.totalorder %s761_s19, 0 }
   0xc   : > { %p142_p3 = scmp.eq.s32.totalorder %s425_s20, 1  ;;  %p426_p5 = scmp.ge.s32.totalorder %s708_s18, 1 }
   0xd   : > { %p770_p4 = por %p1009_p1, %p44_p0  ;;  %p149_p7 = scmp.lt.s32.totalorder %s708_s18, 3 }
   0xe   : > { %p775_p6 = por %p142_p3, %p44_p0  ;;  %s710_s24 = smov [#allocation5]  }
   0xf   : > { %s1015_s21 = scalar_select %p770_p4, 1, 0 }
  0x10   : > { %s1016_s22 = scalar_select %p775_p6, 1, 0 }
  0x11   : > { %p780_p8 = pnand %p426_p5, %p149_p7  ;;  %s162_s25 = sshll.u32 %s710_s24, 4  ;;  %s163_s25 = int_to_ptr.vmem [resolvable:$true] %s162_s25 }
  0x12   : > { %s711_s26 = smov [#allocation7]   ;;  %s796_s29 = sadd.s32 1, %s708_s18  }
  0x13   : > { %s1017_s23 = scalar_select %p780_p8, 1, 0 }
  0x14   : > { %p460_p10 = pneg %p780_p8  ;;  %s173_s27 = sshll.u32 %s711_s26, 4  ;;  %s793_s27 = int_to_ptr.vmem [resolvable:$true] %s173_s27 }
  0x15   : > { %s28_s30 = ssub.s32 %s708_s18, %s796_s29  ;;  %s518_s7 = scalar_lea.hbm %s1005_s1, 16 }
  0x16   : > { %p789_p11 = pnand %p460_p10, %p1009_p1  ;;  %p519_p12 = scmp.ne.s32.totalorder %s1005_s1, %s518_s7 }
  0x17   : > { %p525_p5 = scmp.lt.u32.totalorder %s518_s7, %s1005_s1 }
  0x18   : > { %p520_p13 = pneg %p789_p11 }
  0x1a   : > { %p521_p0 = pnand %p520_p13, %p519_p12 }
  0x1c   : > { %p522_p3 = pneg %p521_p0 }
  0x1e   : > { %p527_p7 = pnand %p525_p5, %p522_p3 }
  0x20   : > { %530 = shalt.err (!%p527_p7)
}
  0x21   : > { %s531_s12 = scalar_lea.vmem %s163_s25, 16  ;;  %s538_s13 = scalar_lea.vmem %s163_s25, 32 }
  0x22   : > { %p532_p10 = scmp.ne.s32.totalorder %s163_s25, %s531_s12  ;;  %p539_p2 = scmp.lt.s32.totalorder %s163_s25, %s163_s25 }
  0x23   : > { %p540_p6 = scmp.lt.s32.totalorder %s538_s13, %s531_s12 }
  0x24   : > { %p534_p9 = pnand %p532_p10, %p520_p13 }
  0x25   : > { %p541_p4 = por %p540_p6, %p539_p2 }
  0x26   : > { %p535_p1 = pneg %p534_p9 }
  0x28   : > { %p542_p8 = pnand %p541_p4, %p535_p1 }
  0x2a   : > { %545 = shalt.err (!%p542_p8)
}
  0x2b   : > { %463 = dma.hbm_to_vmem [thread:$0]  (!%p789_p11), %s1005_s1, 16, %s163_s25, [#allocation6]  }
  0x2c   : > { %s546_s5 = scalar_lea.hbm %s1006_s2, 16 }
  0x2d   : > { %p547_p9 = scmp.ne.s32.totalorder %s1006_s2, %s546_s5  ;;  %p553_p4 = scmp.lt.u32.totalorder %s546_s5, %s1006_s2 }
  0x2f   : > { %p549_p2 = pnand %p547_p9, %p520_p13 }
  0x31   : > { %p550_p1 = pneg %p549_p2 }
  0x33   : > { %p555_p6 = pnand %p553_p4, %p550_p1 }
  0x35   : > { %558 = shalt.err (!%p555_p6)
}
  0x36   : > { %s559_s25 = scalar_lea.vmem %s793_s27, 16  ;;  %s566_s10 = scalar_lea.vmem %s793_s27, 32 }
  0x37   : > { %p560_p8 = scmp.ne.s32.totalorder %s793_s27, %s559_s25  ;;  %p567_p3 = scmp.lt.s32.totalorder %s793_s27, %s793_s27 }
  0x38   : > { %p568_p5 = scmp.lt.s32.totalorder %s566_s10, %s559_s25 }
  0x39   : > { %p562_p12 = pnand %p560_p8, %p520_p13 }
  0x3a   : > { %p569_p7 = por %p568_p5, %p567_p3 }
  0x3b   : > { %p563_p0 = pneg %p562_p12 }
  0x3d   : > { %p570_p10 = pnand %p569_p7, %p563_p0 }
  0x3f   : > { %573 = shalt.err (!%p570_p10)
}
  0x40   : > { %466 = dma.hbm_to_vmem [thread:$0]  (!%p789_p11), %s1006_s2, 16, %s793_s27, [#allocation6]  }
  0x41   : > { %p29_p13 = scmp.eq.s32.totalorder %s28_s30, 0  ;;  %s31_s13 = sadd.s32 1, %s704_s17 }
  0x42   : > { %p38_p9 = scmp.ne.s32.totalorder %s704_s17, %s700_s16  ;;  %p39_p2 = scmp.eq.s32.totalorder %s708_s18, 0 }
  0x43   : > { %s856_s28 = scalar_select %p29_p13, %s704_s17, %s31_s13  }
  0x44   : > { %p40_p1 = por %p39_p2, %p38_p9  ;;  %p1019_p4 = scmp.eq.s32.totalorder %s761_s19, 1 }
  0x45   : > { %p480_p8 = scmp.lt.s32.totalorder %s708_s18, 2  ;;  %s866_s20 = sand.u32 1, %s704_s17  }
  0x46   : > { %p860_p6 = por %p1019_p4, %p38_p9  ;;  %s1012_s27 = sshll.u32 %s866_s20, 2 }
  0x47   : > { %s431_s24 = sshll.u32 %s708_s18, 6  ;;  %s1021_s0 = sld [smem:[#allocation15_spill]] }
  0x48   : > { %s1020_s14 = scalar_select %p860_p6, 1, 0 }
  0x49   : > { %s188_s6 = scalar_lea.vmem [#allocation2], %s1012_s27  ;;  %p879_p11 = pnand %p480_p8, %p40_p1 }
  0x4a   : > { %s195_s7 = sshll.u32 %s188_s6, 4  ;;  %s886_s10 = scalar_lea.hbm %s1007_s3, %s431_s24  ;;  %s877_s7 = int_to_ptr.vmem [resolvable:$true] %s195_s7 }
  0x4b   : > { %s185_s11 = scalar_lea.sflag [#allocation3], %s866_s20  ;;  %p576_p0 = pneg %p879_p11 }
  0x4d   : > { %s873_s5 = scalar_lea.hbm %s1021_s0, %s431_s24  ;;  %s579_s26 = scalar_lea.hbm %s1021_s0, 128 }
  0x4e   : > { %s574_s12 = scalar_lea.hbm %s873_s5, 64  ;;  %p580_p7 = scmp.lt.u32.totalorder %s873_s5, %s1021_s0 }
  0x4f   : > { %p575_p12 = scmp.ne.s32.totalorder %s873_s5, %s574_s12  ;;  %p581_p10 = scmp.lt.u32.totalorder %s579_s26, %s574_s12 }
  0x50   : > { %p583_p9 = scmp.lt.u32.totalorder %s574_s12, %s873_s5 }
  0x51   : > { %p577_p3 = pnand %p576_p0, %p575_p12  ;;  %p582_p13 = por %p581_p10, %p580_p7 }
  0x53   : > { %p578_p5 = pneg %p577_p3  ;;  %p584_p2 = por %p583_p9, %p582_p13 }
  0x55   : > { %p585_p1 = pnand %p584_p2, %p578_p5 }
  0x57   : > { %588 = shalt.err (!%p585_p1)
}
  0x58   : > { %s589_s24 = scalar_lea.vmem %s877_s7, 64  ;;  %s712_s9 = smov [#allocation2]  }
  0x59   : > { %p590_p4 = scmp.ne.s32.totalorder %s877_s7, %s589_s24  ;;  %s594_s25 = sshll.u32 %s712_s9, 4  ;;  %s595_s25 = int_to_ptr.vmem [resolvable:$false] %s594_s25 }
  0x5a   : > { %s596_s27 = scalar_lea.vmem %s595_s25, 128  ;;  %p597_p3 = scmp.lt.s32.totalorder %s877_s7, %s595_s25 }
  0x5b   : > { %p592_p8 = pnand %p590_p4, %p576_p0  ;;  %p598_p7 = scmp.lt.s32.totalorder %s596_s27, %s589_s24 }
  0x5d   : > { %p593_p12 = pneg %p592_p8  ;;  %p599_p10 = por %p598_p7, %p597_p3 }
  0x5f   : > { %p600_p13 = pnand %p599_p10, %p593_p12 }
  0x61   : > { %603 = shalt.err (!%p600_p13)
}
  0x62   : > { %470 = dma.hbm_to_vmem [thread:$0]  (!%p879_p11), %s873_s5, 64, %s877_s7, %s185_s11  }
  0x63   : > { %s1023_s12 = sshll.u32 %s866_s20, 2  ;;  %s203_s26 = scalar_lea.sflag [#allocation9], %s866_s20 }
  0x64   : > { %s206_s13 = scalar_lea.vmem [#allocation8], %s1023_s12  ;;  %s604_s6 = scalar_lea.hbm %s886_s10, 64 }
  0x65   : > { %s213_s30 = sshll.u32 %s206_s13, 4  ;;  %p605_p5 = scmp.ne.s32.totalorder %s886_s10, %s604_s6  ;;  %s214_s30 = int_to_ptr.vmem [resolvable:$true] %s213_s30 }
  0x66   : > { %s609_s25 = scalar_lea.hbm %s1007_s3, 128  ;;  %p610_p1 = scmp.lt.u32.totalorder %s886_s10, %s1007_s3 }
  0x67   : > { %p607_p9 = pnand %p605_p5, %p576_p0  ;;  %p611_p4 = scmp.lt.u32.totalorder %s609_s25, %s604_s6 }
  0x68   : > { %p613_p12 = scmp.lt.u32.totalorder %s604_s6, %s886_s10 }
  0x69   : > { %p608_p2 = pneg %p607_p9  ;;  %p612_p8 = por %p611_p4, %p610_p1 }
  0x6b   : > { %p614_p3 = por %p613_p12, %p612_p8 }
  0x6d   : > { %p615_p7 = pnand %p614_p3, %p608_p2 }
  0x6f   : > { %618 = shalt.err (!%p615_p7)
}
  0x70   : > { %s619_s20 = scalar_lea.vmem %s214_s30, 64  ;;  %s713_s5 = smov [#allocation8]  }
  0x71   : > { %p620_p10 = scmp.ne.s32.totalorder %s214_s30, %s619_s20  ;;  %s624_s7 = sshll.u32 %s713_s5, 4  ;;  %s625_s7 = int_to_ptr.vmem [resolvable:$false] %s624_s7 }
  0x72   : > { %s626_s11 = scalar_lea.vmem %s625_s7, 128  ;;  %p627_p9 = scmp.lt.s32.totalorder %s214_s30, %s625_s7 }
  0x73   : > { %p622_p13 = pnand %p620_p10, %p576_p0  ;;  %p628_p6 = scmp.lt.s32.totalorder %s626_s11, %s619_s20 }
  0x75   : > { %p623_p5 = pneg %p622_p13  ;;  %p629_p1 = por %p628_p6, %p627_p9 }
  0x77   : > { %p630_p4 = pnand %p629_p1, %p623_p5 }
  0x79   : > { %633 = shalt.err (!%p630_p4)
}
  0x7a   : > { %473 = dma.hbm_to_vmem [thread:$0]  (!%p879_p11), %s886_s10, 64, %s214_s30, %s203_s26  }
  0x7b   : > { %p1024_p2 = scmp.ne.s32.totalorder %s1017_s23, 0 }
  0x7c   : > { %s939_s0 = sand.u32 (!%p1024_p2), 1, %s700_s16   ;;  %p1025_p0 = scmp.ne.s32.totalorder (!%p1024_p2), %s1015_s21, 0 }
  0x7d   : > { %222 = sbr.rel (%p1024_p2) target bundleno = 165 (0xa5), region = 36  ;;  %s435_s12 = sshll.u32 (!%p1024_p2), %s939_s0, 2 }
  0x7e   : > { %s225_s13 = scalar_lea.sflag (!%p1024_p2), [#allocation3], %s939_s0  ;;  %s228_s6 = scalar_lea.vmem (!%p1024_p2), [#allocation2], %s435_s12 }
  0x84   : > { %679 = dma.done.wait (%p1025_p0), %s225_s13, 64  }
  0x85   : > { %681 = vsyncadd (%p1025_p0), %s225_s13, 4294967232  ;;  %p1026_p6 = scmp.eq.s32.totalorder %s761_s19, 0 }
  0x87   : > { %683 = dma.done.wait (%p1026_p6), [#allocation6], 32   ;;  %p1027_p11 = pmov %p1026_p6 }
  0x88   : > { %s242_s23 = scalar_lea.sflag [#allocation9], %s939_s0  ;;  %s245_s8 = scalar_lea.vmem [#allocation8], %s435_s12 }
  0x89   : > { %685 = vsyncadd (%p1027_p11), [#allocation6], 4294967264 }
  0x8a   : > { %687 = dma.done.wait (%p1025_p0), %s242_s23, 64  }
  0x8b   : > { %689 = vsyncadd (%p1025_p0), %s242_s23, 4294967232  ;;  %v275_v0 = vld [vmem:[%s228_s6] sm:$0xf]  ;;  %v440_v1 = vld [vmem:[#allocation5] ss:$0 sm:$0xff]  ;;  %s274_s10 = scalar_lea.vmem [#allocation10], %s435_s12 }
  0x8c   : > { %v276_v2 = vunpack.c.l.bf16 %v275_v0  ;;  %v293_v3 = vld [vmem:[%s245_s8] sm:$0xf]  ;;  %v441_v4 = vld [vmem:[#allocation7] ss:$0 sm:$0xff]  ;;  %s313_s30 = sshll.u32 %s274_s10, 4  ;;  %s443_s26 = sshll.u32 %s761_s19, 6  ;;  %s957_s30 = int_to_ptr.vmem [resolvable:$true] %s313_s30 }
  0x8d   : > { %v294_v6 = vunpack.c.l.bf16 %v293_v3  ;;  %vm297_vm0 = vcmask 519168   ;;  %s962_s9 = scalar_lea.hbm %s1008_s4, %s443_s26  ;;  %s300_s25 = scalar_lea.sflag [#allocation4], %s939_s0 }
  0x8e   : > { %v284_v5 = vmul.f32 %v440_v1, %v276_v2  ;;  %s634_s27 = scalar_lea.vmem %s957_s30, 64  ;;  %p1028_p12 = scmp.ne.s32.totalorder %s1020_s14, 0 }
  0x8f   : > { %p635_p8 = scmp.ne.s32.totalorder %s957_s30, %s634_s27  ;;  %s714_s19 = smov [#allocation10]  }
  0x90   : > { %v292_v7 = vadd.f32 %v441_v4, %v284_v5  ;;  %s638_s20 = sshll.u32 %s714_s19, 4  ;;  %s639_s20 = int_to_ptr.vmem [resolvable:$false] %s638_s20 }
  0x91   : > { %p636_p3 = pnand %p635_p8, %p1028_p12  ;;  %s640_s5 = scalar_lea.vmem %s639_s20, 128 }
  0x92   : > { %v295_v8 = vadd.f32 %v294_v6, %v292_v7  ;;  %p641_p10 = scmp.lt.s32.totalorder %s957_s30, %s639_s20  ;;  %p642_p13 = scmp.lt.s32.totalorder %s640_s5, %s634_s27 }
  0x93   : > { %p637_p7 = pneg %p636_p3 }
  0x94   : > { %v296_v9 = vpack.c.bf16 %v295_v8, %v295_v8  ;;  %p643_p5 = por %p642_p13, %p641_p10 }
  0x96   : > { %298 = vst.msk [vmem:[%s274_s10] sm:$0xf] %vm297_vm0, %v296_v9  ;;  %p644_p9 = pnand %p643_p5, %p637_p7 }
  0x98   : > { %647 = shalt.err (!%p644_p9)
}
  0x99   : > { %s648_s7 = scalar_lea.hbm %s962_s9, 64  ;;  %s652_s12 = scalar_lea.hbm %s1008_s4, 128 }
  0x9a   : > { %p649_p1 = scmp.ne.s32.totalorder %s962_s9, %s648_s7  ;;  %p653_p0 = scmp.lt.u32.totalorder %s962_s9, %s1008_s4 }
  0x9b   : > { %p654_p6 = scmp.lt.u32.totalorder %s652_s12, %s648_s7  ;;  %p656_p8 = scmp.lt.u32.totalorder %s648_s7, %s962_s9 }
  0x9c   : > { %p650_p4 = pnand %p649_p1, %p1028_p12 }
  0x9d   : > { %p655_p11 = por %p654_p6, %p653_p0 }
  0x9e   : > { %p651_p2 = pneg %p650_p4 }
  0x9f   : > { %p657_p3 = por %p656_p8, %p655_p11 }
  0xa1   : > { %p658_p7 = pnand %p657_p3, %p651_p2 }
  0xa3   : > { %661 = shalt.err (!%p658_p7)
}
  0xa4   : > { %458 = dma.vmem_to_hbm [thread:$0]  (%p1028_p12), %s957_s30, 64, %s962_s9, %s300_s25  }
  0xa5 PF: > { %s325_s23 = sand.u32 1, %s696_s15   ;;  %p1029_p10 = scmp.ne.s32.totalorder %s1016_s22, 0 }
  0xa6   : > { %p1030_p13 = scmp.ge.s32.totalorder %s708_s18, 2  ;;  %s326_s8 = scalar_lea.sflag [#allocation4], %s325_s23 }
  0xa8   : > { %p475_p5 = pnand %p1030_p13, %p1029_p10 }
  0xaa   : > { %691 = dma.done.wait (!%p475_p5), %s326_s8, 64  }
  0xab   : > { %693 = vsyncadd (!%p475_p5), %s326_s8, 4294967232  ;;  %p21_p9 = scmp.ge.s32.totalorder %s796_s29, 4   ;;  %s1031_s15 = smov %s700_s16 }
  0xac   : > { %s1032_s16 = smov %s704_s17  ;;  %s1033_s17 = smov %s856_s28 }
  0xad   : > { %s1034_s18 = smov %s796_s29  ;;  %23 = sbr.rel (!%p21_p9) target bundleno = 10 (0xa), region = 102 }
  0xb4   :  { %331 = vsyncpa [#allocation3], 1 }
  0xb5   :  { %333 = vsyncpa [#allocation3 + $0x1], 1 }
  0xb6   :  { %334 = vsyncpa [#allocation6], 1 }
  0xb7   :  { %335 = vsyncpa [#allocation9], 1 }
  0xb8   :  { %337 = vsyncpa [#allocation9 + $0x1], 1 }
  0xb9   :  { %338 = vsyncpa [#allocation4], 1 }
  0xba   :  { %340 = vsyncpa [#allocation4 + $0x1], 1 }

// kernel: generator1_forward.24
= control target key start
LH: loop header
LB: loop body
LE: loop exit
PB: predicated region body
PF: predicated region fallthrough
CT: control target
= control target key end

     0   :  { %8 = vsyncpa [#allocation3], 0  ;;  %s1260_s0 = inlined_call_operand.hbm [shape: bf16[2,10,64], index: 0, kind: input, shape index: {}]   ;;  %s1261_s1 = inlined_call_operand.hbm [shape: bf16[3,64,256], index: 1, kind: input, shape index: {}]   ;;  %s1262_s2 = inlined_call_operand.hbm [shape: f32[1,256], index: 2, kind: input, shape index: {}]   ;;  %s1263_s3 = inlined_call_operand.hbm [shape: bf16[2,8,256], index: 3, kind: output, shape index: {}]  }
   0x1   :  { %10 = vsyncpa [#allocation3 + $0x1], 0 }
   0x2   :  { %11 = vsyncpa [#allocation6], 0 }
   0x3   :  { %12 = vsyncpa [#allocation4], 0 }
   0x4   :  { %14 = vsyncpa [#allocation4 + $0x1], 0  ;;  %s1016_s12 = smov 0   ;;  %s1018_s13 = smov 0  }
   0x5   :  { %s1020_s14 = smov 0   ;;  %s1022_s15 = smov 0  }
   0x6 LB: > { %s1037_s16 = sadd.s32 4294967295, %s985_s15   ;;  %s658_s17 = sadd.s32 4294967294, %s985_s15   ;;  %s985_s15 = sphi %s1022_s15, %s1283_s15   ;;  %s981_s14 = sphi %s1020_s14, %s1282_s14   ;;  %s977_s13 = sphi %s1018_s13, %s1281_s13   ;;  %s973_s12 = sphi %s1016_s12, %s1280_s12  }
   0x7   : > { %p40_p0 = scmp.ne.s32.totalorder %s977_s13, %s973_s12  ;;  %p1264_p1 = scmp.eq.s32.totalorder %s1037_s16, 0 }
   0x8   : > { %p112_p3 = scmp.eq.s32.totalorder %s658_s17, 1  ;;  %p659_p5 = scmp.ge.s32.totalorder %s985_s15, 1 }
   0x9   : > { %p1046_p4 = por %p1264_p1, %p40_p0  ;;  %p119_p7 = scmp.lt.s32.totalorder %s985_s15, 3 }
   0xa   : > { %p1051_p6 = por %p112_p3, %p40_p0  ;;  %s987_s21 = smov [#allocation5]  }
   0xb   : > { %s1267_s18 = scalar_select %p1046_p4, 1, 0 }
   0xc   : > { %s1268_s19 = scalar_select %p1051_p6, 1, 0 }
   0xd   : > { %p1056_p8 = pnand %p659_p5, %p119_p7  ;;  %s131_s22 = sshll.u32 %s987_s21, 4  ;;  %s1060_s22 = int_to_ptr.vmem [resolvable:$true] %s131_s22 }
   0xe   : > { %s988_s24 = smov [#allocation7]   ;;  %s829_s28 = scalar_lea.hbm %s1261_s1, 3072 }
   0xf   : > { %p723_p9 = pneg %p1056_p8  ;;  %s145_s25 = sshll.u32 %s988_s24, 4  ;;  %s1071_s25 = int_to_ptr.vmem [resolvable:$true] %s145_s25 }
  0x10   : > { %p830_p12 = scmp.ne.s32.totalorder %s1261_s1, %s829_s28  ;;  %p836_p5 = scmp.lt.u32.totalorder %s829_s28, %s1261_s1 }
  0x11   : > { %p1067_p11 = pnand %p723_p9, %p1264_p1 }
  0x13   : > { %p831_p13 = pneg %p1067_p11 }
  0x15   : > { %p832_p0 = pnand %p831_p13, %p830_p12 }
  0x17   : > { %p833_p3 = pneg %p832_p0 }
  0x19   : > { %p838_p7 = pnand %p836_p5, %p833_p3 }
  0x1b   : > { %841 = shalt.err (!%p838_p7)
}
  0x1c   : > { %s842_s6 = scalar_lea.vmem %s1060_s22, 3072  ;;  %p850_p2 = scmp.lt.s32.totalorder %s1060_s22, %s1060_s22 }
  0x1d   : > { %p843_p9 = scmp.ne.s32.totalorder %s1060_s22, %s842_s6  ;;  %p851_p12 = scmp.lt.s32.totalorder %s842_s6, %s842_s6 }
  0x1f   : > { %p845_p10 = pnand %p843_p9, %p831_p13  ;;  %p852_p0 = por %p851_p12, %p850_p2 }
  0x21   : > { %p846_p1 = pneg %p845_p10 }
  0x23   : > { %p853_p6 = pnand %p852_p0, %p846_p1 }
  0x25   : > { %856 = shalt.err (!%p853_p6)
}
  0x26   : > { %s989_s7 = smov 128   ;;  %s990_s8 = smov 8  }
  0x27   : > { %726 = dma.hbm_to_vmem [thread:$0]  (!%p1067_p11), %s1261_s1, 3072, %s1060_s22, [#allocation6], %s989_s7, %s989_s7, %s990_s8  }
  0x28   : > { %s857_s21 = scalar_lea.hbm %s1262_s2, 32 }
  0x29   : > { %p858_p2 = scmp.ne.s32.totalorder %s1262_s2, %s857_s21  ;;  %p864_p10 = scmp.lt.u32.totalorder %s857_s21, %s1262_s2 }
  0x2b   : > { %p860_p1 = pnand %p858_p2, %p831_p13 }
  0x2d   : > { %p861_p6 = pneg %p860_p1 }
  0x2f   : > { %p866_p3 = pnand %p864_p10, %p861_p6 }
  0x31   : > { %869 = shalt.err (!%p866_p3)
}
  0x32   : > { %s870_s22 = scalar_lea.vmem %s1071_s25, 32  ;;  %p878_p12 = scmp.lt.s32.totalorder %s1071_s25, %s1071_s25 }
  0x33   : > { %p871_p5 = scmp.ne.s32.totalorder %s1071_s25, %s870_s22  ;;  %p879_p0 = scmp.lt.s32.totalorder %s870_s22, %s870_s22 }
  0x35   : > { %p873_p7 = pnand %p871_p5, %p831_p13  ;;  %p880_p2 = por %p879_p0, %p878_p12 }
  0x37   : > { %p874_p9 = pneg %p873_p7 }
  0x39   : > { %p881_p1 = pnand %p880_p2, %p874_p9 }
  0x3b   : > { %884 = shalt.err (!%p881_p1)
}
  0x3c   : > { %729 = dma.hbm_to_vmem [thread:$0]  (!%p1067_p11), %s1262_s2, 32, %s1071_s25, [#allocation6]  }
  0x3d   : > { %s1126_s4 = sadd.s32 1, %s985_s15   ;;  %s27_s23 = sadd.s32 1, %s981_s14 }
  0x3e   : > { %s24_s5 = ssub.s32 %s985_s15, %s1126_s4  ;;  %p34_p13 = scmp.ne.s32.totalorder %s981_s14, %s977_s13 }
  0x3f   : > { %p25_p6 = scmp.eq.s32.totalorder %s24_s5, 0  ;;  %p35_p10 = scmp.eq.s32.totalorder %s985_s15, 0 }
  0x40   : > { %p1271_p3 = scmp.eq.s32.totalorder %s1037_s16, 1  ;;  %p740_p7 = scmp.lt.s32.totalorder %s985_s15, 2 }
  0x41   : > { %s1142_s7 = scalar_select %p25_p6, %s981_s14, %s27_s23  }
  0x42   : > { %p1136_p5 = por %p1271_p3, %p34_p13  ;;  %p36_p9 = por %p35_p10, %p34_p13 }
  0x43   : > { %s156_s8 = sand.u32 1, %s981_s14   ;;  %s708_s25 = sshll.u32 %s985_s15, 7 }
  0x44   : > { %s1272_s6 = scalar_select %p1136_p5, 1, 0 }
  0x45   : > { %s663_s9 = sshll.u32 %s156_s8, 3  ;;  %s1149_s17 = scalar_lea.hbm %s1260_s0, %s708_s25 }
  0x46   : > { %s160_s21 = scalar_lea.vmem [#allocation2], %s663_s9  ;;  %p1153_p11 = pnand %p740_p7, %p36_p9 }
  0x47   : > { %s167_s24 = sshll.u32 %s160_s21, 4  ;;  %s1157_s27 = scalar_lea.sflag [#allocation3], %s156_s8  ;;  %s1151_s24 = int_to_ptr.vmem [resolvable:$true] %s167_s24 }
  0x48   : > { %s885_s28 = scalar_lea.hbm %s1149_s17, 128  ;;  %p887_p0 = pneg %p1153_p11 }
  0x49   : > { %p886_p12 = scmp.ne.s32.totalorder %s1149_s17, %s885_s28  ;;  %s890_s30 = scalar_lea.hbm %s1260_s0, 256 }
  0x4a   : > { %p891_p13 = scmp.lt.u32.totalorder %s1149_s17, %s1260_s0  ;;  %p892_p6 = scmp.lt.u32.totalorder %s890_s30, %s885_s28 }
  0x4b   : > { %p888_p2 = pnand %p887_p0, %p886_p12  ;;  %p894_p3 = scmp.lt.u32.totalorder %s885_s28, %s1149_s17 }
  0x4c   : > { %p893_p10 = por %p892_p6, %p891_p13 }
  0x4d   : > { %p889_p1 = pneg %p888_p2 }
  0x4e   : > { %p895_p7 = por %p894_p3, %p893_p10 }
  0x50   : > { %p896_p9 = pnand %p895_p7, %p889_p1 }
  0x52   : > { %899 = shalt.err (!%p896_p9)
}
  0x53   : > { %s900_s8 = scalar_lea.vmem %s1151_s24, 128  ;;  %s991_s9 = smov [#allocation2]  }
  0x54   : > { %p901_p12 = scmp.ne.s32.totalorder %s1151_s24, %s900_s8  ;;  %s905_s25 = sshll.u32 %s991_s9, 4  ;;  %s906_s25 = int_to_ptr.vmem [resolvable:$false] %s905_s25 }
  0x55   : > { %s907_s10 = scalar_lea.vmem %s906_s25, 256  ;;  %p908_p4 = scmp.lt.s32.totalorder %s1151_s24, %s906_s25 }
  0x56   : > { %p903_p2 = pnand %p901_p12, %p887_p0  ;;  %p909_p13 = scmp.lt.s32.totalorder %s907_s10, %s900_s8 }
  0x58   : > { %p904_p5 = pneg %p903_p2  ;;  %p910_p6 = por %p909_p13, %p908_p4 }
  0x5a   : > { %p911_p10 = pnand %p910_p6, %p904_p5 }
  0x5c   : > { %914 = shalt.err (!%p911_p10)
}
  0x5d   : > { %s992_s11 = smov 64   ;;  %s993_s21 = smov 4  }
  0x5e   : > { %733 = dma.hbm_to_vmem [thread:$0]  (!%p1153_p11), %s1149_s17, 128, %s1151_s24, %s1157_s27, %s992_s11, %s992_s11, %s993_s21  }
  0x5f   : > { %179 = sbr.rel (%p1056_p8) target bundleno = 401 (0x191), region = 32  ;;  %s1188_s28 = sand.u32 (!%p1056_p8), 1, %s977_s13  }
  0x60   : > { %s667_s22 = sshll.u32 (!%p1056_p8), %s1188_s28, 3  ;;  %s182_s29 = scalar_lea.sflag (!%p1056_p8), [#allocation3], %s1188_s28 }
  0x61   : > { %s1194_s30 = scalar_lea.vmem (!%p1056_p8), [#allocation2], %s667_s22  ;;  %p1274_p4 = scmp.ne.s32.totalorder (!%p1056_p8), %s1267_s18, 0 }
  0x66   : > { %960 = dma.done.wait (%p1274_p4), %s182_s29, 128  }
  0x67   : > { %962 = vsyncadd (%p1274_p4), %s182_s29, 4294967168  ;;  %p1275_p5 = scmp.eq.s32.totalorder %s1037_s16, 0 }
  0x69   : > { %964 = dma.done.wait (%p1275_p5), [#allocation6], 3104   ;;  %p1276_p8 = pmov %p1275_p5 }
  0x6a   : > { %v994_v0 = vmov 0   ;;  %v783_v1 = vld [vmem:[#allocation5 + $0x44] ss:$8 sps:$4 sm:$0xff]   ;;  %v787_v3 = vld [vmem:[#allocation5 + $0x40] ss:$8 sps:$4 sm:$0xff]   ;;  %vm288_vm0 = vcmask 523264   ;;  %v519_v45 = vlaneseq }
  0x6b   : > { %966 = vsyncadd (%p1276_p8), [#allocation6], 4294964192  ;;  %324 = vmatprep.mubr.bf16.mxu0 %v994_v0  ;;  %408 = vmatprep.mubr.bf16.mxu1 %v994_v0  ;;  %v785_v2 = vld [vmem:[#allocation5 + $0x4] ss:$8 sps:$4 sm:$0xff]   ;;  %v788_v4 = vld [vmem:[#allocation5] ss:$8 sps:$4 sm:$0xff]  }
  0x6c   : > { %292 = vmatprep.subr.bf16.mxu0 %v783_v1  ;;  %376 = vmatprep.subr.bf16.mxu1 %v785_v2  ;;  %v789_v5 = vld [vmem:[#allocation5 + $0x54] ss:$8 sps:$4 sm:$0xff]   ;;  %v793_v7 = vld [vmem:[#allocation5 + $0x50] ss:$8 sps:$4 sm:$0xff]   ;;  %v795_v9 = vld [vmem:[#allocation5 + $0x64] ss:$8 sps:$4 sm:$0xff]  }
  0x6d   : > { %293 = vmatpush1.bf16.msra.mxu0 %v787_v3  ;;  %377 = vmatpush1.bf16.msra.mxu1 %v788_v4  ;;  %v791_v6 = vld [vmem:[#allocation5 + $0x14] ss:$8 sps:$4 sm:$0xff]   ;;  %v794_v8 = vld [vmem:[#allocation5 + $0x10] ss:$8 sps:$4 sm:$0xff]   ;;  %v797_v10 = vld [vmem:[#allocation5 + $0x24] ss:$8 sps:$4 sm:$0xff]  }
  0x6e   : > { %294 = vmatprep.subr.bf16.mxu0 %v789_v5  ;;  %378 = vmatprep.subr.bf16.mxu1 %v791_v6  ;;  %v799_v11 = vld [vmem:[#allocation5 + $0x60] ss:$8 sps:$4 sm:$0xff]   ;;  %v801_v13 = vld [vmem:[#allocation5 + $0x74] ss:$8 sps:$4 sm:$0xff]   ;;  %v217_v15 = vld [vmem:[%s1194_s30] sm:$0xf] }
  0x6f   : > { %v800_v12 = vld [vmem:[#allocation5 + $0x20] ss:$8 sps:$4 sm:$0xff]   ;;  %v803_v14 = vld [vmem:[#allocation5 + $0x34] ss:$8 sps:$4 sm:$0xff]   ;;  %v805_v17 = vld [vmem:[#allocation5 + $0x70] ss:$8 sps:$4 sm:$0xff]  }
  0x70   : > { %v226_v16 = vld [vmem:[%s1194_s30 + $0x4] sm:$0x1]  ;;  %v806_v18 = vld [vmem:[#allocation5 + $0x30] ss:$8 sps:$4 sm:$0xff]   ;;  %v810_v20 = vld [vmem:[#allocation5 + $0x84] ss:$8 sps:$4 sm:$0xff]  }
  0x71   : > { %295 = vmatpush1.bf16.msra.mxu0 %v793_v7  ;;  %379 = vmatpush1.bf16.msra.mxu1 %v794_v8  ;;  %v671_v19 = vcombine.low %v217_v15, %v226_v16  ;;  %v808_v24 = vld [vmem:[#allocation5 + $0x80] ss:$8 sps:$4 sm:$0xff]   ;;  %v813_v26 = vld [vmem:[#allocation5 + $0x94] ss:$8 sps:$4 sm:$0xff]   ;;  %v811_v27 = vld [vmem:[#allocation5 + $0x90] ss:$8 sps:$4 sm:$0xff]  }
  0x72   : > { %296 = vmatprep.subr.bf16.mxu0 %v795_v9  ;;  %380 = vmatprep.subr.bf16.mxu1 %v797_v10  ;;  %v816_v28 = vld [vmem:[#allocation5 + $0xa4] ss:$8 sps:$4 sm:$0xff]   ;;  %v814_v29 = vld [vmem:[#allocation5 + $0xa0] ss:$8 sps:$4 sm:$0xff]   ;;  %v417_v30 = vld [vmem:[%s1194_s30] sm:$0xe] }
  0x73   : > { %v242_v21 = vshrl.u32 %v671_v19, 16  ;;  %v244_v22 = vshll.u32 %v671_v19, 16  ;;  %v819_v31 = vld [vmem:[#allocation5 + $0xb4] ss:$8 sps:$4 sm:$0xff]   ;;  %v690_v32 = vcombine.low %v417_v30, %v226_v16  ;;  %v817_v33 = vld [vmem:[#allocation5 + $0xb0] ss:$8 sps:$4 sm:$0xff]  }
  0x74   : > { %v520_v46 = vshrl.u32 %v519_v45, 7  ;;  %v517_v48 = vld [vmem:[#allocation7] sm:$0x3]  ;;  %s710_s18 = sshll.u32 %s1037_s16, 7  ;;  %s215_s20 = scalar_lea.vmem [#allocation8], %s667_s22 }
  0x75   : > { %297 = vmatpush1.bf16.msra.mxu0 %v799_v11  ;;  %381 = vmatpush1.bf16.msra.mxu1 %v800_v12  ;;  %v246_v23 = vrot.slane %v244_v22, 1  ;;  %v430_v34 = vrot.slane %v690_v32, 1  ;;  %s569_s17 = sshll.u32 %s215_s20, 4  ;;  %s1216_s27 = scalar_lea.hbm %s1263_s3, %s710_s18  ;;  %s1218_s17 = int_to_ptr.vmem [resolvable:$true] %s569_s17 }
  0x76   : > { %298 = vmatprep.subr.bf16.mxu0 %v801_v13  ;;  %382 = vmatprep.subr.bf16.mxu1 %v803_v14  ;;  %v521_v47 = vsub.s32 0, %v520_v46  ;;  %v525_v49 = vsub.s32 1, %v520_v46  ;;  %s555_s23 = scalar_lea.sflag [#allocation4], %s1188_s28  ;;  %s915_s5 = scalar_lea.vmem %s1218_s17, 128 }
  0x77   : > { %v247_v25 = vor.u32 %v246_v23, %v242_v21  ;;  %p916_p11 = scmp.ne.s32.totalorder %s1218_s17, %s915_s5  ;;  %p1277_p0 = scmp.ne.s32.totalorder %s1272_s6, 0 }
  0x78   : > { %v522_v50 = vrot.slane %v517_v48, %v521_v47  ;;  %v526_v52 = vrot.slane %v517_v48, %v525_v49  ;;  %s995_s16 = smov [#allocation8]  }
  0x79   : > { %299 = vmatpush1.bf16.msra.mxu0 %v805_v17  ;;  %383 = vmatpush1.bf16.msra.mxu1 %v806_v18  ;;  %p917_p1 = pnand %p916_p11, %p1277_p0  ;;  %s919_s8 = sshll.u32 %s995_s16, 4  ;;  %s920_s8 = int_to_ptr.vmem [resolvable:$false] %s919_s8 }
  0x7a   : > { %474 = vmatprep.subr.bf16.mxu0 %v810_v20  ;;  %s921_s9 = scalar_lea.vmem %s920_s8, 256  ;;  %p922_p7 = scmp.lt.s32.totalorder %s1218_s17, %s920_s8 }
  0x7b   : > { %p918_p3 = pneg %p917_p1  ;;  %p923_p9 = scmp.lt.s32.totalorder %s921_s9, %s915_s5 }
  0x7c   : > { %689 = vmatmul.mubr.msk.bf16.vlgmr.msra.gmra.mrb[0].mxu1 %vm288_vm0, %v217_v15  ;;  %680 = vmatmul.mubr.msk.bf16.vlgmr.msra.gmra.mrb[0].mxu0 %vm288_vm0, %v247_v25 }
  0x7d   : > { %475 = vmatpush1.bf16.msra.mxu0 %v808_v24  ;;  %506 = vmatprep.mubr.bf16.mxu0 %v994_v0  ;;  %p924_p12 = por %p923_p9, %p922_p7 }
  0x7e   : > { %476 = vmatprep.subr.bf16.mxu0 %v813_v26 }
  0x7f   : > { %p925_p2 = pnand %p924_p12, %p918_p3 }
  0x81   : > { %477 = vmatpush1.bf16.msra.mxu0 %v811_v27 }
  0x82   : > { %478 = vmatprep.subr.bf16.mxu0 %v816_v28 }
  0x85   : > { %479 = vmatpush1.bf16.msra.mxu0 %v814_v29 }
  0x86   : > { %480 = vmatprep.subr.bf16.mxu0 %v819_v31 }
  0x89   : > { %481 = vmatpush1.bf16.msra.mxu0 %v817_v33 }
  0x8c   : > { %699 = vmatmul.mubr.msk.bf16.vlgmr.msra.gmra.mrb[4].mxu0 %vm288_vm0, %v430_v34 }
 0x14f   : > { %v410_v35 = vpop.f32.mrb[0].mxu1  ;;  %v326_v36 = vpop.f32.mrb[0].mxu0 }
 0x150   : > { %v412_v37 = vpop.f32.mrb[1].mxu1  ;;  %v411_v38 = vadd.f32 %v410_v35, %v326_v36  ;;  %v328_v39 = vpop.f32.mrb[1].mxu0 }
 0x151   : > { %v414_v40 = vpop.f32.mrb[2].mxu1  ;;  %v413_v41 = vadd.f32 %v412_v37, %v328_v39  ;;  %v330_v42 = vpop.f32.mrb[2].mxu0 }
 0x152   : > { %v415_v43 = vpop.f32.mrb[3].mxu1  ;;  %v331_v44 = vpop.f32.mrb[3].mxu0 }
 0x15f   : > { %v508_v51 = vpop.f32.mrb[4].mxu0 }
 0x160   : > { %v515_v53 = vadd.f32 %v508_v51, %v411_v38  ;;  %v510_v54 = vpop.f32.mrb[5].mxu0 }
 0x161   : > { %v516_v55 = vadd.f32 %v510_v54, %v413_v41  ;;  %v512_v56 = vpop.f32.mrb[6].mxu0 }
 0x162   : > { %v529_v57 = vadd.f32 %v522_v50, %v515_v53  ;;  %v513_v58 = vpop.f32.mrb[7].mxu0 }
 0x163   : > { %v530_v59 = vadd.f32 %v526_v52, %v516_v55 }
 0x164   : > { %v700_v60 = vmul.f32 -1.442695, %v529_v57 }
 0x165   : > { %v701_v61 = vmul.f32 -1.442695, %v530_v59 }
 0x166   : > { %821 = vpow2.f32 %v700_v60 }
 0x167   : > { %823 = vpow2.f32 %v701_v61 }
 0x170   : > { %v822_v62 = vpop.eup %821 }
 0x171   : > { %v824_v63 = vpop.eup %823  ;;  %v537_v0 = vadd.f32 1.0, %v822_v62 }
 0x172   : > { %v538_v1 = vadd.f32 1.0, %v824_v63 }
 0x173   : > { %825 = vrcp.f32 %v537_v0 }
 0x174   : > { %827 = vrcp.f32 %v538_v1 }
 0x17d   : > { %v826_v2 = vpop.eup %825 }
 0x17e   : > { %v828_v3 = vpop.eup %827  ;;  %v543_v4 = vmul.f32 %v826_v2, %v529_v57 }
 0x17f   : > { %v544_v5 = vmul.f32 %v828_v3, %v530_v59 }
 0x181   : > { %v709_v6 = vpack.c.bf16 %v544_v5, %v543_v4 }
 0x183   : > { %553 = vst [vmem:[%s215_s20] sm:$0xff] %v709_v6 }
 0x184   : > { %928 = shalt.err (!%p925_p2)
}
 0x185   : > { %s929_s25 = scalar_lea.hbm %s1216_s27, 128  ;;  %s933_s21 = scalar_lea.hbm %s1263_s3, 256 }
 0x186   : > { %p930_p13 = scmp.ne.s32.totalorder %s1216_s27, %s929_s25  ;;  %p934_p4 = scmp.lt.u32.totalorder %s1216_s27, %s1263_s3 }
 0x187   : > { %p935_p5 = scmp.lt.u32.totalorder %s933_s21, %s929_s25  ;;  %p937_p11 = scmp.lt.u32.totalorder %s929_s25, %s1216_s27 }
 0x188   : > { %p931_p6 = pnand %p930_p13, %p1277_p0 }
 0x189   : > { %p936_p8 = por %p935_p5, %p934_p4 }
 0x18a   : > { %p932_p10 = pneg %p931_p6 }
 0x18b   : > { %p938_p1 = por %p937_p11, %p936_p8 }
 0x18d   : > { %p939_p3 = pnand %p938_p1, %p932_p10 }
 0x18f   : > { %942 = shalt.err (!%p939_p3)
}
 0x190   : > { %721 = dma.vmem_to_hbm [thread:$0]  (%p1277_p0), %s1218_s17, 128, %s1216_s27, %s555_s23  }
 0x191 PF: > { %s581_s29 = sand.u32 1, %s973_s12   ;;  %p1278_p7 = scmp.ne.s32.totalorder %s1268_s19, 0 }
 0x192   : > { %p1279_p9 = scmp.ge.s32.totalorder %s985_s15, 2  ;;  %s582_s30 = scalar_lea.sflag [#allocation4], %s581_s29 }
 0x194   : > { %p735_p12 = pnand %p1279_p9, %p1278_p7 }
 0x196   : > { %968 = dma.done.wait (!%p735_p12), %s582_s30, 128  }
 0x197   : > { %970 = vsyncadd (!%p735_p12), %s582_s30, 4294967168  ;;  %p17_p2 = scmp.ge.s32.totalorder %s1126_s4, 4   ;;  %s1280_s12 = smov %s977_s13 }
 0x198   : > { %s1281_s13 = smov %s981_s14  ;;  %s1282_s14 = smov %s1142_s7 }
 0x199   : > { %s1283_s15 = smov %s1126_s4  ;;  %19 = sbr.rel (!%p17_p2) target bundleno = 6 (0x6), region = 87 }
 0x1a0   :  { %587 = vsyncpa [#allocation3], 1 }
 0x1a1   :  { %589 = vsyncpa [#allocation3 + $0x1], 1 }
 0x1a2   :  { %590 = vsyncpa [#allocation6], 1 }
 0x1a3   :  { %591 = vsyncpa [#allocation4], 1 }
 0x1a4   :  { %593 = vsyncpa [#allocation4 + $0x1], 1 }

// kernel: generator1_forward.25
= control target key start
LH: loop header
LB: loop body
LE: loop exit
PB: predicated region body
PF: predicated region fallthrough
CT: control target
= control target key end

     0   :  { %8 = vsyncpa [#allocation3], 0  ;;  %s2509_s0 = inlined_call_operand.hbm [shape: bf16[2,24,128], index: 0, kind: input, shape index: {}]   ;;  %s2510_s1 = inlined_call_operand.hbm [shape: bf16[9,128,48], index: 1, kind: input, shape index: {}]   ;;  %s2511_s2 = inlined_call_operand.hbm [shape: f32[1,48], index: 2, kind: input, shape index: {}]   ;;  %s2512_s3 = inlined_call_operand.hbm [shape: f32[2,16,48], index: 3, kind: output, shape index: {}]  }
   0x1   :  { %10 = vsyncpa [#allocation3 + $0x1], 0 }
   0x2   :  { %11 = vsyncpa [#allocation6], 0 }
   0x3   :  { %12 = vsyncpa [#allocation4], 0 }
   0x4   :  { %14 = vsyncpa [#allocation4 + $0x1], 0  ;;  %s2139_s12 = smov 0   ;;  %s2141_s13 = smov 0  }
   0x5   :  { %s2143_s14 = smov 0   ;;  %s2145_s15 = smov 0  }
   0x6 LB: > { %s2160_s16 = sadd.s32 4294967295, %s2107_s15   ;;  %s1433_s17 = sadd.s32 4294967294, %s2107_s15   ;;  %s2107_s15 = sphi %s2145_s15, %s2532_s15   ;;  %s2103_s14 = sphi %s2143_s14, %s2531_s14   ;;  %s2099_s13 = sphi %s2141_s13, %s2530_s13   ;;  %s2095_s12 = sphi %s2139_s12, %s2529_s12  }
   0x7   : > { %p40_p0 = scmp.ne.s32.totalorder %s2099_s13, %s2095_s12  ;;  %p2513_p1 = scmp.eq.s32.totalorder %s2160_s16, 0 }
   0x8   : > { %p112_p3 = scmp.eq.s32.totalorder %s1433_s17, 1  ;;  %p1434_p5 = scmp.ge.s32.totalorder %s2107_s15, 1 }
   0x9   : > { %p2169_p4 = por %p2513_p1, %p40_p0  ;;  %p119_p7 = scmp.lt.s32.totalorder %s2107_s15, 3 }
   0xa   : > { %p2174_p6 = por %p112_p3, %p40_p0  ;;  %s2109_s21 = smov [#allocation5]  }
   0xb   : > { %s2516_s18 = scalar_select %p2169_p4, 1, 0 }
   0xc   : > { %s2517_s19 = scalar_select %p2174_p6, 1, 0 }
   0xd   : > { %p2179_p8 = pnand %p1434_p5, %p119_p7  ;;  %s131_s22 = sshll.u32 %s2109_s21, 4  ;;  %s2183_s22 = int_to_ptr.vmem [resolvable:$true] %s131_s22 }
   0xe   : > { %s2110_s24 = smov [#allocation7]   ;;  %s1951_s28 = scalar_lea.hbm %s2510_s1, 9216 }
   0xf   : > { %p1808_p9 = pneg %p2179_p8  ;;  %s145_s25 = sshll.u32 %s2110_s24, 4  ;;  %s2194_s25 = int_to_ptr.vmem [resolvable:$true] %s145_s25 }
  0x10   : > { %p1952_p12 = scmp.ne.s32.totalorder %s2510_s1, %s1951_s28  ;;  %p1958_p5 = scmp.lt.u32.totalorder %s1951_s28, %s2510_s1 }
  0x11   : > { %p2190_p11 = pnand %p1808_p9, %p2513_p1 }
  0x13   : > { %p1953_p13 = pneg %p2190_p11 }
  0x15   : > { %p1954_p0 = pnand %p1953_p13, %p1952_p12 }
  0x17   : > { %p1955_p3 = pneg %p1954_p0 }
  0x19   : > { %p1960_p7 = pnand %p1958_p5, %p1955_p3 }
  0x1b   : > { %1963 = shalt.err (!%p1960_p7)
}
  0x1c   : > { %s1964_s6 = scalar_lea.vmem %s2183_s22, 9216  ;;  %p1972_p2 = scmp.lt.s32.totalorder %s2183_s22, %s2183_s22 }
  0x1d   : > { %p1965_p9 = scmp.ne.s32.totalorder %s2183_s22, %s1964_s6  ;;  %p1973_p12 = scmp.lt.s32.totalorder %s1964_s6, %s1964_s6 }
  0x1f   : > { %p1967_p10 = pnand %p1965_p9, %p1953_p13  ;;  %p1974_p0 = por %p1973_p12, %p1972_p2 }
  0x21   : > { %p1968_p1 = pneg %p1967_p10 }
  0x23   : > { %p1975_p6 = pnand %p1974_p0, %p1968_p1 }
  0x25   : > { %1978 = shalt.err (!%p1975_p6)
}
  0x26   : > { %s2111_s7 = smov 64   ;;  %s2112_s8 = smov 4  }
  0x27   : > { %1811 = dma.hbm_to_vmem [thread:$0]  (!%p2190_p11), %s2510_s1, 9216, %s2183_s22, [#allocation6], %s2111_s7, %s2111_s7, %s2112_s8  }
  0x28   : > { %s1979_s21 = scalar_lea.hbm %s2511_s2, 16 }
  0x29   : > { %p1980_p1 = scmp.ne.s32.totalorder %s2511_s2, %s1979_s21  ;;  %p1986_p10 = scmp.lt.u32.totalorder %s1979_s21, %s2511_s2 }
  0x2b   : > { %p1982_p2 = pnand %p1980_p1, %p1953_p13 }
  0x2d   : > { %p1983_p6 = pneg %p1982_p2 }
  0x2f   : > { %p1988_p3 = pnand %p1986_p10, %p1983_p6 }
  0x31   : > { %1991 = shalt.err (!%p1988_p3)
}
  0x32   : > { %s1992_s22 = scalar_lea.vmem %s2194_s25, 16  ;;  %s1999_s29 = scalar_lea.vmem %s2194_s25, 32 }
  0x33   : > { %p1993_p5 = scmp.ne.s32.totalorder %s2194_s25, %s1992_s22  ;;  %p2000_p12 = scmp.lt.s32.totalorder %s2194_s25, %s2194_s25 }
  0x34   : > { %p2001_p0 = scmp.lt.s32.totalorder %s1999_s29, %s1992_s22 }
  0x35   : > { %p1995_p7 = pnand %p1993_p5, %p1953_p13 }
  0x36   : > { %p2002_p1 = por %p2001_p0, %p2000_p12 }
  0x37   : > { %p1996_p9 = pneg %p1995_p7 }
  0x39   : > { %p2003_p2 = pnand %p2002_p1, %p1996_p9 }
  0x3b   : > { %2006 = shalt.err (!%p2003_p2)
}
  0x3c   : > { %1814 = dma.hbm_to_vmem [thread:$0]  (!%p2190_p11), %s2511_s2, 16, %s2194_s25, [#allocation6]  }
  0x3d   : > { %s2253_s5 = sadd.s32 1, %s2107_s15   ;;  %s27_s23 = sadd.s32 1, %s2103_s14 }
  0x3e   : > { %s24_s6 = ssub.s32 %s2107_s15, %s2253_s5  ;;  %p34_p13 = scmp.ne.s32.totalorder %s2103_s14, %s2099_s13 }
  0x3f   : > { %p25_p6 = scmp.eq.s32.totalorder %s24_s6, 0  ;;  %p35_p10 = scmp.eq.s32.totalorder %s2107_s15, 0 }
  0x40   : > { %p2520_p3 = scmp.eq.s32.totalorder %s2160_s16, 1  ;;  %p1825_p7 = scmp.lt.s32.totalorder %s2107_s15, 2 }
  0x41   : > { %s2269_s10 = scalar_select %p25_p6, %s2103_s14, %s27_s23  }
  0x42   : > { %p2263_p5 = por %p2520_p3, %p34_p13  ;;  %p36_p9 = por %p35_p10, %p34_p13 }
  0x43   : > { %s156_s11 = sand.u32 1, %s2103_s14   ;;  %s1794_s25 = smul.u32 192, %s2107_s15 }
  0x44   : > { %s2521_s9 = scalar_select %p2263_p5, 1, 0 }
  0x45   : > { %s1793_s17 = smul.u32 12, %s156_s11  ;;  %p2273_p11 = pnand %p1825_p7, %p36_p9 }
  0x46   : > { %s2280_s27 = scalar_lea.hbm %s2509_s0, %s1794_s25  ;;  %s2284_s29 = scalar_lea.sflag [#allocation3], %s156_s11 }
  0x47   : > { %s160_s28 = scalar_lea.vmem [#allocation2], %s1793_s17  ;;  %s2007_s30 = scalar_lea.hbm %s2280_s27, 192 }
  0x48   : > { %s167_s22 = sshll.u32 %s160_s28, 4  ;;  %p2008_p12 = scmp.ne.s32.totalorder %s2280_s27, %s2007_s30  ;;  %s2282_s22 = int_to_ptr.vmem [resolvable:$true] %s167_s22 }
  0x49   : > { %p2009_p0 = pneg %p2273_p11  ;;  %s2012_s6 = scalar_lea.hbm %s2509_s0, 384 }
  0x4a   : > { %p2013_p13 = scmp.lt.u32.totalorder %s2280_s27, %s2509_s0  ;;  %p2014_p6 = scmp.lt.u32.totalorder %s2012_s6, %s2007_s30 }
  0x4b   : > { %p2010_p1 = pnand %p2009_p0, %p2008_p12  ;;  %p2016_p3 = scmp.lt.u32.totalorder %s2007_s30, %s2280_s27 }
  0x4c   : > { %p2015_p10 = por %p2014_p6, %p2013_p13 }
  0x4d   : > { %p2011_p2 = pneg %p2010_p1 }
  0x4e   : > { %p2017_p7 = por %p2016_p3, %p2015_p10 }
  0x50   : > { %p2018_p9 = pnand %p2017_p7, %p2011_p2 }
  0x52   : > { %2021 = shalt.err (!%p2018_p9)
}
  0x53   : > { %s2022_s11 = scalar_lea.vmem %s2282_s22, 192  ;;  %s2113_s17 = smov [#allocation2]  }
  0x54   : > { %p2023_p12 = scmp.ne.s32.totalorder %s2282_s22, %s2022_s11  ;;  %s2027_s26 = sshll.u32 %s2113_s17, 4  ;;  %s2028_s26 = int_to_ptr.vmem [resolvable:$false] %s2027_s26 }
  0x55   : > { %s2029_s28 = scalar_lea.vmem %s2028_s26, 384  ;;  %p2030_p4 = scmp.lt.s32.totalorder %s2282_s22, %s2028_s26 }
  0x56   : > { %p2025_p1 = pnand %p2023_p12, %p2009_p0  ;;  %p2031_p13 = scmp.lt.s32.totalorder %s2029_s28, %s2022_s11 }
  0x58   : > { %p2026_p5 = pneg %p2025_p1  ;;  %p2032_p6 = por %p2031_p13, %p2030_p4 }
  0x5a   : > { %p2033_p10 = pnand %p2032_p6, %p2026_p5 }
  0x5c   : > { %2036 = shalt.err (!%p2033_p10)
}
  0x5d   : > { %1818 = dma.hbm_to_vmem [thread:$0]  (!%p2273_p11), %s2280_s27, 192, %s2282_s22, %s2284_s29, %s2111_s7, %s2111_s7, %s2112_s8  }
  0x5e   : > { %179 = sbr.rel (%p2179_p8) target bundleno = 500 (0x1f4), region = 32  ;;  %s2318_s30 = sand.u32 (!%p2179_p8), 1, %s2099_s13  }
  0x5f   : > { %s1795_s4 = smul.u32 (!%p2179_p8), 12, %s2318_s30  ;;  %s182_s23 = scalar_lea.sflag (!%p2179_p8), [#allocation3], %s2318_s30 }
  0x60   : > { %p2523_p4 = scmp.ne.s32.totalorder (!%p2179_p8), %s2516_s18, 0 }
  0x61   : > { %s2322_s6 = scalar_lea.vmem (!%p2179_p8), [#allocation2], %s1795_s4 }
  0x65   : > { %2082 = dma.done.wait (%p2523_p4), %s182_s23, 192  }
  0x66   : > { %2084 = vsyncadd (%p2523_p4), %s182_s23, 4294967104  ;;  %p2524_p5 = scmp.eq.s32.totalorder %s2160_s16, 0 }
  0x68   : > { %2086 = dma.done.wait (%p2524_p5), [#allocation6], 9232   ;;  %p2525_p8 = pmov %p2524_p5 }
  0x69   : > { %v2114_v0 = vmov 0.0   ;;  %vm2115_vm0 = vmmov 0   ;;  %v1869_v1 = vld [vmem:[#allocation5 + $0x40] sm:$0xff]   ;;  %v1871_v3 = vld [vmem:[#allocation5 + $0x48] sm:$0xff]   ;;  %v1873_v5 = vld [vmem:[#allocation5 + $0x50] sm:$0xff]   ;;  %vm482_vm2 = vcmask 1046528  }
  0x6a   : > { %2088 = vsyncadd (%p2525_p8), [#allocation6], 4294958064  ;;  %1613 = vmatprep.subr.bf16.mxu0 %v2114_v0  ;;  %1633 = vmatprep.subr.bf16.mxu1 %v2114_v0  ;;  %v1870_v2 = vld [vmem:[#allocation5] sm:$0xff]   ;;  %v1872_v4 = vld [vmem:[#allocation5 + $0x8] sm:$0xff]   ;;  %vm263_vm1 = vsmask.f32 7424 }
  0x6b   : > { %1629 = vmatprep.mubr.msk.bf16.mxu0 %vm2115_vm0, %v2114_v0  ;;  %1649 = vmatprep.mubr.msk.bf16.mxu1 %vm2115_vm0, %v2114_v0  ;;  %v1874_v6 = vld [vmem:[#allocation5 + $0x10] sm:$0xff]   ;;  %v1875_v7 = vld [vmem:[#allocation5 + $0x58] sm:$0xff]   ;;  %v1877_v9 = vld [vmem:[#allocation5 + $0x60] sm:$0xff]   ;;  %vm599_vm3 = vsmask.f32 6400  ;;  %vm730_vm4 = vcmask 1045504  }
  0x6c   : > { %1614 = vmatpush3.bf16.msra.mxu0 %v1869_v1  ;;  %1634 = vmatpush3.bf16.msra.mxu1 %v1870_v2  ;;  %v1876_v8 = vld [vmem:[#allocation5 + $0x18] sm:$0xff]   ;;  %v1878_v10 = vld [vmem:[#allocation5 + $0x20] sm:$0xff]   ;;  %v235_v11 = vld [vmem:[%s2322_s6] sm:$0xf]  ;;  %vm847_vm5 = vsmask.f32 5376 }
  0x6d   : > { %1615 = vmatprep.subr.bf16.mxu0 %v2114_v0  ;;  %1635 = vmatprep.subr.bf16.mxu1 %v2114_v0  ;;  %v2348_v12 = vld [vmem:[%s2322_s6 + $0x4] sm:$0xf]  ;;  %v2352_v15 = vld [vmem:[%s2322_s6 + $0x8] ss:$0 sps:$4 sm:$0x11]   ;;  %v1888_v29 = vld [vmem:[#allocation5 + $0x80] sm:$0xff]  }
  0x6e   : > { %v1879_v13 = vld [vmem:[#allocation5 + $0x68] sm:$0xff]   ;;  %v1443_v14 = vcombine.low %v235_v11, %v2348_v12  ;;  %v1881_v18 = vld [vmem:[#allocation5 + $0x70] sm:$0xff]   ;;  %v272_v21 = vshll.u32 %v2352_v15, 16  ;;  %v1883_v23 = vld [vmem:[#allocation5 + $0x78] sm:$0xff]   ;;  %v484_v57 = vrot.slane %v2352_v15, 1  ;;  %vm978_vm6 = vcmask 1044480  }
  0x6f   : > { %v1880_v16 = vld [vmem:[#allocation5 + $0x28] sm:$0xff]   ;;  %v1882_v22 = vld [vmem:[#allocation5 + $0x30] sm:$0xff]   ;;  %v1884_v26 = vld [vmem:[#allocation5 + $0x38] sm:$0xff]   ;;  %vm1095_vm7 = vsmask.f32 4352  ;;  %s1442_s18 = sshll.u32 %s2318_s30, 4 }
  0x70   : > { %1616 = vmatpush3.bf16.msra.mxu0 %v1871_v3  ;;  %1636 = vmatpush3.bf16.msra.mxu1 %v1872_v4  ;;  %v267_v17 = vshll.u32 %v1443_v14, 16  ;;  %v265_v19 = vshrl.u32 %v1443_v14, 16  ;;  %v274_v25 = vrot.slane %v272_v21, 1  ;;  %v1887_v27 = vld [vmem:[%s2322_s6] sm:$0xff]   ;;  %v1889_v30 = vld [vmem:[#allocation5 + $0xc0] sm:$0xff]   ;;  %s1531_s20 = sshll.u32 %s2160_s16, 8 }
  0x71   : > { %1617 = vmatprep.subr.bf16.mxu0 %v2114_v0  ;;  %1637 = vmatprep.subr.bf16.mxu1 %v2114_v0  ;;  %v1890_v31 = vld [vmem:[#allocation5 + $0x88] sm:$0xff]   ;;  %v1892_v33 = vld [vmem:[#allocation5 + $0x90] sm:$0xff]   ;;  %v1894_v35 = vld [vmem:[#allocation5 + $0x98] sm:$0xff]   ;;  %s215_s7 = scalar_lea.vmem [#allocation8], %s1442_s18  ;;  %vm1324_vm8 = vcmask 392192   ;;  %s2463_s22 = scalar_lea.hbm %s2512_s3, %s1531_s20 }
  0x72   : > { %v269_v20 = vrot.slane %v267_v17, 1  ;;  %v1891_v32 = vld [vmem:[#allocation5 + $0xc8] sm:$0xff]   ;;  %v1893_v34 = vld [vmem:[#allocation5 + $0xd0] sm:$0xff]   ;;  %v1895_v36 = vld [vmem:[#allocation5 + $0xd8] sm:$0xff]   ;;  %s1341_s8 = sshll.u32 %s215_s7, 4  ;;  %s1328_s16 = scalar_lea.sflag [#allocation4], %s2318_s30  ;;  %s2465_s8 = int_to_ptr.vmem [resolvable:$true] %s1341_s8 }
  0x73   : > { %v461_v37 = vld [vmem:[%s2322_s6] sm:$0xe]  ;;  %v2376_v38 = vld [vmem:[%s2322_s6 + $0x8] ss:$0 sps:$4 sm:$0x33]   ;;  %v1896_v39 = vld [vmem:[#allocation5 + $0xa0] sm:$0xff]  }
  0x74   : > { %1618 = vmatpush3.bf16.msra.mxu0 %v1873_v5  ;;  %1638 = vmatpush3.bf16.msra.mxu1 %v1874_v6  ;;  %v270_v24 = vor.u32 %v269_v20, %v265_v19  ;;  %v1462_v40 = vcombine.low %v461_v37, %v2348_v12  ;;  %v1897_v41 = vld [vmem:[#allocation5 + $0xe0] sm:$0xff]   ;;  %v1898_v42 = vld [vmem:[#allocation5 + $0xa8] sm:$0xff]   ;;  %v609_v46 = vshrl.u32 %v2376_v38, 16  ;;  %v612_v47 = vshll.u32 %v2376_v38, 16  ;;  %v1900_v48 = vld [vmem:[#allocation5 + $0xb0] sm:$0xff]   ;;  %s2037_s29 = scalar_lea.vmem %s2465_s8, 256 }
  0x75   : > { %1619 = vmatprep.subr.bf16.mxu0 %v2114_v0  ;;  %1639 = vmatprep.subr.bf16.mxu1 %v2114_v0  ;;  %v1899_v43 = vld [vmem:[#allocation5 + $0xe8] sm:$0xff]   ;;  %v1901_v49 = vld [vmem:[#allocation5 + $0xf0] sm:$0xff]   ;;  %v1902_v54 = vld [vmem:[#allocation5 + $0xb8] sm:$0xff]   ;;  %p2038_p11 = scmp.ne.s32.totalorder %s2465_s8, %s2037_s29  ;;  %p2526_p0 = scmp.ne.s32.totalorder %s2521_s9, 0 }
  0x76   : > { %v275_v28 = vsel %vm263_vm1, %v270_v24, %v274_v25  ;;  %v601_v44 = vshrl.u32 %v1462_v40, 16  ;;  %v604_v45 = vshll.u32 %v1462_v40, 16  ;;  %v611_v52 = vrot.slane %v609_v46, 1  ;;  %v1903_v55 = vld [vmem:[#allocation5 + $0xf8] sm:$0xff]   ;;  %v1905_v61 = vld [vmem:[#allocation5 + $0x100] sm:$0xff]   ;;  %v1908_v1 = vld [vmem:[#allocation5 + $0x108] sm:$0xff]  }
  0x77   : > { %v614_v53 = vrot.slane %v612_v47, 2  ;;  %v483_v56 = vrot.slane %v1462_v40, 1  ;;  %v1907_v63 = vld [vmem:[#allocation5 + $0x140] sm:$0xff]   ;;  %v1909_v2 = vld [vmem:[#allocation5 + $0x148] sm:$0xff]   ;;  %v1910_v3 = vld [vmem:[#allocation5 + $0x110] sm:$0xff]   ;;  %p2039_p2 = pnand %p2038_p11, %p2526_p0  ;;  %s2116_s25 = smov [#allocation8]  }
  0x78   : > { %1620 = vmatpush3.bf16.msra.mxu0 %v1875_v7  ;;  %1640 = vmatpush3.bf16.msra.mxu1 %v1876_v8  ;;  %v603_v50 = vrot.slane %v601_v44, 1  ;;  %v606_v51 = vrot.slane %v604_v45, 2  ;;  %v1911_v4 = vld [vmem:[#allocation5 + $0x150] sm:$0xff]   ;;  %v1912_v5 = vld [vmem:[#allocation5 + $0x118] sm:$0xff]   ;;  %v1914_v8 = vld [vmem:[#allocation5 + $0x120] sm:$0xff]   ;;  %s2041_s24 = sshll.u32 %s2116_s25, 4  ;;  %s2042_s24 = int_to_ptr.vmem [resolvable:$false] %s2041_s24 }
  0x79   : > { %1621 = vmatprep.subr.bf16.mxu0 %v2114_v0  ;;  %1641 = vmatprep.subr.bf16.mxu1 %v2114_v0  ;;  %v615_v59 = vor.u32 %v614_v53, %v611_v52  ;;  %v485_v60 = vsel %vm482_vm2, %v483_v56, %v484_v57  ;;  %v1913_v6 = vld [vmem:[#allocation5 + $0x158] sm:$0xff]   ;;  %v709_v7 = vld [vmem:[%s2322_s6] sm:$0xc]  ;;  %v1933_v44 = vld [vmem:[#allocation5 + $0x1e0] sm:$0xff]   ;;  %p2040_p3 = pneg %p2039_p2  ;;  %s2043_s11 = scalar_lea.vmem %s2042_s24, 512 }
  0x7a   : > { %v607_v58 = vor.u32 %v606_v51, %v603_v50  ;;  %v1480_v11 = vcombine.low %v709_v7, %v2348_v12  ;;  %v1917_v14 = vld [vmem:[#allocation5 + $0x168] sm:$0xff]   ;;  %v1918_v19 = vld [vmem:[#allocation5 + $0x130] sm:$0xff]   ;;  %v1920_v25 = vld [vmem:[#allocation5 + $0x138] sm:$0xff]   ;;  %p2044_p7 = scmp.lt.s32.totalorder %s2465_s8, %s2042_s24  ;;  %p2045_p9 = scmp.lt.s32.totalorder %s2043_s11, %s2037_s29 }
  0x7b   : > { %v1919_v20 = vld [vmem:[#allocation5 + $0x170] sm:$0xff]   ;;  %v1931_v40 = vld [vmem:[#allocation5 + $0x1d8] sm:$0xff]   ;;  %v1934_v47 = vld [vmem:[#allocation5 + $0x1a8] sm:$0xff]  }
  0x7c   : > { %1622 = vmatpush3.bf16.msra.mxu0 %v1877_v9  ;;  %1642 = vmatpush3.bf16.msra.mxu1 %v1878_v10  ;;  %v616_v62 = vsel %vm599_vm3, %v607_v58, %v615_v59  ;;  %v2404_v9 = vld [vmem:[%s2322_s6 + $0x8] ss:$0 sps:$4 sm:$0x77]   ;;  %v1915_v10 = vld [vmem:[#allocation5 + $0x160] sm:$0xff]   ;;  %v849_v15 = vshrl.u32 %v1480_v11, 16  ;;  %p2046_p12 = por %p2045_p9, %p2044_p7 }
  0x7d   : > { %1623 = vmatprep.subr.bf16.mxu0 %v2114_v0  ;;  %1643 = vmatprep.subr.bf16.mxu1 %v2114_v0  ;;  %v857_v17 = vshrl.u32 %v2404_v9, 16  ;;  %v1928_v37 = vld [vmem:[#allocation5 + $0x190] sm:$0xff]   ;;  %v1938_v59 = vld [vmem:[#allocation5 + $0x1b8] sm:$0xff]  }
  0x7e   : > { %v851_v21 = vrot.slane %v849_v15, 2  ;;  %v1936_v53 = vld [vmem:[#allocation5 + $0x1b0] sm:$0xff]   ;;  %v1945_v7 = vld [vmem:[#allocation5 + $0x218] sm:$0xff]   ;;  %p2047_p1 = pnand %p2046_p12, %p2040_p3 }
  0x80   : > { %1624 = vmatpush3.bf16.msra.mxu0 %v1879_v13  ;;  %1644 = vmatpush3.bf16.msra.mxu1 %v1880_v16  ;;  %v1916_v13 = vld [vmem:[#allocation5 + $0x128] sm:$0xff]   ;;  %v852_v16 = vshll.u32 %v1480_v11, 16 }
  0x81   : > { %1625 = vmatprep.subr.bf16.mxu0 %v2114_v0  ;;  %1645 = vmatprep.subr.bf16.mxu1 %v2114_v0 }
  0x84   : > { %1626 = vmatpush3.bf16.msra.mxu0 %v1881_v18  ;;  %1646 = vmatpush3.bf16.msra.mxu1 %v1882_v22  ;;  %v860_v18 = vshll.u32 %v2404_v9, 16  ;;  %v854_v22 = vrot.slane %v852_v16, 3 }
  0x85   : > { %1627 = vmatprep.subr.bf16.mxu0 %v2114_v0  ;;  %1647 = vmatprep.subr.bf16.mxu1 %v2114_v0 }
  0x86   : > { %v862_v24 = vrot.slane %v860_v18, 3 }
  0x88   : > { %1628 = vmatpush3.bf16.msra.mxu0 %v1883_v23  ;;  %1648 = vmatpush3.bf16.msra.mxu1 %v1884_v26  ;;  %v859_v23 = vrot.slane %v857_v17, 2  ;;  %v731_v26 = vrot.slane %v1480_v11, 2  ;;  %v1949_v11 = vld [vmem:[#allocation5 + $0x238] sm:$0xff]  }
  0x89   : > { %1653 = vmatprep.subr.bf16.mxu0 %v2114_v0  ;;  %1673 = vmatprep.subr.bf16.mxu1 %v2114_v0 }
  0x8b   : > { %1630 = vmatmul.mubr.bf16.vlgmr.msra.gmra.mrb[0].mxu0 %v275_v28  ;;  %1650 = vmatmul.mubr.bf16.vlgmr.msra.gmra.mrb[0].mxu1 %v1887_v27  ;;  %v732_v27 = vrot.slane %v2376_v38, 2  ;;  %v1921_v28 = vld [vmem:[#allocation5 + $0x178] sm:$0xff]   ;;  %v1929_v38 = vld [vmem:[#allocation5 + $0x1d0] sm:$0xff]  }
  0x8c   : > { %1654 = vmatpush3.bf16.msra.mxu0 %v1888_v29  ;;  %1674 = vmatpush3.bf16.msra.mxu1 %v1889_v30  ;;  %v855_v29 = vor.u32 %v854_v22, %v851_v21  ;;  %v863_v30 = vor.u32 %v862_v24, %v859_v23 }
  0x8d   : > { %1655 = vmatprep.subr.bf16.mxu0 %v2114_v0  ;;  %1675 = vmatprep.subr.bf16.mxu1 %v2114_v0 }
  0x8e   : > { %1669 = vmatprep.mubr.msk.bf16.mxu0 %vm2115_vm0, %v2114_v0  ;;  %1689 = vmatprep.mubr.msk.bf16.mxu1 %vm2115_vm0, %v2114_v0 }
  0x90   : > { %1656 = vmatpush3.bf16.msra.mxu0 %v1890_v31  ;;  %1676 = vmatpush3.bf16.msra.mxu1 %v1891_v32  ;;  %v733_v31 = vsel %vm730_vm4, %v731_v26, %v732_v27  ;;  %v1923_v32 = vld [vmem:[#allocation5 + $0x180] sm:$0xff]  }
  0x91   : > { %1657 = vmatprep.subr.bf16.mxu0 %v2114_v0  ;;  %1677 = vmatprep.subr.bf16.mxu1 %v2114_v0 }
  0x94   : > { %1658 = vmatpush3.bf16.msra.mxu0 %v1892_v33  ;;  %1678 = vmatpush3.bf16.msra.mxu1 %v1893_v34  ;;  %v864_v33 = vsel %vm847_vm5, %v855_v29, %v863_v30  ;;  %v1925_v34 = vld [vmem:[#allocation5 + $0x1c0] sm:$0xff]  }
  0x95   : > { %1659 = vmatprep.subr.bf16.mxu0 %v2114_v0  ;;  %1679 = vmatprep.subr.bf16.mxu1 %v2114_v0 }
  0x98   : > { %1660 = vmatpush3.bf16.msra.mxu0 %v1894_v35  ;;  %1680 = vmatpush3.bf16.msra.mxu1 %v1895_v36  ;;  %v1926_v35 = vld [vmem:[#allocation5 + $0x188] sm:$0xff]  }
  0x99   : > { %1661 = vmatprep.subr.bf16.mxu0 %v2114_v0  ;;  %1681 = vmatprep.subr.bf16.mxu1 %v2114_v0  ;;  %v1927_v36 = vld [vmem:[#allocation5 + $0x1c8] sm:$0xff]  }
  0x9c   : > { %1662 = vmatpush3.bf16.msra.mxu0 %v1896_v39  ;;  %1682 = vmatpush3.bf16.msra.mxu1 %v1897_v41  ;;  %v1930_v39 = vld [vmem:[#allocation5 + $0x198] sm:$0xff]   ;;  %v957_v41 = vld [vmem:[%s2322_s6] sm:$0x8] }
  0x9d   : > { %1663 = vmatprep.subr.bf16.mxu0 %v2114_v0  ;;  %1683 = vmatprep.subr.bf16.mxu1 %v2114_v0  ;;  %v1498_v45 = vcombine.low %v957_v41, %v2348_v12 }
  0x9f   : > { %v1100_v50 = vshll.u32 %v1498_v45, 16 }
  0xa0   : > { %1664 = vmatpush3.bf16.msra.mxu0 %v1898_v42  ;;  %1684 = vmatpush3.bf16.msra.mxu1 %v1899_v43  ;;  %v2432_v42 = vld [vmem:[%s2322_s6 + $0x8] sm:$0xf]  ;;  %v1932_v43 = vld [vmem:[#allocation5 + $0x1a0] sm:$0xff]  }
  0xa1   : > { %1665 = vmatprep.subr.bf16.mxu0 %v2114_v0  ;;  %1685 = vmatprep.subr.bf16.mxu1 %v2114_v0  ;;  %v1507_v46 = vcombine.low %v2432_v42, %v2432_v42  ;;  %v1102_v56 = vrot.slane %v1100_v50, 4 }
  0xa3   : > { %v1105_v51 = vshrl.u32 %v1507_v46, 16  ;;  %v1108_v52 = vshll.u32 %v1507_v46, 16 }
  0xa4   : > { %1666 = vmatpush3.bf16.msra.mxu0 %v1900_v48  ;;  %1686 = vmatpush3.bf16.msra.mxu1 %v1901_v49  ;;  %v1935_v48 = vld [vmem:[#allocation5 + $0x1e8] sm:$0xff]   ;;  %v1097_v49 = vshrl.u32 %v1498_v45, 16 }
  0xa5   : > { %1667 = vmatprep.subr.bf16.mxu0 %v2114_v0  ;;  %1687 = vmatprep.subr.bf16.mxu1 %v2114_v0  ;;  %v1107_v57 = vrot.slane %v1105_v51, 3  ;;  %v1110_v58 = vrot.slane %v1108_v52, 4 }
  0xa8   : > { %1668 = vmatpush3.bf16.msra.mxu0 %v1902_v54  ;;  %1688 = vmatpush3.bf16.msra.mxu1 %v1903_v55  ;;  %v1937_v54 = vld [vmem:[#allocation5 + $0x1f0] sm:$0xff]   ;;  %v1099_v55 = vrot.slane %v1097_v49, 3 }
  0xa9   : > { %1693 = vmatprep.subr.bf16.mxu0 %v2114_v0  ;;  %1713 = vmatprep.subr.bf16.mxu1 %v2114_v0 }
  0xab   : > { %1670 = vmatmul.mubr.bf16.vlgmr.msra.gmra.mrb[4].mxu0 %v485_v60  ;;  %1690 = vmatmul.mubr.bf16.vlgmr.msra.gmra.mrb[4].mxu1 %v616_v62  ;;  %v979_v60 = vrot.slane %v1498_v45, 3  ;;  %v1939_v62 = vld [vmem:[#allocation5 + $0x1f8] sm:$0xff]  }
  0xac   : > { %1694 = vmatpush3.bf16.msra.mxu0 %v1905_v61  ;;  %1714 = vmatpush3.bf16.msra.mxu1 %v1907_v63  ;;  %v980_v61 = vrot.slane %v2404_v9, 3  ;;  %v1103_v63 = vor.u32 %v1102_v56, %v1099_v55  ;;  %v1947_v9 = vld [vmem:[#allocation5 + $0x228] sm:$0xff]  }
  0xad   : > { %1695 = vmatprep.subr.bf16.mxu0 %v2114_v0  ;;  %1715 = vmatprep.subr.bf16.mxu1 %v2114_v0 }
  0xae   : > { %1709 = vmatprep.mubr.msk.bf16.mxu0 %vm2115_vm0, %v2114_v0  ;;  %1729 = vmatprep.mubr.msk.bf16.mxu1 %vm2115_vm0, %v2114_v0 }
  0xb0   : > { %1696 = vmatpush3.bf16.msra.mxu0 %v1908_v1  ;;  %1716 = vmatpush3.bf16.msra.mxu1 %v1909_v2  ;;  %v1111_v1 = vor.u32 %v1110_v58, %v1107_v57  ;;  %v981_v2 = vsel %vm978_vm6, %v979_v60, %v980_v61 }
  0xb1   : > { %1697 = vmatprep.subr.bf16.mxu0 %v2114_v0  ;;  %1717 = vmatprep.subr.bf16.mxu1 %v2114_v0 }
  0xb4   : > { %1698 = vmatpush3.bf16.msra.mxu0 %v1910_v3  ;;  %1718 = vmatpush3.bf16.msra.mxu1 %v1911_v4  ;;  %v1941_v3 = vld [vmem:[#allocation5 + $0x200] sm:$0xff]   ;;  %v1112_v4 = vsel %vm1095_vm7, %v1103_v63, %v1111_v1 }
  0xb5   : > { %1699 = vmatprep.subr.bf16.mxu0 %v2114_v0  ;;  %1719 = vmatprep.subr.bf16.mxu1 %v2114_v0 }
  0xb8   : > { %1700 = vmatpush3.bf16.msra.mxu0 %v1912_v5  ;;  %1720 = vmatpush3.bf16.msra.mxu1 %v1913_v6  ;;  %v1943_v5 = vld [vmem:[#allocation5 + $0x208] sm:$0xff]   ;;  %v1944_v6 = vld [vmem:[#allocation5 + $0x210] sm:$0xff]  }
  0xb9   : > { %1701 = vmatprep.subr.bf16.mxu0 %v2114_v0  ;;  %1721 = vmatprep.subr.bf16.mxu1 %v2114_v0 }
  0xbc   : > { %1702 = vmatpush3.bf16.msra.mxu0 %v1914_v8  ;;  %1722 = vmatpush3.bf16.msra.mxu1 %v1915_v10  ;;  %v1946_v8 = vld [vmem:[#allocation5 + $0x220] sm:$0xff]   ;;  %v1948_v10 = vld [vmem:[#allocation5 + $0x230] sm:$0xff]  }
  0xbd   : > { %1703 = vmatprep.subr.bf16.mxu0 %v2114_v0  ;;  %1723 = vmatprep.subr.bf16.mxu1 %v2114_v0 }
  0xc0   : > { %1704 = vmatpush3.bf16.msra.mxu0 %v1916_v13  ;;  %1724 = vmatpush3.bf16.msra.mxu1 %v1917_v14  ;;  %v1516_v13 = vcombine.low %v2348_v12, %v2432_v42 }
  0xc1   : > { %1705 = vmatprep.subr.bf16.mxu0 %v2114_v0  ;;  %1725 = vmatprep.subr.bf16.mxu1 %v2114_v0 }
  0xc4   : > { %1706 = vmatpush3.bf16.msra.mxu0 %v1918_v19  ;;  %1726 = vmatpush3.bf16.msra.mxu1 %v1919_v20 }
  0xc5   : > { %1707 = vmatprep.subr.bf16.mxu0 %v2114_v0  ;;  %1727 = vmatprep.subr.bf16.mxu1 %v2114_v0 }
  0xc8   : > { %1708 = vmatpush3.bf16.msra.mxu0 %v1920_v25  ;;  %1728 = vmatpush3.bf16.msra.mxu1 %v1921_v28 }
  0xc9   : > { %1733 = vmatprep.subr.bf16.mxu0 %v2114_v0  ;;  %1753 = vmatprep.subr.bf16.mxu1 %v2114_v0 }
  0xcb   : > { %1710 = vmatmul.mubr.bf16.vlgmr.msra.gmra.mrb[8].mxu0 %v733_v31  ;;  %1730 = vmatmul.mubr.bf16.vlgmr.msra.gmra.mrb[8].mxu1 %v864_v33 }
  0xcc   : > { %1734 = vmatpush3.bf16.msra.mxu0 %v1923_v32  ;;  %1754 = vmatpush3.bf16.msra.mxu1 %v1925_v34 }
  0xcd   : > { %1735 = vmatprep.subr.bf16.mxu0 %v2114_v0  ;;  %1755 = vmatprep.subr.bf16.mxu1 %v2114_v0 }
  0xce   : > { %1749 = vmatprep.mubr.msk.bf16.mxu0 %vm2115_vm0, %v2114_v0  ;;  %1769 = vmatprep.mubr.msk.bf16.mxu1 %vm2115_vm0, %v2114_v0 }
  0xd0   : > { %1736 = vmatpush3.bf16.msra.mxu0 %v1926_v35  ;;  %1756 = vmatpush3.bf16.msra.mxu1 %v1927_v36 }
  0xd1   : > { %1737 = vmatprep.subr.bf16.mxu0 %v2114_v0  ;;  %1757 = vmatprep.subr.bf16.mxu1 %v2114_v0 }
  0xd4   : > { %1738 = vmatpush3.bf16.msra.mxu0 %v1928_v37  ;;  %1758 = vmatpush3.bf16.msra.mxu1 %v1929_v38 }
  0xd5   : > { %1739 = vmatprep.subr.bf16.mxu0 %v2114_v0  ;;  %1759 = vmatprep.subr.bf16.mxu1 %v2114_v0 }
  0xd8   : > { %1740 = vmatpush3.bf16.msra.mxu0 %v1930_v39  ;;  %1760 = vmatpush3.bf16.msra.mxu1 %v1931_v40 }
  0xd9   : > { %1741 = vmatprep.subr.bf16.mxu0 %v2114_v0  ;;  %1761 = vmatprep.subr.bf16.mxu1 %v2114_v0 }
  0xdc   : > { %1742 = vmatpush3.bf16.msra.mxu0 %v1932_v43  ;;  %1762 = vmatpush3.bf16.msra.mxu1 %v1933_v44 }
  0xdd   : > { %1743 = vmatprep.subr.bf16.mxu0 %v2114_v0  ;;  %1763 = vmatprep.subr.bf16.mxu1 %v2114_v0 }
  0xe0   : > { %1744 = vmatpush3.bf16.msra.mxu0 %v1934_v47  ;;  %1764 = vmatpush3.bf16.msra.mxu1 %v1935_v48 }
  0xe1   : > { %1745 = vmatprep.subr.bf16.mxu0 %v2114_v0  ;;  %1765 = vmatprep.subr.bf16.mxu1 %v2114_v0 }
  0xe4   : > { %1746 = vmatpush3.bf16.msra.mxu0 %v1936_v53  ;;  %1766 = vmatpush3.bf16.msra.mxu1 %v1937_v54 }
  0xe5   : > { %1747 = vmatprep.subr.bf16.mxu0 %v2114_v0  ;;  %1767 = vmatprep.subr.bf16.mxu1 %v2114_v0 }
  0xe8   : > { %1748 = vmatpush3.bf16.msra.mxu0 %v1938_v59  ;;  %1768 = vmatpush3.bf16.msra.mxu1 %v1939_v62  ;;  %v1525_v59 = vld [vmem:[#allocation7] ss:$0 sm:$0xff] }
  0xe9   : > { %1773 = vmatprep.subr.bf16.mxu0 %v2114_v0 }
  0xeb   : > { %1750 = vmatmul.mubr.bf16.vlgmr.msra.gmra.mrb[12].mxu0 %v981_v2  ;;  %1770 = vmatmul.mubr.bf16.vlgmr.msra.gmra.mrb[12].mxu1 %v1112_v4 }
  0xec   : > { %1774 = vmatpush3.bf16.msra.mxu0 %v1941_v3  ;;  %1789 = vmatprep.mubr.msk.bf16.mxu0 %vm2115_vm0, %v2114_v0 }
  0xed   : > { %1775 = vmatprep.subr.bf16.mxu0 %v2114_v0 }
  0xf0   : > { %1776 = vmatpush3.bf16.msra.mxu0 %v1943_v5 }
  0xf1   : > { %1777 = vmatprep.subr.bf16.mxu0 %v2114_v0 }
  0xf4   : > { %1778 = vmatpush3.bf16.msra.mxu0 %v1944_v6 }
  0xf5   : > { %1779 = vmatprep.subr.bf16.mxu0 %v2114_v0 }
  0xf8   : > { %1780 = vmatpush3.bf16.msra.mxu0 %v1945_v7 }
  0xf9   : > { %1781 = vmatprep.subr.bf16.mxu0 %v2114_v0 }
  0xfc   : > { %1782 = vmatpush3.bf16.msra.mxu0 %v1946_v8 }
  0xfd   : > { %1783 = vmatprep.subr.bf16.mxu0 %v2114_v0 }
 0x100   : > { %1784 = vmatpush3.bf16.msra.mxu0 %v1947_v9 }
 0x101   : > { %1785 = vmatprep.subr.bf16.mxu0 %v2114_v0 }
 0x104   : > { %1786 = vmatpush3.bf16.msra.mxu0 %v1948_v10 }
 0x105   : > { %1787 = vmatprep.subr.bf16.mxu0 %v2114_v0 }
 0x108   : > { %1788 = vmatpush3.bf16.msra.mxu0 %v1949_v11 }
 0x10b   : > { %1790 = vmatmul.mubr.bf16.vlgmr.msra.gmra.mrb[16].mxu0 %v1516_v13 }
 0x15e   : > { %v359_v14 = vpop.f32.mrb[0].mxu0  ;;  %v454_v15 = vpop.f32.mrb[0].mxu1 }
 0x15f   : > { %v1631_v16 = vpop.f32.mrb[1].mxu0  ;;  %v455_v17 = vadd.f32 %v454_v15, %v359_v14  ;;  %v1651_v18 = vpop.f32.mrb[1].mxu1 }
 0x160   : > { %v362_v19 = vpop.f32.mrb[2].mxu0  ;;  %v457_v20 = vpop.f32.mrb[2].mxu1 }
 0x161   : > { %v1632_v21 = vpop.f32.mrb[3].mxu0  ;;  %v458_v22 = vadd.f32 %v457_v20, %v362_v19  ;;  %v1652_v23 = vpop.f32.mrb[3].mxu1 }
 0x17e   : > { %v569_v24 = vpop.f32.mrb[4].mxu0  ;;  %v700_v27 = vpop.f32.mrb[4].mxu1 }
 0x17f   : > { %v576_v25 = vadd.f32 %v569_v24, %v455_v17  ;;  %v1671_v26 = vpop.f32.mrb[5].mxu0  ;;  %v1691_v28 = vpop.f32.mrb[5].mxu1 }
 0x180   : > { %v572_v0 = vpop.f32.mrb[6].mxu0  ;;  %v703_v31 = vpop.f32.mrb[6].mxu1 }
 0x181   : > { %v577_v29 = vadd.f32 %v572_v0, %v458_v22  ;;  %v707_v12 = vadd.f32 %v700_v27, %v576_v25  ;;  %v1672_v30 = vpop.f32.mrb[7].mxu0  ;;  %v1692_v32 = vpop.f32.mrb[7].mxu1 }
 0x183   : > { %v708_v33 = vadd.f32 %v703_v31, %v577_v29 }
 0x19e   : > { %v817_v34 = vpop.f32.mrb[8].mxu0  ;;  %v948_v37 = vpop.f32.mrb[8].mxu1 }
 0x19f   : > { %v824_v35 = vadd.f32 %v817_v34, %v707_v12  ;;  %v1711_v36 = vpop.f32.mrb[9].mxu0  ;;  %v1731_v39 = vpop.f32.mrb[9].mxu1 }
 0x1a0   : > { %v820_v38 = vpop.f32.mrb[10].mxu0  ;;  %v951_v43 = vpop.f32.mrb[10].mxu1 }
 0x1a1   : > { %v825_v40 = vadd.f32 %v820_v38, %v708_v33  ;;  %v955_v41 = vadd.f32 %v948_v37, %v824_v35  ;;  %v1712_v42 = vpop.f32.mrb[11].mxu0  ;;  %v1732_v44 = vpop.f32.mrb[11].mxu1 }
 0x1a3   : > { %v956_v45 = vadd.f32 %v951_v43, %v825_v40 }
 0x1be   : > { %v1065_v46 = vpop.f32.mrb[12].mxu0  ;;  %v1196_v49 = vpop.f32.mrb[12].mxu1 }
 0x1bf   : > { %v1072_v47 = vadd.f32 %v1065_v46, %v955_v41  ;;  %v1751_v48 = vpop.f32.mrb[13].mxu0  ;;  %v1771_v51 = vpop.f32.mrb[13].mxu1 }
 0x1c0   : > { %v1068_v50 = vpop.f32.mrb[14].mxu0  ;;  %v1199_v55 = vpop.f32.mrb[14].mxu1 }
 0x1c1   : > { %v1073_v52 = vadd.f32 %v1068_v50, %v956_v45  ;;  %v1203_v53 = vadd.f32 %v1196_v49, %v1072_v47  ;;  %v1752_v54 = vpop.f32.mrb[15].mxu0  ;;  %v1772_v56 = vpop.f32.mrb[15].mxu1 }
 0x1c3   : > { %v1204_v57 = vadd.f32 %v1199_v55, %v1073_v52 }
 0x1de   : > { %v1306_v58 = vpop.f32.mrb[16].mxu0 }
 0x1df   : > { %v1313_v60 = vadd.f32 %v1306_v58, %v1203_v53  ;;  %v1791_v61 = vpop.f32.mrb[17].mxu0 }
 0x1e0   : > { %v1309_v62 = vpop.f32.mrb[18].mxu0 }
 0x1e1   : > { %v1322_v63 = vadd.f32 %v1525_v59, %v1313_v60  ;;  %v1314_v1 = vadd.f32 %v1309_v62, %v1204_v57  ;;  %v1792_v2 = vpop.f32.mrb[19].mxu0 }
 0x1e3   : > { %1325 = vst.msk [vmem:[%s215_s7] sm:$0xff] %vm1324_vm8, %v1322_v63  ;;  %v1323_v3 = vadd.f32 %v1525_v59, %v1314_v1 }
 0x1e5   : > { %1326 = vst.msk [vmem:[%s215_s7 + $0x8] sm:$0xff] %vm1324_vm8, %v1323_v3 }
 0x1e6   : > { %2050 = shalt.err (!%p2047_p1)
}
 0x1e7   : > { %s2051_s17 = scalar_lea.hbm %s2463_s22, 256  ;;  %s2055_s4 = scalar_lea.hbm %s2512_s3, 512 }
 0x1e8   : > { %p2052_p13 = scmp.ne.s32.totalorder %s2463_s22, %s2051_s17  ;;  %p2056_p4 = scmp.lt.u32.totalorder %s2463_s22, %s2512_s3 }
 0x1e9   : > { %p2057_p5 = scmp.lt.u32.totalorder %s2055_s4, %s2051_s17  ;;  %p2059_p11 = scmp.lt.u32.totalorder %s2051_s17, %s2463_s22 }
 0x1ea   : > { %p2053_p6 = pnand %p2052_p13, %p2526_p0 }
 0x1eb   : > { %p2058_p8 = por %p2057_p5, %p2056_p4 }
 0x1ec   : > { %p2054_p10 = pneg %p2053_p6 }
 0x1ed   : > { %p2060_p2 = por %p2059_p11, %p2058_p8 }
 0x1ef   : > { %p2061_p3 = pnand %p2060_p2, %p2054_p10 }
 0x1f1   : > { %2064 = shalt.err (!%p2061_p3)
}
 0x1f2   : > { %s2117_s18 = smov 128   ;;  %s2118_s20 = smov 8  }
 0x1f3   : > { %1806 = dma.vmem_to_hbm [thread:$0]  (%p2526_p0), %s2465_s8, 256, %s2463_s22, %s1328_s16, %s2117_s18, %s2117_s18, %s2118_s20  }
 0x1f4 PF: > { %s1356_s7 = sand.u32 1, %s2095_s12   ;;  %p2527_p7 = scmp.ne.s32.totalorder %s2517_s19, 0 }
 0x1f5   : > { %p2528_p9 = scmp.ge.s32.totalorder %s2107_s15, 2  ;;  %s1357_s21 = scalar_lea.sflag [#allocation4], %s1356_s7 }
 0x1f7   : > { %p1820_p12 = pnand %p2528_p9, %p2527_p7 }
 0x1f9   : > { %2090 = dma.done.wait (!%p1820_p12), %s1357_s21, 256  }
 0x1fa   : > { %2092 = vsyncadd (!%p1820_p12), %s1357_s21, 4294967040  ;;  %p17_p1 = scmp.ge.s32.totalorder %s2253_s5, 4   ;;  %s2529_s12 = smov %s2099_s13 }
 0x1fb   : > { %s2530_s13 = smov %s2103_s14  ;;  %s2531_s14 = smov %s2269_s10 }
 0x1fc   : > { %s2532_s15 = smov %s2253_s5  ;;  %19 = sbr.rel (!%p17_p1) target bundleno = 6 (0x6), region = 93 }
 0x203   :  { %1362 = vsyncpa [#allocation3], 1 }
 0x204   :  { %1364 = vsyncpa [#allocation3 + $0x1], 1 }
 0x205   :  { %1365 = vsyncpa [#allocation6], 1 }
 0x206   :  { %1366 = vsyncpa [#allocation4], 1 }
 0x207   :  { %1368 = vsyncpa [#allocation4 + $0x1], 1 }

</bundles_post_ra>
